<compile_context>
chip_gen: v7x
topology: tpu7x:2x2x1
jax: 0.10.0
libtpu: 0.0.40
codegen_flags: <defaults>
</compile_context>

<pallas_src>
import math
import functools

import jax
import jax.numpy as jnp
from jax.experimental import pallas as pl
from jax.experimental.pallas import tpu as pltpu


# contract the last dim of both operands: y = x @ W.T without an explicit transpose
_CDIMS = (((1,), (1,)), ((), ()))
_LN_EPS = 1e-5


# ----------------------------- in-kernel helpers -----------------------------

def _dot_t(x, w):
    """x @ w.T with bf16 MXU operands and f32 accumulation."""
    return jax.lax.dot_general(x.astype(jnp.bfloat16), w.astype(jnp.bfloat16),
                               _CDIMS, preferred_element_type=jnp.float32)


def _layernorm(z, g, b):
    # z: (M, D) f32, g/b: (1, D) f32; eps = 1e-5 (PyTorch default)
    mean = jnp.mean(z, axis=-1, keepdims=True)
    var = jnp.mean(jnp.square(z - mean), axis=-1, keepdims=True)
    return (z - mean) * jax.lax.rsqrt(var + _LN_EPS) * g + b


def _softmax(s):
    # s: (Sq, Sk) f32; approx reciprocal goes to the EUP slot (tiny rel. error ~2^-12)
    s = s - jnp.max(s, axis=-1, keepdims=True)
    p = jnp.exp(s)
    return p * pl.reciprocal(jnp.sum(p, axis=-1, keepdims=True), approx=True)


def _ffn(x, w1, b1, w2, b2):
    # relu(x @ W1.T + b1) @ W2.T + b2   (nn.Transformer default activation: relu)
    h = jnp.maximum(_dot_t(x, w1) + b1, 0.0)
    return _dot_t(h, w2) + b2


def _mha(x_q, x_kv, wq, bq, wkv, bkv, wo, bo, bias_per_batch, *, B, Sq, Sk, nhead):
    """Multi-head attention on flattened activations.

    x_q: (B*Sq, D) f32, x_kv: (B*Sk, D) f32.
    wq: (D, D), wkv: (2D, D), wo: (D, D) bf16; bq: (1, D), bkv: (1, 2D), bo: (1, D) f32.
    bias_per_batch: None, or list of B additive (Sq, Sk) f32 masks.
    """
    D = x_q.shape[-1]
    dh = D // nhead
    scale = 1.0 / math.sqrt(dh)

    q_all = _dot_t(x_q, wq) + bq          # (B*Sq, D)
    kv_all = _dot_t(x_kv, wkv) + bkv      # (B*Sk, 2D)

    rows = []
    for b in range(B):                    # B is tiny and static
        q_b = q_all[b * Sq:(b + 1) * Sq, :]
        k_b = kv_all[b * Sk:(b + 1) * Sk, :D]
        v_b = kv_all[b * Sk:(b + 1) * Sk, D:]
        bias_b = None if bias_per_batch is None else bias_per_batch[b]
        heads = []
        # TODO(synk): at larger nhead/dh switch this static unroll to lax.fori_loop with
        # a VMEM accumulator to bound vreg live ranges (fine at nhead=4, dh=8).
        for h in range(nhead):
            lo, hi = h * dh, (h + 1) * dh
            s = jax.lax.dot_general(q_b[:, lo:hi].astype(jnp.bfloat16),
                                    k_b[:, lo:hi].astype(jnp.bfloat16),
                                    _CDIMS, preferred_element_type=jnp.float32) * scale
            if bias_b is not None:
                s = s + bias_b
            p = _softmax(s)
            heads.append(jnp.dot(p.astype(jnp.bfloat16),
                                 v_b[:, lo:hi].astype(jnp.bfloat16),
                                 preferred_element_type=jnp.float32))
        rows.append(jnp.concatenate(heads, axis=-1))      # (Sq, D)
    ctx = jnp.concatenate(rows, axis=0)                    # (B*Sq, D)
    return _dot_t(ctx, wo) + bo


# ----------------------------- fused stack kernels -----------------------------

def _encoder_stack_kernel(x_in_ref, kbias_ref,
                          wq_ref, bq_ref, wkv_ref, bkv_ref, wo_ref, bo_ref,
                          ln1g_ref, ln1b_ref,
                          w1_ref, b1_ref, w2_ref, b2_ref,
                          ln2g_ref, ln2b_ref,
                          fg_ref, fb_ref,
                          mem_ref, x_sc, *, B, S, nhead):
    layer = pl.program_id(0)

    @pl.when(layer == 0)
    def _():
        x_sc[...] = x_in_ref[...].astype(jnp.float32)

    x = x_sc[...]                                               # (B*S, D) f32
    # hoist the (1,S) -> (S,S) key-padding bias broadcast out of the head loop
    bias = [jnp.broadcast_to(kbias_ref[b], (S, S)) for b in range(B)]

    sa = _mha(x, x, wq_ref[...], bq_ref[...], wkv_ref[...], bkv_ref[...],
              wo_ref[...], bo_ref[...], bias, B=B, Sq=S, Sk=S, nhead=nhead)
    x = _layernorm(x + sa, ln1g_ref[...], ln1b_ref[...])        # post-norm residual
    ff = _ffn(x, w1_ref[...], b1_ref[...], w2_ref[...], b2_ref[...])
    x = _layernorm(x + ff, ln2g_ref[...], ln2b_ref[...])
    x_sc[...] = x

    @pl.when(layer == pl.num_programs(0) - 1)
    def _():
        # final encoder LayerNorm fused into the last layer's step
        mem_ref[...] = _layernorm(x, fg_ref[...], fb_ref[...]).astype(mem_ref.dtype)


def _decoder_stack_kernel(y_in_ref, mem_ref, tmask_ref, kbias_ref,
                          sa_wq_ref, sa_bq_ref, sa_wkv_ref, sa_bkv_ref, sa_wo_ref, sa_bo_ref,
                          ln1g_ref, ln1b_ref,
                          ca_wq_ref, ca_bq_ref, ca_wkv_ref, ca_bkv_ref, ca_wo_ref, ca_bo_ref,
                          ln2g_ref, ln2b_ref,
                          w1_ref, b1_ref, w2_ref, b2_ref,
                          ln3g_ref, ln3b_ref,
                          fg_ref, fb_ref, pw_ref, pb_ref,
                          logits_ref, y_sc, *, B, St, Ss, nhead):
    layer = pl.program_id(0)

    @pl.when(layer == 0)
    def _():
        y_sc[...] = y_in_ref[...].astype(jnp.float32)

    y = y_sc[...]                                               # (B*St, D) f32
    mem = mem_ref[...].astype(jnp.float32)                      # (B*Ss, D) f32
    tmask = tmask_ref[...]                                      # (St, St) f32
    self_bias = [tmask + kbias_ref[b] for b in range(B)]        # (St, St) each

    sa = _mha(y, y, sa_wq_ref[...], sa_bq_ref[...], sa_wkv_ref[...], sa_bkv_ref[...],
              sa_wo_ref[...], sa_bo_ref[...], self_bias, B=B, Sq=St, Sk=St, nhead=nhead)
    y = _layernorm(y + sa, ln1g_ref[...], ln1b_ref[...])
    # cross-attention is unmasked (memory_key_padding_mask is None in the module)
    ca = _mha(y, mem, ca_wq_ref[...], ca_bq_ref[...], ca_wkv_ref[...], ca_bkv_ref[...],
              ca_wo_ref[...], ca_bo_ref[...], None, B=B, Sq=St, Sk=Ss, nhead=nhead)
    y = _layernorm(y + ca, ln2g_ref[...], ln2b_ref[...])
    ff = _ffn(y, w1_ref[...], b1_ref[...], w2_ref[...], b2_ref[...])
    y = _layernorm(y + ff, ln3g_ref[...], ln3b_ref[...])
    y_sc[...] = y

    @pl.when(layer == pl.num_programs(0) - 1)
    def _():
        # final decoder LayerNorm + predict linear fused into the last layer's step;
        # logits output is lane-dense (vocab padded to a multiple of 128).
        yn = _layernorm(y, fg_ref[...], fb_ref[...])
        logits_ref[...] = (_dot_t(yn, pw_ref[...]) + pb_ref[...]).astype(logits_ref.dtype)


# ----------------------------- BlockSpec / weight-stacking helpers -----------------------------

def _stream_spec(arr):
    # per-layer weight: leading layer axis streamed (double-buffered DMA), squeezed in kernel
    nrest = arr.ndim - 1
    return pl.BlockSpec((None,) + tuple(arr.shape[1:]),
                        lambda l, _n=nrest: (l,) + (0,) * _n)


def _bcast_spec(arr):
    # full-array block, same block every grid step (loaded once, no re-DMA)
    nd = arr.ndim
    return pl.BlockSpec(tuple(arr.shape), lambda l, _n=nd: (0,) * _n)


def _stack_layers(layers, fn, dtype=None):
    a = jnp.stack([fn(p) for p in layers], axis=0)
    return a if dtype is None else a.astype(dtype)


def _attn_streams(layers, key, D, bf):
    # PyTorch packed in_proj (3D, D) = [Wq; Wk; Wv] -> fused Wq (D,D) and Wkv (2D,D)
    return [
        _stack_layers(layers, lambda p: p[key]["in_proj_w"][:D], bf),
        _stack_layers(layers, lambda p: p[key]["in_proj_b"][:D].reshape(1, D)),
        _stack_layers(layers, lambda p: p[key]["in_proj_w"][D:], bf),
        _stack_layers(layers, lambda p: p[key]["in_proj_b"][D:].reshape(1, 2 * D)),
        _stack_layers(layers, lambda p: p[key]["out_proj_w"], bf),
        _stack_layers(layers, lambda p: p[key]["out_proj_b"].reshape(1, D)),
    ]


def _ln_streams(layers, key, D):
    return [_stack_layers(layers, lambda p: p[key]["g"].reshape(1, D)),
            _stack_layers(layers, lambda p: p[key]["b"].reshape(1, D))]


def _ffn_streams(layers, D, bf):
    return [_stack_layers(layers, lambda p: p["ffn"]["w1"], bf),
            _stack_layers(layers, lambda p: p["ffn"]["b1"].reshape(1, -1)),
            _stack_layers(layers, lambda p: p["ffn"]["w2"], bf),
            _stack_layers(layers, lambda p: p["ffn"]["b2"].reshape(1, D))]


_COMPILER_PARAMS = pltpu.CompilerParams(
    dimension_semantics=("arbitrary",),          # layer axis is sequential
    vmem_limit_bytes=32 * 1024 * 1024)


# ----------------------------- stack wrappers -----------------------------

def encoder_stack_pallas(x, kbias, layers, final_norm, nhead):
    B, S, D = x.shape
    L = len(layers)
    bf = jnp.bfloat16
    x2d = x.reshape(B * S, D).astype(jnp.float32)

    streamed = (_attn_streams(layers, "self_attn", D, bf)
                + _ln_streams(layers, "norm1", D)
                + _ffn_streams(layers, D, bf)
                + _ln_streams(layers, "norm2", D))
    finals = [final_norm["g"].reshape(1, D).astype(jnp.float32),
              final_norm["b"].reshape(1, D).astype(jnp.float32)]

    return pl.pallas_call(
        functools.partial(_encoder_stack_kernel, B=B, S=S, nhead=nhead),
        out_shape=jax.ShapeDtypeStruct((B * S, D), jnp.float32),
        grid=(L,),
        in_specs=([_bcast_spec(x2d), _bcast_spec(kbias)]
                  + [_stream_spec(a) for a in streamed]
                  + [_bcast_spec(a) for a in finals]),
        out_specs=pl.BlockSpec((B * S, D), lambda l: (0, 0)),
        scratch_shapes=[pltpu.VMEM((B * S, D), jnp.float32)],
        compiler_params=_COMPILER_PARAMS,
    )(x2d, kbias, *streamed, *finals)


def decoder_stack_pallas(y, mem2d, tgt_mask, kbias, layers, final_norm,
                         predict_w, predict_b, nhead):
    B, St, D = y.shape
    Ss = mem2d.shape[0] // B
    L = len(layers)
    bf = jnp.bfloat16
    y2d = y.reshape(B * St, D).astype(jnp.float32)

    # lane-dense logits: pad vocab to the next multiple of 128 (sliced in the wrapper)
    V = predict_w.shape[0]
    Vp = ((V + 127) // 128) * 128
    pw = jnp.zeros((Vp, D), jnp.float32).at[:V].set(predict_w).astype(bf)
    pb = jnp.zeros((1, Vp), jnp.float32).at[0, :V].set(predict_b)

    streamed = (_attn_streams(layers, "self_attn", D, bf)
                + _ln_streams(layers, "norm1", D)
                + _attn_streams(layers, "cross_attn", D, bf)
                + _ln_streams(layers, "norm2", D)
                + _ffn_streams(layers, D, bf)
                + _ln_streams(layers, "norm3", D))
    finals = [final_norm["g"].reshape(1, D).astype(jnp.float32),
              final_norm["b"].reshape(1, D).astype(jnp.float32),
              pw, pb]

    logits = pl.pallas_call(
        functools.partial(_decoder_stack_kernel, B=B, St=St, Ss=Ss, nhead=nhead),
        out_shape=jax.ShapeDtypeStruct((B * St, Vp), jnp.float32),
        grid=(L,),
        in_specs=([_bcast_spec(y2d), _bcast_spec(mem2d),
                   _bcast_spec(tgt_mask), _bcast_spec(kbias)]
                  + [_stream_spec(a) for a in streamed]
                  + [_bcast_spec(a) for a in finals]),
        out_specs=pl.BlockSpec((B * St, Vp), lambda l: (0, 0)),
        scratch_shapes=[pltpu.VMEM((B * St, D), jnp.float32)],
        compiler_params=_COMPILER_PARAMS,
    )(y2d, mem2d, tgt_mask, kbias, *streamed, *finals)
    return logits                                    # (B*St, Vp)


# ----------------------------- model glue (plain JAX) -----------------------------

def positional_encoding(x):
    # PyTorch PositionalEncoding buffer (dropout is identity in eval mode)
    B, S, D = x.shape
    pos = jnp.arange(S, dtype=jnp.float32)[:, None]
    den = jnp.exp(-jnp.arange(0, D, 2, dtype=jnp.float32) * math.log(10000.0) / D)
    pe = jnp.zeros((S, D), jnp.float32)
    pe = pe.at[:, 0::2].set(jnp.sin(pos * den))
    pe = pe.at[:, 1::2].set(jnp.cos(pos * den))
    return x + pe[None]


def seq2seq_transformer_forward(params, enc_inp, dec_inp, tgt_mask,
                                enc_pad_mask, dec_pad_mask, nhead):
    B, Ss = enc_inp.shape
    St = dec_inp.shape[1]
    V = params["predict_w"].shape[0]

    # TODO(synk): embedding lookup (gather) + PE add stay in plain JAX (no clean Pallas win).
    enc_x = positional_encoding(jnp.take(params["enc_emb"], enc_inp, axis=0))
    dec_x = positional_encoding(jnp.take(params["dec_emb"], dec_inp, axis=0))

    # only (B, 1, S) additive key-padding biases are materialized (True == pad/ignore)
    neg = jnp.float32(-1e9)
    enc_kbias = jnp.where(enc_pad_mask, neg, 0.0).astype(jnp.float32).reshape(B, 1, Ss)
    dec_kbias = jnp.where(dec_pad_mask, neg, 0.0).astype(jnp.float32).reshape(B, 1, St)
    tgt_mask_f = tgt_mask.astype(jnp.float32)

    mem2d = encoder_stack_pallas(enc_x, enc_kbias, params["enc_layers"],
                                 params["enc_norm"], nhead)                  # (B*Ss, D)
    logits_p = decoder_stack_pallas(dec_x, mem2d, tgt_mask_f, dec_kbias,
                                    params["dec_layers"], params["dec_norm"],
                                    params["predict_w"], params["predict_b"], nhead)
    return logits_p.reshape(B, St, -1)[:, :, :V]


# ----------------------------- deterministic parameter init -----------------------------

def init_params(key, d_model, nhead, n_enc, n_dec, dim_ff, enc_voc, dec_voc):
    keys = iter(jax.random.split(key, 256))

    def nrm(shape, scale=0.02):
        return jax.random.normal(next(keys), shape, dtype=jnp.float32) * scale

    def mha_p():
        return dict(in_proj_w=nrm((3 * d_model, d_model)),
                    in_proj_b=jnp.zeros((3 * d_model,), jnp.float32),
                    out_proj_w=nrm((d_model, d_model)),
                    out_proj_b=jnp.zeros((d_model,), jnp.float32))

    def ln_p():
        return dict(g=jnp.ones((d_model,), jnp.float32),
                    b=jnp.zeros((d_model,), jnp.float32))

    def ffn_p():
        return dict(w1=nrm((dim_ff, d_model)), b1=jnp.zeros((dim_ff,), jnp.float32),
                    w2=nrm((d_model, dim_ff)), b2=jnp.zeros((d_model,), jnp.float32))

    enc_layers = [dict(self_attn=mha_p(), norm1=ln_p(), ffn=ffn_p(), norm2=ln_p())
                  for _ in range(n_enc)]
    dec_layers = [dict(self_attn=mha_p(), norm1=ln_p(), cross_attn=mha_p(),
                       norm2=ln_p(), ffn=ffn_p(), norm3=ln_p())
                  for _ in range(n_dec)]

    return dict(
        enc_emb=nrm((enc_voc, d_model), 1.0),
        dec_emb=nrm((dec_voc, d_model), 1.0),
        enc_layers=enc_layers,
        dec_layers=dec_layers,
        enc_norm=ln_p(),
        dec_norm=ln_p(),
        predict_w=nrm((dec_voc, d_model)),
        predict_b=jnp.zeros((dec_voc,), jnp.float32),
    )


# ----------------------------- main -----------------------------

if __name__ == "__main__":
    d_model, nhead = 32, 4
    num_enc_layers, num_dec_layers = 2, 2
    dim_forward = 64
    enc_voc_size, dec_voc_size = 37, 41
    B, S_src, S_tgt = 2, 8, 8

    key = jax.random.PRNGKey(0)
    pkey, k_src, k_tgt = jax.random.split(key, 3)
    params = init_params(pkey, d_model, nhead, num_enc_layers, num_dec_layers,
                         dim_forward, enc_voc_size, dec_voc_size)

    enc_inp = jax.random.randint(k_src, (B, S_src), 0, enc_voc_size, dtype=jnp.int32)
    dec_inp = jax.random.randint(k_tgt, (B, S_tgt), 0, dec_voc_size, dtype=jnp.int32)

    # causal target mask (float additive, like nn.Transformer.generate_square_subsequent_mask)
    tgt_mask = jnp.where(jnp.triu(jnp.ones((S_tgt, S_tgt), bool), k=1),
                         jnp.float32(-1e9), jnp.float32(0.0))
    # key padding masks: True == padding position (ignored)
    enc_pad_mask = jnp.zeros((B, S_src), bool).at[:, -2:].set(True)
    dec_pad_mask = jnp.zeros((B, S_tgt), bool).at[:, -1:].set(True)

    fwd = jax.jit(functools.partial(seq2seq_transformer_forward, nhead=nhead))
    out = fwd(params, enc_inp, dec_inp, tgt_mask, enc_pad_mask, dec_pad_mask)
    out = jax.block_until_ready(out)

    assert out.shape == (B, S_tgt, dec_voc_size)
    assert bool(jnp.all(jnp.isfinite(out)))
    print("KERNEL_OK")
</pallas_src>

<mosaic_0001>
module attributes {stable_mosaic.version = 11 : i64} {
  func.func @_decoder_stack_kernel(%arg0: i32, %arg1: memref<16x32xf32, #tpu.memory_space<vmem>>, %arg2: memref<16x32xf32, #tpu.memory_space<vmem>>, %arg3: memref<8x8xf32, #tpu.memory_space<vmem>>, %arg4: memref<2x1x8xf32, #tpu.memory_space<vmem>>, %arg5: memref<1x32x32xbf16, #tpu.memory_space<vmem>>, %arg6: memref<1x1x32xf32, #tpu.memory_space<vmem>>, %arg7: memref<1x64x32xbf16, #tpu.memory_space<vmem>>, %arg8: memref<1x1x64xf32, #tpu.memory_space<vmem>>, %arg9: memref<1x32x32xbf16, #tpu.memory_space<vmem>>, %arg10: memref<1x1x32xf32, #tpu.memory_space<vmem>>, %arg11: memref<1x1x32xf32, #tpu.memory_space<vmem>>, %arg12: memref<1x1x32xf32, #tpu.memory_space<vmem>>, %arg13: memref<1x32x32xbf16, #tpu.memory_space<vmem>>, %arg14: memref<1x1x32xf32, #tpu.memory_space<vmem>>, %arg15: memref<1x64x32xbf16, #tpu.memory_space<vmem>>, %arg16: memref<1x1x64xf32, #tpu.memory_space<vmem>>, %arg17: memref<1x32x32xbf16, #tpu.memory_space<vmem>>, %arg18: memref<1x1x32xf32, #tpu.memory_space<vmem>>, %arg19: memref<1x1x32xf32, #tpu.memory_space<vmem>>, %arg20: memref<1x1x32xf32, #tpu.memory_space<vmem>>, %arg21: memref<1x64x32xbf16, #tpu.memory_space<vmem>>, %arg22: memref<1x1x64xf32, #tpu.memory_space<vmem>>, %arg23: memref<1x32x64xbf16, #tpu.memory_space<vmem>>, %arg24: memref<1x1x32xf32, #tpu.memory_space<vmem>>, %arg25: memref<1x1x32xf32, #tpu.memory_space<vmem>>, %arg26: memref<1x1x32xf32, #tpu.memory_space<vmem>>, %arg27: memref<1x32xf32, #tpu.memory_space<vmem>>, %arg28: memref<1x32xf32, #tpu.memory_space<vmem>>, %arg29: memref<128x32xbf16, #tpu.memory_space<vmem>>, %arg30: memref<1x128xf32, #tpu.memory_space<vmem>>, %arg31: memref<16x128xf32, #tpu.memory_space<vmem>>, %arg32: memref<16x32xf32, #tpu.memory_space<vmem>>) attributes {dimension_semantics = [#tpu.dimension_semantics<arbitrary>], iteration_bounds = array<i64: 2>, scalar_prefetch = 0 : i64, scratch_operands = 1 : i64, tpu.core_type = #tpu.core_type<tc>, window_params = [{pipeline_mode = #tpu.pipeline_mode<synchronous>, transform_indices = @transform_0, window_bounds = array<i64: 16, 32>}, {pipeline_mode = #tpu.pipeline_mode<synchronous>, transform_indices = @transform_1, window_bounds = array<i64: 16, 32>}, {pipeline_mode = #tpu.pipeline_mode<synchronous>, transform_indices = @transform_2, window_bounds = array<i64: 8, 8>}, {pipeline_mode = #tpu.pipeline_mode<synchronous>, transform_indices = @transform_3, window_bounds = array<i64: 2, 1, 8>}, {transform_indices = @transform_4, window_bounds = array<i64: 1, 32, 32>}, {transform_indices = @transform_5, window_bounds = array<i64: 1, 1, 32>}, {transform_indices = @transform_6, window_bounds = array<i64: 1, 64, 32>}, {transform_indices = @transform_7, window_bounds = array<i64: 1, 1, 64>}, {transform_indices = @transform_8, window_bounds = array<i64: 1, 32, 32>}, {transform_indices = @transform_9, window_bounds = array<i64: 1, 1, 32>}, {transform_indices = @transform_10, window_bounds = array<i64: 1, 1, 32>}, {transform_indices = @transform_11, window_bounds = array<i64: 1, 1, 32>}, {transform_indices = @transform_12, window_bounds = array<i64: 1, 32, 32>}, {transform_indices = @transform_13, window_bounds = array<i64: 1, 1, 32>}, {transform_indices = @transform_14, window_bounds = array<i64: 1, 64, 32>}, {transform_indices = @transform_15, window_bounds = array<i64: 1, 1, 64>}, {transform_indices = @transform_16, window_bounds = array<i64: 1, 32, 32>}, {transform_indices = @transform_17, window_bounds = array<i64: 1, 1, 32>}, {transform_indices = @transform_18, window_bounds = array<i64: 1, 1, 32>}, {transform_indices = @transform_19, window_bounds = array<i64: 1, 1, 32>}, {transform_indices = @transform_20, window_bounds = array<i64: 1, 64, 32>}, {transform_indices = @transform_21, window_bounds = array<i64: 1, 1, 64>}, {transform_indices = @transform_22, window_bounds = array<i64: 1, 32, 64>}, {transform_indices = @transform_23, window_bounds = array<i64: 1, 1, 32>}, {transform_indices = @transform_24, window_bounds = array<i64: 1, 1, 32>}, {transform_indices = @transform_25, window_bounds = array<i64: 1, 1, 32>}, {pipeline_mode = #tpu.pipeline_mode<synchronous>, transform_indices = @transform_26, window_bounds = array<i64: 1, 32>}, {pipeline_mode = #tpu.pipeline_mode<synchronous>, transform_indices = @transform_27, window_bounds = array<i64: 1, 32>}, {pipeline_mode = #tpu.pipeline_mode<synchronous>, transform_indices = @transform_28, window_bounds = array<i64: 128, 32>}, {pipeline_mode = #tpu.pipeline_mode<synchronous>, transform_indices = @transform_29, window_bounds = array<i64: 1, 128>}, {pipeline_mode = #tpu.pipeline_mode<synchronous>, transform_indices = @transform_30, window_bounds = array<i64: 16, 128>}]} {
    %c0_i32 = arith.constant 0 : i32
    %0 = arith.cmpi eq, %arg0, %c0_i32 : i32
    %1 = arith.extui %0 : i1 to i32
    %c0_i32_0 = arith.constant 0 : i32
    %2 = arith.cmpi ne, %1, %c0_i32_0 : i32
    scf.if %2 {
      %c0_183 = arith.constant 0 : index
      %c0_184 = arith.constant 0 : index
      %527 = vector.load %arg1[%c0_183, %c0_184] : memref<16x32xf32, #tpu.memory_space<vmem>>, vector<16x32xf32>
      %c0_185 = arith.constant 0 : index
      %c0_186 = arith.constant 0 : index
      %528 = vector.load %arg32[%c0_185, %c0_186] : memref<16x32xf32, #tpu.memory_space<vmem>>, vector<16x32xf32>
      tpu.vector_store %arg32[%c0_185, %c0_186], %527 {strides = array<i32>} : memref<16x32xf32, #tpu.memory_space<vmem>>, vector<16x32xf32>,
    } else {
    }
    %c0 = arith.constant 0 : index
    %c0_1 = arith.constant 0 : index
    %3 = vector.load %arg32[%c0, %c0_1] : memref<16x32xf32, #tpu.memory_space<vmem>>, vector<16x32xf32>
    %c0_2 = arith.constant 0 : index
    %c0_3 = arith.constant 0 : index
    %4 = vector.load %arg2[%c0_2, %c0_3] : memref<16x32xf32, #tpu.memory_space<vmem>>, vector<16x32xf32>
    %c0_4 = arith.constant 0 : index
    %c0_5 = arith.constant 0 : index
    %5 = vector.load %arg3[%c0_4, %c0_5] : memref<8x8xf32, #tpu.memory_space<vmem>>, vector<8x8xf32>
    %c0_6 = arith.constant 0 : index
    %c0_7 = arith.constant 0 : index
    %c0_8 = arith.constant 0 : index
    %6 = vector.load %arg4[%c0_6, %c0_7, %c0_8] : memref<2x1x8xf32, #tpu.memory_space<vmem>>, vector<1x1x8xf32>
    %7 = vector.shape_cast %6 : vector<1x1x8xf32> to vector<1x8xf32>
    %8 = vector.broadcast %7 : vector<1x8xf32> to vector<8x8xf32>
    %9 = arith.addf %5, %8 : vector<8x8xf32>
    %c1 = arith.constant 1 : index
    %c0_9 = arith.constant 0 : index
    %c0_10 = arith.constant 0 : index
    %10 = vector.load %arg4[%c1, %c0_9, %c0_10] : memref<2x1x8xf32, #tpu.memory_space<vmem>>, vector<1x1x8xf32>
    %11 = vector.shape_cast %10 : vector<1x1x8xf32> to vector<1x8xf32>
    %12 = vector.broadcast %11 : vector<1x8xf32> to vector<8x8xf32>
    %13 = arith.addf %5, %12 : vector<8x8xf32>
    %c0_11 = arith.constant 0 : index
    %c0_12 = arith.constant 0 : index
    %c0_13 = arith.constant 0 : index
    %14 = vector.load %arg5[%c0_11, %c0_12, %c0_13] : memref<1x32x32xbf16, #tpu.memory_space<vmem>>, vector<1x32x32xbf16>
    %15 = vector.shape_cast %14 : vector<1x32x32xbf16> to vector<32x32xbf16>
    %c0_14 = arith.constant 0 : index
    %c0_15 = arith.constant 0 : index
    %c0_16 = arith.constant 0 : index
    %16 = vector.load %arg6[%c0_14, %c0_15, %c0_16] : memref<1x1x32xf32, #tpu.memory_space<vmem>>, vector<1x1x32xf32>
    %17 = vector.shape_cast %16 : vector<1x1x32xf32> to vector<1x32xf32>
    %c0_17 = arith.constant 0 : index
    %c0_18 = arith.constant 0 : index
    %c0_19 = arith.constant 0 : index
    %18 = vector.load %arg7[%c0_17, %c0_18, %c0_19] : memref<1x64x32xbf16, #tpu.memory_space<vmem>>, vector<1x64x32xbf16>
    %19 = vector.shape_cast %18 : vector<1x64x32xbf16> to vector<64x32xbf16>
    %c0_20 = arith.constant 0 : index
    %c0_21 = arith.constant 0 : index
    %c0_22 = arith.constant 0 : index
    %20 = vector.load %arg8[%c0_20, %c0_21, %c0_22] : memref<1x1x64xf32, #tpu.memory_space<vmem>>, vector<1x1x64xf32>
    %21 = vector.shape_cast %20 : vector<1x1x64xf32> to vector<1x64xf32>
    %c0_23 = arith.constant 0 : index
    %c0_24 = arith.constant 0 : index
    %c0_25 = arith.constant 0 : index
    %22 = vector.load %arg9[%c0_23, %c0_24, %c0_25] : memref<1x32x32xbf16, #tpu.memory_space<vmem>>, vector<1x32x32xbf16>
    %23 = vector.shape_cast %22 : vector<1x32x32xbf16> to vector<32x32xbf16>
    %c0_26 = arith.constant 0 : index
    %c0_27 = arith.constant 0 : index
    %c0_28 = arith.constant 0 : index
    %24 = vector.load %arg10[%c0_26, %c0_27, %c0_28] : memref<1x1x32xf32, #tpu.memory_space<vmem>>, vector<1x1x32xf32>
    %25 = vector.shape_cast %24 : vector<1x1x32xf32> to vector<1x32xf32>
    %26 = arith.truncf %3 : vector<16x32xf32> to vector<16x32xbf16>
    %cst = arith.constant dense<0.000000e+00> : vector<16x32xf32>
    %27 = tpu.matmul %26, %15, %cst {dimension_numbers = #tpu.dot_dimension_numbers<[1], [1], [0], [0], [0, 0, 1, 0], [], []>} : vector<16x32xbf16>, vector<32x32xbf16>, vector<16x32xf32> -> vector<16x32xf32>
    %28 = vector.broadcast %17 : vector<1x32xf32> to vector<16x32xf32>
    %29 = arith.addf %27, %28 : vector<16x32xf32>
    %30 = arith.truncf %3 : vector<16x32xf32> to vector<16x32xbf16>
    %cst_29 = arith.constant dense<0.000000e+00> : vector<16x64xf32>
    %31 = tpu.matmul %30, %19, %cst_29 {dimension_numbers = #tpu.dot_dimension_numbers<[1], [1], [0], [0], [0, 0, 1, 0], [], []>} : vector<16x32xbf16>, vector<64x32xbf16>, vector<16x64xf32> -> vector<16x64xf32>
    %32 = vector.broadcast %21 : vector<1x64xf32> to vector<16x64xf32>
    %33 = arith.addf %31, %32 : vector<16x64xf32>
    %34 = vector.extract_strided_slice %29 {offsets = [0, 0], sizes = [8, 32], strides = [1, 1]} : vector<16x32xf32> to vector<8x32xf32>
    %35 = vector.extract_strided_slice %33 {offsets = [0, 0], sizes = [8, 32], strides = [1, 1]} : vector<16x64xf32> to vector<8x32xf32>
    %36 = vector.extract_strided_slice %33 {offsets = [0, 32], sizes = [8, 32], strides = [1, 1]} : vector<16x64xf32> to vector<8x32xf32>
    %37 = vector.extract_strided_slice %34 {offsets = [0, 0], sizes = [8, 8], strides = [1, 1]} : vector<8x32xf32> to vector<8x8xf32>
    %38 = arith.truncf %37 : vector<8x8xf32> to vector<8x8xbf16>
    %39 = vector.extract_strided_slice %35 {offsets = [0, 0], sizes = [8, 8], strides = [1, 1]} : vector<8x32xf32> to vector<8x8xf32>
    %40 = arith.truncf %39 : vector<8x8xf32> to vector<8x8xbf16>
    %cst_30 = arith.constant dense<0.000000e+00> : vector<8x8xf32>
    %41 = tpu.matmul %38, %40, %cst_30 {dimension_numbers = #tpu.dot_dimension_numbers<[1], [1], [0], [0], [0, 0, 1, 0], [], []>} : vector<8x8xbf16>, vector<8x8xbf16>, vector<8x8xf32> -> vector<8x8xf32>
    %cst_31 = arith.constant 0.353553385 : f32
    %42 = vector.broadcast %cst_31 : f32 to vector<8x8xf32>
    %43 = arith.mulf %41, %42 : vector<8x8xf32>
    %44 = arith.addf %43, %9 : vector<8x8xf32>
    %cst_32 = arith.constant dense<0xFF800000> : vector<8xf32>
    %45 = vector.multi_reduction <maximumf>, %44, %cst_32 [1] : vector<8x8xf32> to vector<8xf32>
    %46 = vector.shape_cast %45 : vector<8xf32> to vector<8x1xf32>
    %47 = vector.broadcast %46 : vector<8x1xf32> to vector<8x8xf32>
    %48 = arith.subf %44, %47 : vector<8x8xf32>
    %49 = math.exp %48 : vector<8x8xf32>
    %cst_33 = arith.constant dense<0.000000e+00> : vector<8xf32>
    %50 = vector.multi_reduction <add>, %49, %cst_33 [1] : vector<8x8xf32> to vector<8xf32>
    %51 = vector.shape_cast %50 : vector<8xf32> to vector<8x1xf32>
    %52 = tpu.reciprocal %51 {approx = true} : vector<8x1xf32> -> vector<8x1xf32>
    %53 = vector.broadcast %52 : vector<8x1xf32> to vector<8x8xf32>
    %54 = arith.mulf %49, %53 : vector<8x8xf32>
    %55 = arith.truncf %54 : vector<8x8xf32> to vector<8x8xbf16>
    %56 = vector.extract_strided_slice %36 {offsets = [0, 0], sizes = [8, 8], strides = [1, 1]} : vector<8x32xf32> to vector<8x8xf32>
    %57 = arith.truncf %56 : vector<8x8xf32> to vector<8x8xbf16>
    %cst_34 = arith.constant dense<0.000000e+00> : vector<8x8xf32>
    %58 = tpu.matmul %55, %57, %cst_34 {dimension_numbers = #tpu.dot_dimension_numbers<[1], [0], [0], [1], [0, 0, 1, 1], [], []>} : vector<8x8xbf16>, vector<8x8xbf16>, vector<8x8xf32> -> vector<8x8xf32>
    %59 = vector.extract_strided_slice %34 {offsets = [0, 8], sizes = [8, 8], strides = [1, 1]} : vector<8x32xf32> to vector<8x8xf32>
    %60 = arith.truncf %59 : vector<8x8xf32> to vector<8x8xbf16>
    %61 = vector.extract_strided_slice %35 {offsets = [0, 8], sizes = [8, 8], strides = [1, 1]} : vector<8x32xf32> to vector<8x8xf32>
    %62 = arith.truncf %61 : vector<8x8xf32> to vector<8x8xbf16>
    %cst_35 = arith.constant dense<0.000000e+00> : vector<8x8xf32>
    %63 = tpu.matmul %60, %62, %cst_35 {dimension_numbers = #tpu.dot_dimension_numbers<[1], [1], [0], [0], [0, 0, 1, 0], [], []>} : vector<8x8xbf16>, vector<8x8xbf16>, vector<8x8xf32> -> vector<8x8xf32>
    %cst_36 = arith.constant 0.353553385 : f32
    %64 = vector.broadcast %cst_36 : f32 to vector<8x8xf32>
    %65 = arith.mulf %63, %64 : vector<8x8xf32>
    %66 = arith.addf %65, %9 : vector<8x8xf32>
    %cst_37 = arith.constant dense<0xFF800000> : vector<8xf32>
    %67 = vector.multi_reduction <maximumf>, %66, %cst_37 [1] : vector<8x8xf32> to vector<8xf32>
    %68 = vector.shape_cast %67 : vector<8xf32> to vector<8x1xf32>
    %69 = vector.broadcast %68 : vector<8x1xf32> to vector<8x8xf32>
    %70 = arith.subf %66, %69 : vector<8x8xf32>
    %71 = math.exp %70 : vector<8x8xf32>
    %cst_38 = arith.constant dense<0.000000e+00> : vector<8xf32>
    %72 = vector.multi_reduction <add>, %71, %cst_38 [1] : vector<8x8xf32> to vector<8xf32>
    %73 = vector.shape_cast %72 : vector<8xf32> to vector<8x1xf32>
    %74 = tpu.reciprocal %73 {approx = true} : vector<8x1xf32> -> vector<8x1xf32>
    %75 = vector.broadcast %74 : vector<8x1xf32> to vector<8x8xf32>
    %76 = arith.mulf %71, %75 : vector<8x8xf32>
    %77 = arith.truncf %76 : vector<8x8xf32> to vector<8x8xbf16>
    %78 = vector.extract_strided_slice %36 {offsets = [0, 8], sizes = [8, 8], strides = [1, 1]} : vector<8x32xf32> to vector<8x8xf32>
    %79 = arith.truncf %78 : vector<8x8xf32> to vector<8x8xbf16>
    %cst_39 = arith.constant dense<0.000000e+00> : vector<8x8xf32>
    %80 = tpu.matmul %77, %79, %cst_39 {dimension_numbers = #tpu.dot_dimension_numbers<[1], [0], [0], [1], [0, 0, 1, 1], [], []>} : vector<8x8xbf16>, vector<8x8xbf16>, vector<8x8xf32> -> vector<8x8xf32>
    %81 = vector.extract_strided_slice %34 {offsets = [0, 16], sizes = [8, 8], strides = [1, 1]} : vector<8x32xf32> to vector<8x8xf32>
    %82 = arith.truncf %81 : vector<8x8xf32> to vector<8x8xbf16>
    %83 = vector.extract_strided_slice %35 {offsets = [0, 16], sizes = [8, 8], strides = [1, 1]} : vector<8x32xf32> to vector<8x8xf32>
    %84 = arith.truncf %83 : vector<8x8xf32> to vector<8x8xbf16>
    %cst_40 = arith.constant dense<0.000000e+00> : vector<8x8xf32>
    %85 = tpu.matmul %82, %84, %cst_40 {dimension_numbers = #tpu.dot_dimension_numbers<[1], [1], [0], [0], [0, 0, 1, 0], [], []>} : vector<8x8xbf16>, vector<8x8xbf16>, vector<8x8xf32> -> vector<8x8xf32>
    %cst_41 = arith.constant 0.353553385 : f32
    %86 = vector.broadcast %cst_41 : f32 to vector<8x8xf32>
    %87 = arith.mulf %85, %86 : vector<8x8xf32>
    %88 = arith.addf %87, %9 : vector<8x8xf32>
    %cst_42 = arith.constant dense<0xFF800000> : vector<8xf32>
    %89 = vector.multi_reduction <maximumf>, %88, %cst_42 [1] : vector<8x8xf32> to vector<8xf32>
    %90 = vector.shape_cast %89 : vector<8xf32> to vector<8x1xf32>
    %91 = vector.broadcast %90 : vector<8x1xf32> to vector<8x8xf32>
    %92 = arith.subf %88, %91 : vector<8x8xf32>
    %93 = math.exp %92 : vector<8x8xf32>
    %cst_43 = arith.constant dense<0.000000e+00> : vector<8xf32>
    %94 = vector.multi_reduction <add>, %93, %cst_43 [1] : vector<8x8xf32> to vector<8xf32>
    %95 = vector.shape_cast %94 : vector<8xf32> to vector<8x1xf32>
    %96 = tpu.reciprocal %95 {approx = true} : vector<8x1xf32> -> vector<8x1xf32>
    %97 = vector.broadcast %96 : vector<8x1xf32> to vector<8x8xf32>
    %98 = arith.mulf %93, %97 : vector<8x8xf32>
    %99 = arith.truncf %98 : vector<8x8xf32> to vector<8x8xbf16>
    %100 = vector.extract_strided_slice %36 {offsets = [0, 16], sizes = [8, 8], strides = [1, 1]} : vector<8x32xf32> to vector<8x8xf32>
    %101 = arith.truncf %100 : vector<8x8xf32> to vector<8x8xbf16>
    %cst_44 = arith.constant dense<0.000000e+00> : vector<8x8xf32>
    %102 = tpu.matmul %99, %101, %cst_44 {dimension_numbers = #tpu.dot_dimension_numbers<[1], [0], [0], [1], [0, 0, 1, 1], [], []>} : vector<8x8xbf16>, vector<8x8xbf16>, vector<8x8xf32> -> vector<8x8xf32>
    %103 = vector.extract_strided_slice %34 {offsets = [0, 24], sizes = [8, 8], strides = [1, 1]} : vector<8x32xf32> to vector<8x8xf32>
    %104 = arith.truncf %103 : vector<8x8xf32> to vector<8x8xbf16>
    %105 = vector.extract_strided_slice %35 {offsets = [0, 24], sizes = [8, 8], strides = [1, 1]} : vector<8x32xf32> to vector<8x8xf32>
    %106 = arith.truncf %105 : vector<8x8xf32> to vector<8x8xbf16>
    %cst_45 = arith.constant dense<0.000000e+00> : vector<8x8xf32>
    %107 = tpu.matmul %104, %106, %cst_45 {dimension_numbers = #tpu.dot_dimension_numbers<[1], [1], [0], [0], [0, 0, 1, 0], [], []>} : vector<8x8xbf16>, vector<8x8xbf16>, vector<8x8xf32> -> vector<8x8xf32>
    %cst_46 = arith.constant 0.353553385 : f32
    %108 = vector.broadcast %cst_46 : f32 to vector<8x8xf32>
    %109 = arith.mulf %107, %108 : vector<8x8xf32>
    %110 = arith.addf %109, %9 : vector<8x8xf32>
    %cst_47 = arith.constant dense<0xFF800000> : vector<8xf32>
    %111 = vector.multi_reduction <maximumf>, %110, %cst_47 [1] : vector<8x8xf32> to vector<8xf32>
    %112 = vector.shape_cast %111 : vector<8xf32> to vector<8x1xf32>
    %113 = vector.broadcast %112 : vector<8x1xf32> to vector<8x8xf32>
    %114 = arith.subf %110, %113 : vector<8x8xf32>
    %115 = math.exp %114 : vector<8x8xf32>
    %cst_48 = arith.constant dense<0.000000e+00> : vector<8xf32>
    %116 = vector.multi_reduction <add>, %115, %cst_48 [1] : vector<8x8xf32> to vector<8xf32>
    %117 = vector.shape_cast %116 : vector<8xf32> to vector<8x1xf32>
    %118 = tpu.reciprocal %117 {approx = true} : vector<8x1xf32> -> vector<8x1xf32>
    %119 = vector.broadcast %118 : vector<8x1xf32> to vector<8x8xf32>
    %120 = arith.mulf %115, %119 : vector<8x8xf32>
    %121 = arith.truncf %120 : vector<8x8xf32> to vector<8x8xbf16>
    %122 = vector.extract_strided_slice %36 {offsets = [0, 24], sizes = [8, 8], strides = [1, 1]} : vector<8x32xf32> to vector<8x8xf32>
    %123 = arith.truncf %122 : vector<8x8xf32> to vector<8x8xbf16>
    %cst_49 = arith.constant dense<0.000000e+00> : vector<8x8xf32>
    %124 = tpu.matmul %121, %123, %cst_49 {dimension_numbers = #tpu.dot_dimension_numbers<[1], [0], [0], [1], [0, 0, 1, 1], [], []>} : vector<8x8xbf16>, vector<8x8xbf16>, vector<8x8xf32> -> vector<8x8xf32>
    %125 = tpu.concatenate %58, %80, %102, %124 in 1 : vector<8x8xf32>, vector<8x8xf32>, vector<8x8xf32>, vector<8x8xf32> -> vector<8x32xf32>
    %126 = vector.extract_strided_slice %29 {offsets = [8, 0], sizes = [8, 32], strides = [1, 1]} : vector<16x32xf32> to vector<8x32xf32>
    %127 = vector.extract_strided_slice %33 {offsets = [8, 0], sizes = [8, 32], strides = [1, 1]} : vector<16x64xf32> to vector<8x32xf32>
    %128 = vector.extract_strided_slice %33 {offsets = [8, 32], sizes = [8, 32], strides = [1, 1]} : vector<16x64xf32> to vector<8x32xf32>
    %129 = vector.extract_strided_slice %126 {offsets = [0, 0], sizes = [8, 8], strides = [1, 1]} : vector<8x32xf32> to vector<8x8xf32>
    %130 = arith.truncf %129 : vector<8x8xf32> to vector<8x8xbf16>
    %131 = vector.extract_strided_slice %127 {offsets = [0, 0], sizes = [8, 8], strides = [1, 1]} : vector<8x32xf32> to vector<8x8xf32>
    %132 = arith.truncf %131 : vector<8x8xf32> to vector<8x8xbf16>
    %cst_50 = arith.constant dense<0.000000e+00> : vector<8x8xf32>
    %133 = tpu.matmul %130, %132, %cst_50 {dimension_numbers = #tpu.dot_dimension_numbers<[1], [1], [0], [0], [0, 0, 1, 0], [], []>} : vector<8x8xbf16>, vector<8x8xbf16>, vector<8x8xf32> -> vector<8x8xf32>
    %cst_51 = arith.constant 0.353553385 : f32
    %134 = vector.broadcast %cst_51 : f32 to vector<8x8xf32>
    %135 = arith.mulf %133, %134 : vector<8x8xf32>
    %136 = arith.addf %135, %13 : vector<8x8xf32>
    %cst_52 = arith.constant dense<0xFF800000> : vector<8xf32>
    %137 = vector.multi_reduction <maximumf>, %136, %cst_52 [1] : vector<8x8xf32> to vector<8xf32>
    %138 = vector.shape_cast %137 : vector<8xf32> to vector<8x1xf32>
    %139 = vector.broadcast %138 : vector<8x1xf32> to vector<8x8xf32>
    %140 = arith.subf %136, %139 : vector<8x8xf32>
    %141 = math.exp %140 : vector<8x8xf32>
    %cst_53 = arith.constant dense<0.000000e+00> : vector<8xf32>
    %142 = vector.multi_reduction <add>, %141, %cst_53 [1] : vector<8x8xf32> to vector<8xf32>
    %143 = vector.shape_cast %142 : vector<8xf32> to vector<8x1xf32>
    %144 = tpu.reciprocal %143 {approx = true} : vector<8x1xf32> -> vector<8x1xf32>
    %145 = vector.broadcast %144 : vector<8x1xf32> to vector<8x8xf32>
    %146 = arith.mulf %141, %145 : vector<8x8xf32>
    %147 = arith.truncf %146 : vector<8x8xf32> to vector<8x8xbf16>
    %148 = vector.extract_strided_slice %128 {offsets = [0, 0], sizes = [8, 8], strides = [1, 1]} : vector<8x32xf32> to vector<8x8xf32>
    %149 = arith.truncf %148 : vector<8x8xf32> to vector<8x8xbf16>
    %cst_54 = arith.constant dense<0.000000e+00> : vector<8x8xf32>
    %150 = tpu.matmul %147, %149, %cst_54 {dimension_numbers = #tpu.dot_dimension_numbers<[1], [0], [0], [1], [0, 0, 1, 1], [], []>} : vector<8x8xbf16>, vector<8x8xbf16>, vector<8x8xf32> -> vector<8x8xf32>
    %151 = vector.extract_strided_slice %126 {offsets = [0, 8], sizes = [8, 8], strides = [1, 1]} : vector<8x32xf32> to vector<8x8xf32>
    %152 = arith.truncf %151 : vector<8x8xf32> to vector<8x8xbf16>
    %153 = vector.extract_strided_slice %127 {offsets = [0, 8], sizes = [8, 8], strides = [1, 1]} : vector<8x32xf32> to vector<8x8xf32>
    %154 = arith.truncf %153 : vector<8x8xf32> to vector<8x8xbf16>
    %cst_55 = arith.constant dense<0.000000e+00> : vector<8x8xf32>
    %155 = tpu.matmul %152, %154, %cst_55 {dimension_numbers = #tpu.dot_dimension_numbers<[1], [1], [0], [0], [0, 0, 1, 0], [], []>} : vector<8x8xbf16>, vector<8x8xbf16>, vector<8x8xf32> -> vector<8x8xf32>
    %cst_56 = arith.constant 0.353553385 : f32
    %156 = vector.broadcast %cst_56 : f32 to vector<8x8xf32>
    %157 = arith.mulf %155, %156 : vector<8x8xf32>
    %158 = arith.addf %157, %13 : vector<8x8xf32>
    %cst_57 = arith.constant dense<0xFF800000> : vector<8xf32>
    %159 = vector.multi_reduction <maximumf>, %158, %cst_57 [1] : vector<8x8xf32> to vector<8xf32>
    %160 = vector.shape_cast %159 : vector<8xf32> to vector<8x1xf32>
    %161 = vector.broadcast %160 : vector<8x1xf32> to vector<8x8xf32>
    %162 = arith.subf %158, %161 : vector<8x8xf32>
    %163 = math.exp %162 : vector<8x8xf32>
    %cst_58 = arith.constant dense<0.000000e+00> : vector<8xf32>
    %164 = vector.multi_reduction <add>, %163, %cst_58 [1] : vector<8x8xf32> to vector<8xf32>
    %165 = vector.shape_cast %164 : vector<8xf32> to vector<8x1xf32>
    %166 = tpu.reciprocal %165 {approx = true} : vector<8x1xf32> -> vector<8x1xf32>
    %167 = vector.broadcast %166 : vector<8x1xf32> to vector<8x8xf32>
    %168 = arith.mulf %163, %167 : vector<8x8xf32>
    %169 = arith.truncf %168 : vector<8x8xf32> to vector<8x8xbf16>
    %170 = vector.extract_strided_slice %128 {offsets = [0, 8], sizes = [8, 8], strides = [1, 1]} : vector<8x32xf32> to vector<8x8xf32>
    %171 = arith.truncf %170 : vector<8x8xf32> to vector<8x8xbf16>
    %cst_59 = arith.constant dense<0.000000e+00> : vector<8x8xf32>
    %172 = tpu.matmul %169, %171, %cst_59 {dimension_numbers = #tpu.dot_dimension_numbers<[1], [0], [0], [1], [0, 0, 1, 1], [], []>} : vector<8x8xbf16>, vector<8x8xbf16>, vector<8x8xf32> -> vector<8x8xf32>
    %173 = vector.extract_strided_slice %126 {offsets = [0, 16], sizes = [8, 8], strides = [1, 1]} : vector<8x32xf32> to vector<8x8xf32>
    %174 = arith.truncf %173 : vector<8x8xf32> to vector<8x8xbf16>
    %175 = vector.extract_strided_slice %127 {offsets = [0, 16], sizes = [8, 8], strides = [1, 1]} : vector<8x32xf32> to vector<8x8xf32>
    %176 = arith.truncf %175 : vector<8x8xf32> to vector<8x8xbf16>
    %cst_60 = arith.constant dense<0.000000e+00> : vector<8x8xf32>
    %177 = tpu.matmul %174, %176, %cst_60 {dimension_numbers = #tpu.dot_dimension_numbers<[1], [1], [0], [0], [0, 0, 1, 0], [], []>} : vector<8x8xbf16>, vector<8x8xbf16>, vector<8x8xf32> -> vector<8x8xf32>
    %cst_61 = arith.constant 0.353553385 : f32
    %178 = vector.broadcast %cst_61 : f32 to vector<8x8xf32>
    %179 = arith.mulf %177, %178 : vector<8x8xf32>
    %180 = arith.addf %179, %13 : vector<8x8xf32>
    %cst_62 = arith.constant dense<0xFF800000> : vector<8xf32>
    %181 = vector.multi_reduction <maximumf>, %180, %cst_62 [1] : vector<8x8xf32> to vector<8xf32>
    %182 = vector.shape_cast %181 : vector<8xf32> to vector<8x1xf32>
    %183 = vector.broadcast %182 : vector<8x1xf32> to vector<8x8xf32>
    %184 = arith.subf %180, %183 : vector<8x8xf32>
    %185 = math.exp %184 : vector<8x8xf32>
    %cst_63 = arith.constant dense<0.000000e+00> : vector<8xf32>
    %186 = vector.multi_reduction <add>, %185, %cst_63 [1] : vector<8x8xf32> to vector<8xf32>
    %187 = vector.shape_cast %186 : vector<8xf32> to vector<8x1xf32>
    %188 = tpu.reciprocal %187 {approx = true} : vector<8x1xf32> -> vector<8x1xf32>
    %189 = vector.broadcast %188 : vector<8x1xf32> to vector<8x8xf32>
    %190 = arith.mulf %185, %189 : vector<8x8xf32>
    %191 = arith.truncf %190 : vector<8x8xf32> to vector<8x8xbf16>
    %192 = vector.extract_strided_slice %128 {offsets = [0, 16], sizes = [8, 8], strides = [1, 1]} : vector<8x32xf32> to vector<8x8xf32>
    %193 = arith.truncf %192 : vector<8x8xf32> to vector<8x8xbf16>
    %cst_64 = arith.constant dense<0.000000e+00> : vector<8x8xf32>
    %194 = tpu.matmul %191, %193, %cst_64 {dimension_numbers = #tpu.dot_dimension_numbers<[1], [0], [0], [1], [0, 0, 1, 1], [], []>} : vector<8x8xbf16>, vector<8x8xbf16>, vector<8x8xf32> -> vector<8x8xf32>
    %195 = vector.extract_strided_slice %126 {offsets = [0, 24], sizes = [8, 8], strides = [1, 1]} : vector<8x32xf32> to vector<8x8xf32>
    %196 = arith.truncf %195 : vector<8x8xf32> to vector<8x8xbf16>
    %197 = vector.extract_strided_slice %127 {offsets = [0, 24], sizes = [8, 8], strides = [1, 1]} : vector<8x32xf32> to vector<8x8xf32>
    %198 = arith.truncf %197 : vector<8x8xf32> to vector<8x8xbf16>
    %cst_65 = arith.constant dense<0.000000e+00> : vector<8x8xf32>
    %199 = tpu.matmul %196, %198, %cst_65 {dimension_numbers = #tpu.dot_dimension_numbers<[1], [1], [0], [0], [0, 0, 1, 0], [], []>} : vector<8x8xbf16>, vector<8x8xbf16>, vector<8x8xf32> -> vector<8x8xf32>
    %cst_66 = arith.constant 0.353553385 : f32
    %200 = vector.broadcast %cst_66 : f32 to vector<8x8xf32>
    %201 = arith.mulf %199, %200 : vector<8x8xf32>
    %202 = arith.addf %201, %13 : vector<8x8xf32>
    %cst_67 = arith.constant dense<0xFF800000> : vector<8xf32>
    %203 = vector.multi_reduction <maximumf>, %202, %cst_67 [1] : vector<8x8xf32> to vector<8xf32>
    %204 = vector.shape_cast %203 : vector<8xf32> to vector<8x1xf32>
    %205 = vector.broadcast %204 : vector<8x1xf32> to vector<8x8xf32>
    %206 = arith.subf %202, %205 : vector<8x8xf32>
    %207 = math.exp %206 : vector<8x8xf32>
    %cst_68 = arith.constant dense<0.000000e+00> : vector<8xf32>
    %208 = vector.multi_reduction <add>, %207, %cst_68 [1] : vector<8x8xf32> to vector<8xf32>
    %209 = vector.shape_cast %208 : vector<8xf32> to vector<8x1xf32>
    %210 = tpu.reciprocal %209 {approx = true} : vector<8x1xf32> -> vector<8x1xf32>
    %211 = vector.broadcast %210 : vector<8x1xf32> to vector<8x8xf32>
    %212 = arith.mulf %207, %211 : vector<8x8xf32>
    %213 = arith.truncf %212 : vector<8x8xf32> to vector<8x8xbf16>
    %214 = vector.extract_strided_slice %128 {offsets = [0, 24], sizes = [8, 8], strides = [1, 1]} : vector<8x32xf32> to vector<8x8xf32>
    %215 = arith.truncf %214 : vector<8x8xf32> to vector<8x8xbf16>
    %cst_69 = arith.constant dense<0.000000e+00> : vector<8x8xf32>
    %216 = tpu.matmul %213, %215, %cst_69 {dimension_numbers = #tpu.dot_dimension_numbers<[1], [0], [0], [1], [0, 0, 1, 1], [], []>} : vector<8x8xbf16>, vector<8x8xbf16>, vector<8x8xf32> -> vector<8x8xf32>
    %217 = tpu.concatenate %150, %172, %194, %216 in 1 : vector<8x8xf32>, vector<8x8xf32>, vector<8x8xf32>, vector<8x8xf32> -> vector<8x32xf32>
    %218 = tpu.concatenate %125, %217 in 0 : vector<8x32xf32>, vector<8x32xf32> -> vector<16x32xf32>
    %219 = arith.truncf %218 : vector<16x32xf32> to vector<16x32xbf16>
    %cst_70 = arith.constant dense<0.000000e+00> : vector<16x32xf32>
    %220 = tpu.matmul %219, %23, %cst_70 {dimension_numbers = #tpu.dot_dimension_numbers<[1], [1], [0], [0], [0, 0, 1, 0], [], []>} : vector<16x32xbf16>, vector<32x32xbf16>, vector<16x32xf32> -> vector<16x32xf32>
    %221 = vector.broadcast %25 : vector<1x32xf32> to vector<16x32xf32>
    %222 = arith.addf %220, %221 : vector<16x32xf32>
    %223 = arith.addf %3, %222 : vector<16x32xf32>
    %c0_71 = arith.constant 0 : index
    %c0_72 = arith.constant 0 : index
    %c0_73 = arith.constant 0 : index
    %224 = vector.load %arg11[%c0_71, %c0_72, %c0_73] : memref<1x1x32xf32, #tpu.memory_space<vmem>>, vector<1x1x32xf32>
    %225 = vector.shape_cast %224 : vector<1x1x32xf32> to vector<1x32xf32>
    %c0_74 = arith.constant 0 : index
    %c0_75 = arith.constant 0 : index
    %c0_76 = arith.constant 0 : index
    %226 = vector.load %arg12[%c0_74, %c0_75, %c0_76] : memref<1x1x32xf32, #tpu.memory_space<vmem>>, vector<1x1x32xf32>
    %227 = vector.shape_cast %226 : vector<1x1x32xf32> to vector<1x32xf32>
    %cst_77 = arith.constant dense<0.000000e+00> : vector<16xf32>
    %228 = vector.multi_reduction <add>, %223, %cst_77 [1] : vector<16x32xf32> to vector<16xf32>
    %229 = vector.shape_cast %228 : vector<16xf32> to vector<16x1xf32>
    %cst_78 = arith.constant 3.200000e+01 : f32
    %230 = vector.broadcast %cst_78 : f32 to vector<16x1xf32>
    %231 = arith.divf %229, %230 : vector<16x1xf32>
    %232 = vector.broadcast %231 : vector<16x1xf32> to vector<16x32xf32>
    %233 = arith.subf %223, %232 : vector<16x32xf32>
    %234 = arith.mulf %233, %233 : vector<16x32xf32>
    %cst_79 = arith.constant dense<0.000000e+00> : vector<16xf32>
    %235 = vector.multi_reduction <add>, %234, %cst_79 [1] : vector<16x32xf32> to vector<16xf32>
    %236 = vector.shape_cast %235 : vector<16xf32> to vector<16x1xf32>
    %cst_80 = arith.constant 3.200000e+01 : f32
    %237 = vector.broadcast %cst_80 : f32 to vector<16x1xf32>
    %238 = arith.divf %236, %237 : vector<16x1xf32>
    %239 = vector.broadcast %231 : vector<16x1xf32> to vector<16x32xf32>
    %240 = arith.subf %223, %239 : vector<16x32xf32>
    %cst_81 = arith.constant 9.99999974E-6 : f32
    %241 = vector.broadcast %cst_81 : f32 to vector<16x1xf32>
    %242 = arith.addf %238, %241 : vector<16x1xf32>
    %243 = math.rsqrt %242 : vector<16x1xf32>
    %244 = vector.broadcast %243 : vector<16x1xf32> to vector<16x32xf32>
    %245 = arith.mulf %240, %244 : vector<16x32xf32>
    %246 = vector.broadcast %225 : vector<1x32xf32> to vector<16x32xf32>
    %247 = arith.mulf %245, %246 : vector<16x32xf32>
    %248 = vector.broadcast %227 : vector<1x32xf32> to vector<16x32xf32>
    %249 = arith.addf %247, %248 : vector<16x32xf32>
    %c0_82 = arith.constant 0 : index
    %c0_83 = arith.constant 0 : index
    %c0_84 = arith.constant 0 : index
    %250 = vector.load %arg13[%c0_82, %c0_83, %c0_84] : memref<1x32x32xbf16, #tpu.memory_space<vmem>>, vector<1x32x32xbf16>
    %251 = vector.shape_cast %250 : vector<1x32x32xbf16> to vector<32x32xbf16>
    %c0_85 = arith.constant 0 : index
    %c0_86 = arith.constant 0 : index
    %c0_87 = arith.constant 0 : index
    %252 = vector.load %arg14[%c0_85, %c0_86, %c0_87] : memref<1x1x32xf32, #tpu.memory_space<vmem>>, vector<1x1x32xf32>
    %253 = vector.shape_cast %252 : vector<1x1x32xf32> to vector<1x32xf32>
    %c0_88 = arith.constant 0 : index
    %c0_89 = arith.constant 0 : index
    %c0_90 = arith.constant 0 : index
    %254 = vector.load %arg15[%c0_88, %c0_89, %c0_90] : memref<1x64x32xbf16, #tpu.memory_space<vmem>>, vector<1x64x32xbf16>
    %255 = vector.shape_cast %254 : vector<1x64x32xbf16> to vector<64x32xbf16>
    %c0_91 = arith.constant 0 : index
    %c0_92 = arith.constant 0 : index
    %c0_93 = arith.constant 0 : index
    %256 = vector.load %arg16[%c0_91, %c0_92, %c0_93] : memref<1x1x64xf32, #tpu.memory_space<vmem>>, vector<1x1x64xf32>
    %257 = vector.shape_cast %256 : vector<1x1x64xf32> to vector<1x64xf32>
    %c0_94 = arith.constant 0 : index
    %c0_95 = arith.constant 0 : index
    %c0_96 = arith.constant 0 : index
    %258 = vector.load %arg17[%c0_94, %c0_95, %c0_96] : memref<1x32x32xbf16, #tpu.memory_space<vmem>>, vector<1x32x32xbf16>
    %259 = vector.shape_cast %258 : vector<1x32x32xbf16> to vector<32x32xbf16>
    %c0_97 = arith.constant 0 : index
    %c0_98 = arith.constant 0 : index
    %c0_99 = arith.constant 0 : index
    %260 = vector.load %arg18[%c0_97, %c0_98, %c0_99] : memref<1x1x32xf32, #tpu.memory_space<vmem>>, vector<1x1x32xf32>
    %261 = vector.shape_cast %260 : vector<1x1x32xf32> to vector<1x32xf32>
    %262 = arith.truncf %249 : vector<16x32xf32> to vector<16x32xbf16>
    %cst_100 = arith.constant dense<0.000000e+00> : vector<16x32xf32>
    %263 = tpu.matmul %262, %251, %cst_100 {dimension_numbers = #tpu.dot_dimension_numbers<[1], [1], [0], [0], [0, 0, 1, 0], [], []>} : vector<16x32xbf16>, vector<32x32xbf16>, vector<16x32xf32> -> vector<16x32xf32>
    %264 = vector.broadcast %253 : vector<1x32xf32> to vector<16x32xf32>
    %265 = arith.addf %263, %264 : vector<16x32xf32>
    %266 = arith.truncf %4 : vector<16x32xf32> to vector<16x32xbf16>
    %cst_101 = arith.constant dense<0.000000e+00> : vector<16x64xf32>
    %267 = tpu.matmul %266, %255, %cst_101 {dimension_numbers = #tpu.dot_dimension_numbers<[1], [1], [0], [0], [0, 0, 1, 0], [], []>} : vector<16x32xbf16>, vector<64x32xbf16>, vector<16x64xf32> -> vector<16x64xf32>
    %268 = vector.broadcast %257 : vector<1x64xf32> to vector<16x64xf32>
    %269 = arith.addf %267, %268 : vector<16x64xf32>
    %270 = vector.extract_strided_slice %265 {offsets = [0, 0], sizes = [8, 32], strides = [1, 1]} : vector<16x32xf32> to vector<8x32xf32>
    %271 = vector.extract_strided_slice %269 {offsets = [0, 0], sizes = [8, 32], strides = [1, 1]} : vector<16x64xf32> to vector<8x32xf32>
    %272 = vector.extract_strided_slice %269 {offsets = [0, 32], sizes = [8, 32], strides = [1, 1]} : vector<16x64xf32> to vector<8x32xf32>
    %273 = vector.extract_strided_slice %270 {offsets = [0, 0], sizes = [8, 8], strides = [1, 1]} : vector<8x32xf32> to vector<8x8xf32>
    %274 = arith.truncf %273 : vector<8x8xf32> to vector<8x8xbf16>
    %275 = vector.extract_strided_slice %271 {offsets = [0, 0], sizes = [8, 8], strides = [1, 1]} : vector<8x32xf32> to vector<8x8xf32>
    %276 = arith.truncf %275 : vector<8x8xf32> to vector<8x8xbf16>
    %cst_102 = arith.constant dense<0.000000e+00> : vector<8x8xf32>
    %277 = tpu.matmul %274, %276, %cst_102 {dimension_numbers = #tpu.dot_dimension_numbers<[1], [1], [0], [0], [0, 0, 1, 0], [], []>} : vector<8x8xbf16>, vector<8x8xbf16>, vector<8x8xf32> -> vector<8x8xf32>
    %cst_103 = arith.constant 0.353553385 : f32
    %278 = vector.broadcast %cst_103 : f32 to vector<8x8xf32>
    %279 = arith.mulf %277, %278 : vector<8x8xf32>
    %cst_104 = arith.constant dense<0xFF800000> : vector<8xf32>
    %280 = vector.multi_reduction <maximumf>, %279, %cst_104 [1] : vector<8x8xf32> to vector<8xf32>
    %281 = vector.shape_cast %280 : vector<8xf32> to vector<8x1xf32>
    %282 = vector.broadcast %281 : vector<8x1xf32> to vector<8x8xf32>
    %283 = arith.subf %279, %282 : vector<8x8xf32>
    %284 = math.exp %283 : vector<8x8xf32>
    %cst_105 = arith.constant dense<0.000000e+00> : vector<8xf32>
    %285 = vector.multi_reduction <add>, %284, %cst_105 [1] : vector<8x8xf32> to vector<8xf32>
    %286 = vector.shape_cast %285 : vector<8xf32> to vector<8x1xf32>
    %287 = tpu.reciprocal %286 {approx = true} : vector<8x1xf32> -> vector<8x1xf32>
    %288 = vector.broadcast %287 : vector<8x1xf32> to vector<8x8xf32>
    %289 = arith.mulf %284, %288 : vector<8x8xf32>
    %290 = arith.truncf %289 : vector<8x8xf32> to vector<8x8xbf16>
    %291 = vector.extract_strided_slice %272 {offsets = [0, 0], sizes = [8, 8], strides = [1, 1]} : vector<8x32xf32> to vector<8x8xf32>
    %292 = arith.truncf %291 : vector<8x8xf32> to vector<8x8xbf16>
    %cst_106 = arith.constant dense<0.000000e+00> : vector<8x8xf32>
    %293 = tpu.matmul %290, %292, %cst_106 {dimension_numbers = #tpu.dot_dimension_numbers<[1], [0], [0], [1], [0, 0, 1, 1], [], []>} : vector<8x8xbf16>, vector<8x8xbf16>, vector<8x8xf32> -> vector<8x8xf32>
    %294 = vector.extract_strided_slice %270 {offsets = [0, 8], sizes = [8, 8], strides = [1, 1]} : vector<8x32xf32> to vector<8x8xf32>
    %295 = arith.truncf %294 : vector<8x8xf32> to vector<8x8xbf16>
    %296 = vector.extract_strided_slice %271 {offsets = [0, 8], sizes = [8, 8], strides = [1, 1]} : vector<8x32xf32> to vector<8x8xf32>
    %297 = arith.truncf %296 : vector<8x8xf32> to vector<8x8xbf16>
    %cst_107 = arith.constant dense<0.000000e+00> : vector<8x8xf32>
    %298 = tpu.matmul %295, %297, %cst_107 {dimension_numbers = #tpu.dot_dimension_numbers<[1], [1], [0], [0], [0, 0, 1, 0], [], []>} : vector<8x8xbf16>, vector<8x8xbf16>, vector<8x8xf32> -> vector<8x8xf32>
    %cst_108 = arith.constant 0.353553385 : f32
    %299 = vector.broadcast %cst_108 : f32 to vector<8x8xf32>
    %300 = arith.mulf %298, %299 : vector<8x8xf32>
    %cst_109 = arith.constant dense<0xFF800000> : vector<8xf32>
    %301 = vector.multi_reduction <maximumf>, %300, %cst_109 [1] : vector<8x8xf32> to vector<8xf32>
    %302 = vector.shape_cast %301 : vector<8xf32> to vector<8x1xf32>
    %303 = vector.broadcast %302 : vector<8x1xf32> to vector<8x8xf32>
    %304 = arith.subf %300, %303 : vector<8x8xf32>
    %305 = math.exp %304 : vector<8x8xf32>
    %cst_110 = arith.constant dense<0.000000e+00> : vector<8xf32>
    %306 = vector.multi_reduction <add>, %305, %cst_110 [1] : vector<8x8xf32> to vector<8xf32>
    %307 = vector.shape_cast %306 : vector<8xf32> to vector<8x1xf32>
    %308 = tpu.reciprocal %307 {approx = true} : vector<8x1xf32> -> vector<8x1xf32>
    %309 = vector.broadcast %308 : vector<8x1xf32> to vector<8x8xf32>
    %310 = arith.mulf %305, %309 : vector<8x8xf32>
    %311 = arith.truncf %310 : vector<8x8xf32> to vector<8x8xbf16>
    %312 = vector.extract_strided_slice %272 {offsets = [0, 8], sizes = [8, 8], strides = [1, 1]} : vector<8x32xf32> to vector<8x8xf32>
    %313 = arith.truncf %312 : vector<8x8xf32> to vector<8x8xbf16>
    %cst_111 = arith.constant dense<0.000000e+00> : vector<8x8xf32>
    %314 = tpu.matmul %311, %313, %cst_111 {dimension_numbers = #tpu.dot_dimension_numbers<[1], [0], [0], [1], [0, 0, 1, 1], [], []>} : vector<8x8xbf16>, vector<8x8xbf16>, vector<8x8xf32> -> vector<8x8xf32>
    %315 = vector.extract_strided_slice %270 {offsets = [0, 16], sizes = [8, 8], strides = [1, 1]} : vector<8x32xf32> to vector<8x8xf32>
    %316 = arith.truncf %315 : vector<8x8xf32> to vector<8x8xbf16>
    %317 = vector.extract_strided_slice %271 {offsets = [0, 16], sizes = [8, 8], strides = [1, 1]} : vector<8x32xf32> to vector<8x8xf32>
    %318 = arith.truncf %317 : vector<8x8xf32> to vector<8x8xbf16>
    %cst_112 = arith.constant dense<0.000000e+00> : vector<8x8xf32>
    %319 = tpu.matmul %316, %318, %cst_112 {dimension_numbers = #tpu.dot_dimension_numbers<[1], [1], [0], [0], [0, 0, 1, 0], [], []>} : vector<8x8xbf16>, vector<8x8xbf16>, vector<8x8xf32> -> vector<8x8xf32>
    %cst_113 = arith.constant 0.353553385 : f32
    %320 = vector.broadcast %cst_113 : f32 to vector<8x8xf32>
    %321 = arith.mulf %319, %320 : vector<8x8xf32>
    %cst_114 = arith.constant dense<0xFF800000> : vector<8xf32>
    %322 = vector.multi_reduction <maximumf>, %321, %cst_114 [1] : vector<8x8xf32> to vector<8xf32>
    %323 = vector.shape_cast %322 : vector<8xf32> to vector<8x1xf32>
    %324 = vector.broadcast %323 : vector<8x1xf32> to vector<8x8xf32>
    %325 = arith.subf %321, %324 : vector<8x8xf32>
    %326 = math.exp %325 : vector<8x8xf32>
    %cst_115 = arith.constant dense<0.000000e+00> : vector<8xf32>
    %327 = vector.multi_reduction <add>, %326, %cst_115 [1] : vector<8x8xf32> to vector<8xf32>
    %328 = vector.shape_cast %327 : vector<8xf32> to vector<8x1xf32>
    %329 = tpu.reciprocal %328 {approx = true} : vector<8x1xf32> -> vector<8x1xf32>
    %330 = vector.broadcast %329 : vector<8x1xf32> to vector<8x8xf32>
    %331 = arith.mulf %326, %330 : vector<8x8xf32>
    %332 = arith.truncf %331 : vector<8x8xf32> to vector<8x8xbf16>
    %333 = vector.extract_strided_slice %272 {offsets = [0, 16], sizes = [8, 8], strides = [1, 1]} : vector<8x32xf32> to vector<8x8xf32>
    %334 = arith.truncf %333 : vector<8x8xf32> to vector<8x8xbf16>
    %cst_116 = arith.constant dense<0.000000e+00> : vector<8x8xf32>
    %335 = tpu.matmul %332, %334, %cst_116 {dimension_numbers = #tpu.dot_dimension_numbers<[1], [0], [0], [1], [0, 0, 1, 1], [], []>} : vector<8x8xbf16>, vector<8x8xbf16>, vector<8x8xf32> -> vector<8x8xf32>
    %336 = vector.extract_strided_slice %270 {offsets = [0, 24], sizes = [8, 8], strides = [1, 1]} : vector<8x32xf32> to vector<8x8xf32>
    %337 = arith.truncf %336 : vector<8x8xf32> to vector<8x8xbf16>
    %338 = vector.extract_strided_slice %271 {offsets = [0, 24], sizes = [8, 8], strides = [1, 1]} : vector<8x32xf32> to vector<8x8xf32>
    %339 = arith.truncf %338 : vector<8x8xf32> to vector<8x8xbf16>
    %cst_117 = arith.constant dense<0.000000e+00> : vector<8x8xf32>
    %340 = tpu.matmul %337, %339, %cst_117 {dimension_numbers = #tpu.dot_dimension_numbers<[1], [1], [0], [0], [0, 0, 1, 0], [], []>} : vector<8x8xbf16>, vector<8x8xbf16>, vector<8x8xf32> -> vector<8x8xf32>
    %cst_118 = arith.constant 0.353553385 : f32
    %341 = vector.broadcast %cst_118 : f32 to vector<8x8xf32>
    %342 = arith.mulf %340, %341 : vector<8x8xf32>
    %cst_119 = arith.constant dense<0xFF800000> : vector<8xf32>
    %343 = vector.multi_reduction <maximumf>, %342, %cst_119 [1] : vector<8x8xf32> to vector<8xf32>
    %344 = vector.shape_cast %343 : vector<8xf32> to vector<8x1xf32>
    %345 = vector.broadcast %344 : vector<8x1xf32> to vector<8x8xf32>
    %346 = arith.subf %342, %345 : vector<8x8xf32>
    %347 = math.exp %346 : vector<8x8xf32>
    %cst_120 = arith.constant dense<0.000000e+00> : vector<8xf32>
    %348 = vector.multi_reduction <add>, %347, %cst_120 [1] : vector<8x8xf32> to vector<8xf32>
    %349 = vector.shape_cast %348 : vector<8xf32> to vector<8x1xf32>
    %350 = tpu.reciprocal %349 {approx = true} : vector<8x1xf32> -> vector<8x1xf32>
    %351 = vector.broadcast %350 : vector<8x1xf32> to vector<8x8xf32>
    %352 = arith.mulf %347, %351 : vector<8x8xf32>
    %353 = arith.truncf %352 : vector<8x8xf32> to vector<8x8xbf16>
    %354 = vector.extract_strided_slice %272 {offsets = [0, 24], sizes = [8, 8], strides = [1, 1]} : vector<8x32xf32> to vector<8x8xf32>
    %355 = arith.truncf %354 : vector<8x8xf32> to vector<8x8xbf16>
    %cst_121 = arith.constant dense<0.000000e+00> : vector<8x8xf32>
    %356 = tpu.matmul %353, %355, %cst_121 {dimension_numbers = #tpu.dot_dimension_numbers<[1], [0], [0], [1], [0, 0, 1, 1], [], []>} : vector<8x8xbf16>, vector<8x8xbf16>, vector<8x8xf32> -> vector<8x8xf32>
    %357 = tpu.concatenate %293, %314, %335, %356 in 1 : vector<8x8xf32>, vector<8x8xf32>, vector<8x8xf32>, vector<8x8xf32> -> vector<8x32xf32>
    %358 = vector.extract_strided_slice %265 {offsets = [8, 0], sizes = [8, 32], strides = [1, 1]} : vector<16x32xf32> to vector<8x32xf32>
    %359 = vector.extract_strided_slice %269 {offsets = [8, 0], sizes = [8, 32], strides = [1, 1]} : vector<16x64xf32> to vector<8x32xf32>
    %360 = vector.extract_strided_slice %269 {offsets = [8, 32], sizes = [8, 32], strides = [1, 1]} : vector<16x64xf32> to vector<8x32xf32>
    %361 = vector.extract_strided_slice %358 {offsets = [0, 0], sizes = [8, 8], strides = [1, 1]} : vector<8x32xf32> to vector<8x8xf32>
    %362 = arith.truncf %361 : vector<8x8xf32> to vector<8x8xbf16>
    %363 = vector.extract_strided_slice %359 {offsets = [0, 0], sizes = [8, 8], strides = [1, 1]} : vector<8x32xf32> to vector<8x8xf32>
    %364 = arith.truncf %363 : vector<8x8xf32> to vector<8x8xbf16>
    %cst_122 = arith.constant dense<0.000000e+00> : vector<8x8xf32>
    %365 = tpu.matmul %362, %364, %cst_122 {dimension_numbers = #tpu.dot_dimension_numbers<[1], [1], [0], [0], [0, 0, 1, 0], [], []>} : vector<8x8xbf16>, vector<8x8xbf16>, vector<8x8xf32> -> vector<8x8xf32>
    %cst_123 = arith.constant 0.353553385 : f32
    %366 = vector.broadcast %cst_123 : f32 to vector<8x8xf32>
    %367 = arith.mulf %365, %366 : vector<8x8xf32>
    %cst_124 = arith.constant dense<0xFF800000> : vector<8xf32>
    %368 = vector.multi_reduction <maximumf>, %367, %cst_124 [1] : vector<8x8xf32> to vector<8xf32>
    %369 = vector.shape_cast %368 : vector<8xf32> to vector<8x1xf32>
    %370 = vector.broadcast %369 : vector<8x1xf32> to vector<8x8xf32>
    %371 = arith.subf %367, %370 : vector<8x8xf32>
    %372 = math.exp %371 : vector<8x8xf32>
    %cst_125 = arith.constant dense<0.000000e+00> : vector<8xf32>
    %373 = vector.multi_reduction <add>, %372, %cst_125 [1] : vector<8x8xf32> to vector<8xf32>
    %374 = vector.shape_cast %373 : vector<8xf32> to vector<8x1xf32>
    %375 = tpu.reciprocal %374 {approx = true} : vector<8x1xf32> -> vector<8x1xf32>
    %376 = vector.broadcast %375 : vector<8x1xf32> to vector<8x8xf32>
    %377 = arith.mulf %372, %376 : vector<8x8xf32>
    %378 = arith.truncf %377 : vector<8x8xf32> to vector<8x8xbf16>
    %379 = vector.extract_strided_slice %360 {offsets = [0, 0], sizes = [8, 8], strides = [1, 1]} : vector<8x32xf32> to vector<8x8xf32>
    %380 = arith.truncf %379 : vector<8x8xf32> to vector<8x8xbf16>
    %cst_126 = arith.constant dense<0.000000e+00> : vector<8x8xf32>
    %381 = tpu.matmul %378, %380, %cst_126 {dimension_numbers = #tpu.dot_dimension_numbers<[1], [0], [0], [1], [0, 0, 1, 1], [], []>} : vector<8x8xbf16>, vector<8x8xbf16>, vector<8x8xf32> -> vector<8x8xf32>
    %382 = vector.extract_strided_slice %358 {offsets = [0, 8], sizes = [8, 8], strides = [1, 1]} : vector<8x32xf32> to vector<8x8xf32>
    %383 = arith.truncf %382 : vector<8x8xf32> to vector<8x8xbf16>
    %384 = vector.extract_strided_slice %359 {offsets = [0, 8], sizes = [8, 8], strides = [1, 1]} : vector<8x32xf32> to vector<8x8xf32>
    %385 = arith.truncf %384 : vector<8x8xf32> to vector<8x8xbf16>
    %cst_127 = arith.constant dense<0.000000e+00> : vector<8x8xf32>
    %386 = tpu.matmul %383, %385, %cst_127 {dimension_numbers = #tpu.dot_dimension_numbers<[1], [1], [0], [0], [0, 0, 1, 0], [], []>} : vector<8x8xbf16>, vector<8x8xbf16>, vector<8x8xf32> -> vector<8x8xf32>
    %cst_128 = arith.constant 0.353553385 : f32
    %387 = vector.broadcast %cst_128 : f32 to vector<8x8xf32>
    %388 = arith.mulf %386, %387 : vector<8x8xf32>
    %cst_129 = arith.constant dense<0xFF800000> : vector<8xf32>
    %389 = vector.multi_reduction <maximumf>, %388, %cst_129 [1] : vector<8x8xf32> to vector<8xf32>
    %390 = vector.shape_cast %389 : vector<8xf32> to vector<8x1xf32>
    %391 = vector.broadcast %390 : vector<8x1xf32> to vector<8x8xf32>
    %392 = arith.subf %388, %391 : vector<8x8xf32>
    %393 = math.exp %392 : vector<8x8xf32>
    %cst_130 = arith.constant dense<0.000000e+00> : vector<8xf32>
    %394 = vector.multi_reduction <add>, %393, %cst_130 [1] : vector<8x8xf32> to vector<8xf32>
    %395 = vector.shape_cast %394 : vector<8xf32> to vector<8x1xf32>
    %396 = tpu.reciprocal %395 {approx = true} : vector<8x1xf32> -> vector<8x1xf32>
    %397 = vector.broadcast %396 : vector<8x1xf32> to vector<8x8xf32>
    %398 = arith.mulf %393, %397 : vector<8x8xf32>
    %399 = arith.truncf %398 : vector<8x8xf32> to vector<8x8xbf16>
    %400 = vector.extract_strided_slice %360 {offsets = [0, 8], sizes = [8, 8], strides = [1, 1]} : vector<8x32xf32> to vector<8x8xf32>
    %401 = arith.truncf %400 : vector<8x8xf32> to vector<8x8xbf16>
    %cst_131 = arith.constant dense<0.000000e+00> : vector<8x8xf32>
    %402 = tpu.matmul %399, %401, %cst_131 {dimension_numbers = #tpu.dot_dimension_numbers<[1], [0], [0], [1], [0, 0, 1, 1], [], []>} : vector<8x8xbf16>, vector<8x8xbf16>, vector<8x8xf32> -> vector<8x8xf32>
    %403 = vector.extract_strided_slice %358 {offsets = [0, 16], sizes = [8, 8], strides = [1, 1]} : vector<8x32xf32> to vector<8x8xf32>
    %404 = arith.truncf %403 : vector<8x8xf32> to vector<8x8xbf16>
    %405 = vector.extract_strided_slice %359 {offsets = [0, 16], sizes = [8, 8], strides = [1, 1]} : vector<8x32xf32> to vector<8x8xf32>
    %406 = arith.truncf %405 : vector<8x8xf32> to vector<8x8xbf16>
    %cst_132 = arith.constant dense<0.000000e+00> : vector<8x8xf32>
    %407 = tpu.matmul %404, %406, %cst_132 {dimension_numbers = #tpu.dot_dimension_numbers<[1], [1], [0], [0], [0, 0, 1, 0], [], []>} : vector<8x8xbf16>, vector<8x8xbf16>, vector<8x8xf32> -> vector<8x8xf32>
    %cst_133 = arith.constant 0.353553385 : f32
    %408 = vector.broadcast %cst_133 : f32 to vector<8x8xf32>
    %409 = arith.mulf %407, %408 : vector<8x8xf32>
    %cst_134 = arith.constant dense<0xFF800000> : vector<8xf32>
    %410 = vector.multi_reduction <maximumf>, %409, %cst_134 [1] : vector<8x8xf32> to vector<8xf32>
    %411 = vector.shape_cast %410 : vector<8xf32> to vector<8x1xf32>
    %412 = vector.broadcast %411 : vector<8x1xf32> to vector<8x8xf32>
    %413 = arith.subf %409, %412 : vector<8x8xf32>
    %414 = math.exp %413 : vector<8x8xf32>
    %cst_135 = arith.constant dense<0.000000e+00> : vector<8xf32>
    %415 = vector.multi_reduction <add>, %414, %cst_135 [1] : vector<8x8xf32> to vector<8xf32>
    %416 = vector.shape_cast %415 : vector<8xf32> to vector<8x1xf32>
    %417 = tpu.reciprocal %416 {approx = true} : vector<8x1xf32> -> vector<8x1xf32>
    %418 = vector.broadcast %417 : vector<8x1xf32> to vector<8x8xf32>
    %419 = arith.mulf %414, %418 : vector<8x8xf32>
    %420 = arith.truncf %419 : vector<8x8xf32> to vector<8x8xbf16>
    %421 = vector.extract_strided_slice %360 {offsets = [0, 16], sizes = [8, 8], strides = [1, 1]} : vector<8x32xf32> to vector<8x8xf32>
    %422 = arith.truncf %421 : vector<8x8xf32> to vector<8x8xbf16>
    %cst_136 = arith.constant dense<0.000000e+00> : vector<8x8xf32>
    %423 = tpu.matmul %420, %422, %cst_136 {dimension_numbers = #tpu.dot_dimension_numbers<[1], [0], [0], [1], [0, 0, 1, 1], [], []>} : vector<8x8xbf16>, vector<8x8xbf16>, vector<8x8xf32> -> vector<8x8xf32>
    %424 = vector.extract_strided_slice %358 {offsets = [0, 24], sizes = [8, 8], strides = [1, 1]} : vector<8x32xf32> to vector<8x8xf32>
    %425 = arith.truncf %424 : vector<8x8xf32> to vector<8x8xbf16>
    %426 = vector.extract_strided_slice %359 {offsets = [0, 24], sizes = [8, 8], strides = [1, 1]} : vector<8x32xf32> to vector<8x8xf32>
    %427 = arith.truncf %426 : vector<8x8xf32> to vector<8x8xbf16>
    %cst_137 = arith.constant dense<0.000000e+00> : vector<8x8xf32>
    %428 = tpu.matmul %425, %427, %cst_137 {dimension_numbers = #tpu.dot_dimension_numbers<[1], [1], [0], [0], [0, 0, 1, 0], [], []>} : vector<8x8xbf16>, vector<8x8xbf16>, vector<8x8xf32> -> vector<8x8xf32>
    %cst_138 = arith.constant 0.353553385 : f32
    %429 = vector.broadcast %cst_138 : f32 to vector<8x8xf32>
    %430 = arith.mulf %428, %429 : vector<8x8xf32>
    %cst_139 = arith.constant dense<0xFF800000> : vector<8xf32>
    %431 = vector.multi_reduction <maximumf>, %430, %cst_139 [1] : vector<8x8xf32> to vector<8xf32>
    %432 = vector.shape_cast %431 : vector<8xf32> to vector<8x1xf32>
    %433 = vector.broadcast %432 : vector<8x1xf32> to vector<8x8xf32>
    %434 = arith.subf %430, %433 : vector<8x8xf32>
    %435 = math.exp %434 : vector<8x8xf32>
    %cst_140 = arith.constant dense<0.000000e+00> : vector<8xf32>
    %436 = vector.multi_reduction <add>, %435, %cst_140 [1] : vector<8x8xf32> to vector<8xf32>
    %437 = vector.shape_cast %436 : vector<8xf32> to vector<8x1xf32>
    %438 = tpu.reciprocal %437 {approx = true} : vector<8x1xf32> -> vector<8x1xf32>
    %439 = vector.broadcast %438 : vector<8x1xf32> to vector<8x8xf32>
    %440 = arith.mulf %435, %439 : vector<8x8xf32>
    %441 = arith.truncf %440 : vector<8x8xf32> to vector<8x8xbf16>
    %442 = vector.extract_strided_slice %360 {offsets = [0, 24], sizes = [8, 8], strides = [1, 1]} : vector<8x32xf32> to vector<8x8xf32>
    %443 = arith.truncf %442 : vector<8x8xf32> to vector<8x8xbf16>
    %cst_141 = arith.constant dense<0.000000e+00> : vector<8x8xf32>
    %444 = tpu.matmul %441, %443, %cst_141 {dimension_numbers = #tpu.dot_dimension_numbers<[1], [0], [0], [1], [0, 0, 1, 1], [], []>} : vector<8x8xbf16>, vector<8x8xbf16>, vector<8x8xf32> -> vector<8x8xf32>
    %445 = tpu.concatenate %381, %402, %423, %444 in 1 : vector<8x8xf32>, vector<8x8xf32>, vector<8x8xf32>, vector<8x8xf32> -> vector<8x32xf32>
    %446 = tpu.concatenate %357, %445 in 0 : vector<8x32xf32>, vector<8x32xf32> -> vector<16x32xf32>
    %447 = arith.truncf %446 : vector<16x32xf32> to vector<16x32xbf16>
    %cst_142 = arith.constant dense<0.000000e+00> : vector<16x32xf32>
    %448 = tpu.matmul %447, %259, %cst_142 {dimension_numbers = #tpu.dot_dimension_numbers<[1], [1], [0], [0], [0, 0, 1, 0], [], []>} : vector<16x32xbf16>, vector<32x32xbf16>, vector<16x32xf32> -> vector<16x32xf32>
    %449 = vector.broadcast %261 : vector<1x32xf32> to vector<16x32xf32>
    %450 = arith.addf %448, %449 : vector<16x32xf32>
    %451 = arith.addf %249, %450 : vector<16x32xf32>
    %c0_143 = arith.constant 0 : index
    %c0_144 = arith.constant 0 : index
    %c0_145 = arith.constant 0 : index
    %452 = vector.load %arg19[%c0_143, %c0_144, %c0_145] : memref<1x1x32xf32, #tpu.memory_space<vmem>>, vector<1x1x32xf32>
    %453 = vector.shape_cast %452 : vector<1x1x32xf32> to vector<1x32xf32>
    %c0_146 = arith.constant 0 : index
    %c0_147 = arith.constant 0 : index
    %c0_148 = arith.constant 0 : index
    %454 = vector.load %arg20[%c0_146, %c0_147, %c0_148] : memref<1x1x32xf32, #tpu.memory_space<vmem>>, vector<1x1x32xf32>
    %455 = vector.shape_cast %454 : vector<1x1x32xf32> to vector<1x32xf32>
    %cst_149 = arith.constant dense<0.000000e+00> : vector<16xf32>
    %456 = vector.multi_reduction <add>, %451, %cst_149 [1] : vector<16x32xf32> to vector<16xf32>
    %457 = vector.shape_cast %456 : vector<16xf32> to vector<16x1xf32>
    %cst_150 = arith.constant 3.200000e+01 : f32
    %458 = vector.broadcast %cst_150 : f32 to vector<16x1xf32>
    %459 = arith.divf %457, %458 : vector<16x1xf32>
    %460 = vector.broadcast %459 : vector<16x1xf32> to vector<16x32xf32>
    %461 = arith.subf %451, %460 : vector<16x32xf32>
    %462 = arith.mulf %461, %461 : vector<16x32xf32>
    %cst_151 = arith.constant dense<0.000000e+00> : vector<16xf32>
    %463 = vector.multi_reduction <add>, %462, %cst_151 [1] : vector<16x32xf32> to vector<16xf32>
    %464 = vector.shape_cast %463 : vector<16xf32> to vector<16x1xf32>
    %cst_152 = arith.constant 3.200000e+01 : f32
    %465 = vector.broadcast %cst_152 : f32 to vector<16x1xf32>
    %466 = arith.divf %464, %465 : vector<16x1xf32>
    %467 = vector.broadcast %459 : vector<16x1xf32> to vector<16x32xf32>
    %468 = arith.subf %451, %467 : vector<16x32xf32>
    %cst_153 = arith.constant 9.99999974E-6 : f32
    %469 = vector.broadcast %cst_153 : f32 to vector<16x1xf32>
    %470 = arith.addf %466, %469 : vector<16x1xf32>
    %471 = math.rsqrt %470 : vector<16x1xf32>
    %472 = vector.broadcast %471 : vector<16x1xf32> to vector<16x32xf32>
    %473 = arith.mulf %468, %472 : vector<16x32xf32>
    %474 = vector.broadcast %453 : vector<1x32xf32> to vector<16x32xf32>
    %475 = arith.mulf %473, %474 : vector<16x32xf32>
    %476 = vector.broadcast %455 : vector<1x32xf32> to vector<16x32xf32>
    %477 = arith.addf %475, %476 : vector<16x32xf32>
    %c0_154 = arith.constant 0 : index
    %c0_155 = arith.constant 0 : index
    %c0_156 = arith.constant 0 : index
    %478 = vector.load %arg21[%c0_154, %c0_155, %c0_156] : memref<1x64x32xbf16, #tpu.memory_space<vmem>>, vector<1x64x32xbf16>
    %479 = vector.shape_cast %478 : vector<1x64x32xbf16> to vector<64x32xbf16>
    %c0_157 = arith.constant 0 : index
    %c0_158 = arith.constant 0 : index
    %c0_159 = arith.constant 0 : index
    %480 = vector.load %arg22[%c0_157, %c0_158, %c0_159] : memref<1x1x64xf32, #tpu.memory_space<vmem>>, vector<1x1x64xf32>
    %481 = vector.shape_cast %480 : vector<1x1x64xf32> to vector<1x64xf32>
    %c0_160 = arith.constant 0 : index
    %c0_161 = arith.constant 0 : index
    %c0_162 = arith.constant 0 : index
    %482 = vector.load %arg23[%c0_160, %c0_161, %c0_162] : memref<1x32x64xbf16, #tpu.memory_space<vmem>>, vector<1x32x64xbf16>
    %483 = vector.shape_cast %482 : vector<1x32x64xbf16> to vector<32x64xbf16>
    %c0_163 = arith.constant 0 : index
    %c0_164 = arith.constant 0 : index
    %c0_165 = arith.constant 0 : index
    %484 = vector.load %arg24[%c0_163, %c0_164, %c0_165] : memref<1x1x32xf32, #tpu.memory_space<vmem>>, vector<1x1x32xf32>
    %485 = vector.shape_cast %484 : vector<1x1x32xf32> to vector<1x32xf32>
    %486 = arith.truncf %477 : vector<16x32xf32> to vector<16x32xbf16>
    %cst_166 = arith.constant dense<0.000000e+00> : vector<16x64xf32>
    %487 = tpu.matmul %486, %479, %cst_166 {dimension_numbers = #tpu.dot_dimension_numbers<[1], [1], [0], [0], [0, 0, 1, 0], [], []>} : vector<16x32xbf16>, vector<64x32xbf16>, vector<16x64xf32> -> vector<16x64xf32>
    %488 = vector.broadcast %481 : vector<1x64xf32> to vector<16x64xf32>
    %489 = arith.addf %487, %488 : vector<16x64xf32>
    %cst_167 = arith.constant 0.000000e+00 : f32
    %490 = vector.broadcast %cst_167 : f32 to vector<16x64xf32>
    %491 = arith.maximumf %489, %490 : vector<16x64xf32>
    %492 = arith.truncf %491 : vector<16x64xf32> to vector<16x64xbf16>
    %cst_168 = arith.constant dense<0.000000e+00> : vector<16x32xf32>
    %493 = tpu.matmul %492, %483, %cst_168 {dimension_numbers = #tpu.dot_dimension_numbers<[1], [1], [0], [0], [0, 0, 1, 0], [], []>} : vector<16x64xbf16>, vector<32x64xbf16>, vector<16x32xf32> -> vector<16x32xf32>
    %494 = vector.broadcast %485 : vector<1x32xf32> to vector<16x32xf32>
    %495 = arith.addf %493, %494 : vector<16x32xf32>
    %496 = arith.addf %477, %495 : vector<16x32xf32>
    %c0_169 = arith.constant 0 : index
    %c0_170 = arith.constant 0 : index
    %c0_171 = arith.constant 0 : index
    %497 = vector.load %arg25[%c0_169, %c0_170, %c0_171] : memref<1x1x32xf32, #tpu.memory_space<vmem>>, vector<1x1x32xf32>
    %498 = vector.shape_cast %497 : vector<1x1x32xf32> to vector<1x32xf32>
    %c0_172 = arith.constant 0 : index
    %c0_173 = arith.constant 0 : index
    %c0_174 = arith.constant 0 : index
    %499 = vector.load %arg26[%c0_172, %c0_173, %c0_174] : memref<1x1x32xf32, #tpu.memory_space<vmem>>, vector<1x1x32xf32>
    %500 = vector.shape_cast %499 : vector<1x1x32xf32> to vector<1x32xf32>
    %cst_175 = arith.constant dense<0.000000e+00> : vector<16xf32>
    %501 = vector.multi_reduction <add>, %496, %cst_175 [1] : vector<16x32xf32> to vector<16xf32>
    %502 = vector.shape_cast %501 : vector<16xf32> to vector<16x1xf32>
    %cst_176 = arith.constant 3.200000e+01 : f32
    %503 = vector.broadcast %cst_176 : f32 to vector<16x1xf32>
    %504 = arith.divf %502, %503 : vector<16x1xf32>
    %505 = vector.broadcast %504 : vector<16x1xf32> to vector<16x32xf32>
    %506 = arith.subf %496, %505 : vector<16x32xf32>
    %507 = arith.mulf %506, %506 : vector<16x32xf32>
    %cst_177 = arith.constant dense<0.000000e+00> : vector<16xf32>
    %508 = vector.multi_reduction <add>, %507, %cst_177 [1] : vector<16x32xf32> to vector<16xf32>
    %509 = vector.shape_cast %508 : vector<16xf32> to vector<16x1xf32>
    %cst_178 = arith.constant 3.200000e+01 : f32
    %510 = vector.broadcast %cst_178 : f32 to vector<16x1xf32>
    %511 = arith.divf %509, %510 : vector<16x1xf32>
    %512 = vector.broadcast %504 : vector<16x1xf32> to vector<16x32xf32>
    %513 = arith.subf %496, %512 : vector<16x32xf32>
    %cst_179 = arith.constant 9.99999974E-6 : f32
    %514 = vector.broadcast %cst_179 : f32 to vector<16x1xf32>
    %515 = arith.addf %511, %514 : vector<16x1xf32>
    %516 = math.rsqrt %515 : vector<16x1xf32>
    %517 = vector.broadcast %516 : vector<16x1xf32> to vector<16x32xf32>
    %518 = arith.mulf %513, %517 : vector<16x32xf32>
    %519 = vector.broadcast %498 : vector<1x32xf32> to vector<16x32xf32>
    %520 = arith.mulf %518, %519 : vector<16x32xf32>
    %521 = vector.broadcast %500 : vector<1x32xf32> to vector<16x32xf32>
    %522 = arith.addf %520, %521 : vector<16x32xf32>
    %c0_180 = arith.constant 0 : index
    %c0_181 = arith.constant 0 : index
    %523 = vector.load %arg32[%c0_180, %c0_181] : memref<16x32xf32, #tpu.memory_space<vmem>>, vector<16x32xf32>
    tpu.vector_store %arg32[%c0_180, %c0_181], %522 {strides = array<i32>} : memref<16x32xf32, #tpu.memory_space<vmem>>, vector<16x32xf32>,
    %c1_i32 = arith.constant 1 : i32
    %524 = arith.cmpi eq, %arg0, %c1_i32 : i32
    %525 = arith.extui %524 : i1 to i32
    %c0_i32_182 = arith.constant 0 : i32
    %526 = arith.cmpi ne, %525, %c0_i32_182 : i32
    scf.if %526 {
      %c0_183 = arith.constant 0 : index
      %c0_184 = arith.constant 0 : index
      %527 = vector.load %arg27[%c0_183, %c0_184] : memref<1x32xf32, #tpu.memory_space<vmem>>, vector<1x32xf32>
      %c0_185 = arith.constant 0 : index
      %c0_186 = arith.constant 0 : index
      %528 = vector.load %arg28[%c0_185, %c0_186] : memref<1x32xf32, #tpu.memory_space<vmem>>, vector<1x32xf32>
      %cst_187 = arith.constant dense<0.000000e+00> : vector<16xf32>
      %529 = vector.multi_reduction <add>, %522, %cst_187 [1] : vector<16x32xf32> to vector<16xf32>
      %530 = vector.shape_cast %529 : vector<16xf32> to vector<16x1xf32>
      %cst_188 = arith.constant 3.200000e+01 : f32
      %531 = vector.broadcast %cst_188 : f32 to vector<16x1xf32>
      %532 = arith.divf %530, %531 : vector<16x1xf32>
      %533 = vector.broadcast %532 : vector<16x1xf32> to vector<16x32xf32>
      %534 = arith.subf %522, %533 : vector<16x32xf32>
      %535 = arith.mulf %534, %534 : vector<16x32xf32>
      %cst_189 = arith.constant dense<0.000000e+00> : vector<16xf32>
      %536 = vector.multi_reduction <add>, %535, %cst_189 [1] : vector<16x32xf32> to vector<16xf32>
      %537 = vector.shape_cast %536 : vector<16xf32> to vector<16x1xf32>
      %cst_190 = arith.constant 3.200000e+01 : f32
      %538 = vector.broadcast %cst_190 : f32 to vector<16x1xf32>
      %539 = arith.divf %537, %538 : vector<16x1xf32>
      %540 = vector.broadcast %532 : vector<16x1xf32> to vector<16x32xf32>
      %541 = arith.subf %522, %540 : vector<16x32xf32>
      %cst_191 = arith.constant 9.99999974E-6 : f32
      %542 = vector.broadcast %cst_191 : f32 to vector<16x1xf32>
      %543 = arith.addf %539, %542 : vector<16x1xf32>
      %544 = math.rsqrt %543 : vector<16x1xf32>
      %545 = vector.broadcast %544 : vector<16x1xf32> to vector<16x32xf32>
      %546 = arith.mulf %541, %545 : vector<16x32xf32>
      %547 = vector.broadcast %527 : vector<1x32xf32> to vector<16x32xf32>
      %548 = arith.mulf %546, %547 : vector<16x32xf32>
      %549 = vector.broadcast %528 : vector<1x32xf32> to vector<16x32xf32>
      %550 = arith.addf %548, %549 : vector<16x32xf32>
      %c0_192 = arith.constant 0 : index
      %c0_193 = arith.constant 0 : index
      %551 = vector.load %arg29[%c0_192, %c0_193] : memref<128x32xbf16, #tpu.memory_space<vmem>>, vector<128x32xbf16>
      %552 = arith.truncf %550 : vector<16x32xf32> to vector<16x32xbf16>
      %cst_194 = arith.constant dense<0.000000e+00> : vector<16x128xf32>
      %553 = tpu.matmul %552, %551, %cst_194 {dimension_numbers = #tpu.dot_dimension_numbers<[1], [1], [0], [0], [0, 0, 1, 0], [], []>} : vector<16x32xbf16>, vector<128x32xbf16>, vector<16x128xf32> -> vector<16x128xf32>
      %c0_195 = arith.constant 0 : index
      %c0_196 = arith.constant 0 : index
      %554 = vector.load %arg30[%c0_195, %c0_196] : memref<1x128xf32, #tpu.memory_space<vmem>>, vector<1x128xf32>
      %555 = vector.broadcast %554 : vector<1x128xf32> to vector<16x128xf32>
      %556 = arith.addf %553, %555 : vector<16x128xf32>
      %c0_197 = arith.constant 0 : index
      %c0_198 = arith.constant 0 : index
      %557 = vector.load %arg31[%c0_197, %c0_198] : memref<16x128xf32, #tpu.memory_space<vmem>>, vector<16x128xf32>
      tpu.vector_store %arg31[%c0_197, %c0_198], %556 {strides = array<i32>} : memref<16x128xf32, #tpu.memory_space<vmem>>, vector<16x128xf32>,
    } else {
    }
    return
  }
  func.func @transform_0(%arg0: i32) -> (i32, i32) {
    %c0_i32 = arith.constant 0 : i32
    %c0_i32_0 = arith.constant 0 : i32
    %c0_i32_1 = arith.constant 0 : i32
    return %c0_i32, %c0_i32_0 : i32, i32
  }
  func.func @transform_1(%arg0: i32) -> (i32, i32) {
    %c0_i32 = arith.constant 0 : i32
    %c0_i32_0 = arith.constant 0 : i32
    %c0_i32_1 = arith.constant 0 : i32
    return %c0_i32, %c0_i32_0 : i32, i32
  }
  func.func @transform_2(%arg0: i32) -> (i32, i32) {
    %c0_i32 = arith.constant 0 : i32
    %c0_i32_0 = arith.constant 0 : i32
    %c0_i32_1 = arith.constant 0 : i32
    return %c0_i32, %c0_i32_0 : i32, i32
  }
  func.func @transform_3(%arg0: i32) -> (i32, i32, i32) {
    %c0_i32 = arith.constant 0 : i32
    %c0_i32_0 = arith.constant 0 : i32
    %c0_i32_1 = arith.constant 0 : i32
    %c0_i32_2 = arith.constant 0 : i32
    return %c0_i32, %c0_i32_0, %c0_i32_1 : i32, i32, i32
  }
  func.func @transform_4(%arg0: i32) -> (i32, i32, i32) {
    %c0_i32 = arith.constant 0 : i32
    %c0_i32_0 = arith.constant 0 : i32
    %c0_i32_1 = arith.constant 0 : i32
    return %arg0, %c0_i32, %c0_i32_0 : i32, i32, i32
  }
  func.func @transform_5(%arg0: i32) -> (i32, i32, i32) {
    %c0_i32 = arith.constant 0 : i32
    %c0_i32_0 = arith.constant 0 : i32
    %c0_i32_1 = arith.constant 0 : i32
    return %arg0, %c0_i32, %c0_i32_0 : i32, i32, i32
  }
  func.func @transform_6(%arg0: i32) -> (i32, i32, i32) {
    %c0_i32 = arith.constant 0 : i32
    %c0_i32_0 = arith.constant 0 : i32
    %c0_i32_1 = arith.constant 0 : i32
    return %arg0, %c0_i32, %c0_i32_0 : i32, i32, i32
  }
  func.func @transform_7(%arg0: i32) -> (i32, i32, i32) {
    %c0_i32 = arith.constant 0 : i32
    %c0_i32_0 = arith.constant 0 : i32
    %c0_i32_1 = arith.constant 0 : i32
    return %arg0, %c0_i32, %c0_i32_0 : i32, i32, i32
  }
  func.func @transform_8(%arg0: i32) -> (i32, i32, i32) {
    %c0_i32 = arith.constant 0 : i32
    %c0_i32_0 = arith.constant 0 : i32
    %c0_i32_1 = arith.constant 0 : i32
    return %arg0, %c0_i32, %c0_i32_0 : i32, i32, i32
  }
  func.func @transform_9(%arg0: i32) -> (i32, i32, i32) {
    %c0_i32 = arith.constant 0 : i32
    %c0_i32_0 = arith.constant 0 : i32
    %c0_i32_1 = arith.constant 0 : i32
    return %arg0, %c0_i32, %c0_i32_0 : i32, i32, i32
  }
  func.func @transform_10(%arg0: i32) -> (i32, i32, i32) {
    %c0_i32 = arith.constant 0 : i32
    %c0_i32_0 = arith.constant 0 : i32
    %c0_i32_1 = arith.constant 0 : i32
    return %arg0, %c0_i32, %c0_i32_0 : i32, i32, i32
  }
  func.func @transform_11(%arg0: i32) -> (i32, i32, i32) {
    %c0_i32 = arith.constant 0 : i32
    %c0_i32_0 = arith.constant 0 : i32
    %c0_i32_1 = arith.constant 0 : i32
    return %arg0, %c0_i32, %c0_i32_0 : i32, i32, i32
  }
  func.func @transform_12(%arg0: i32) -> (i32, i32, i32) {
    %c0_i32 = arith.constant 0 : i32
    %c0_i32_0 = arith.constant 0 : i32
    %c0_i32_1 = arith.constant 0 : i32
    return %arg0, %c0_i32, %c0_i32_0 : i32, i32, i32
  }
  func.func @transform_13(%arg0: i32) -> (i32, i32, i32) {
    %c0_i32 = arith.constant 0 : i32
    %c0_i32_0 = arith.constant 0 : i32
    %c0_i32_1 = arith.constant 0 : i32
    return %arg0, %c0_i32, %c0_i32_0 : i32, i32, i32
  }
  func.func @transform_14(%arg0: i32) -> (i32, i32, i32) {
    %c0_i32 = arith.constant 0 : i32
    %c0_i32_0 = arith.constant 0 : i32
    %c0_i32_1 = arith.constant 0 : i32
    return %arg0, %c0_i32, %c0_i32_0 : i32, i32, i32
  }
  func.func @transform_15(%arg0: i32) -> (i32, i32, i32) {
    %c0_i32 = arith.constant 0 : i32
    %c0_i32_0 = arith.constant 0 : i32
    %c0_i32_1 = arith.constant 0 : i32
    return %arg0, %c0_i32, %c0_i32_0 : i32, i32, i32
  }
  func.func @transform_16(%arg0: i32) -> (i32, i32, i32) {
    %c0_i32 = arith.constant 0 : i32
    %c0_i32_0 = arith.constant 0 : i32
    %c0_i32_1 = arith.constant 0 : i32
    return %arg0, %c0_i32, %c0_i32_0 : i32, i32, i32
  }
  func.func @transform_17(%arg0: i32) -> (i32, i32, i32) {
    %c0_i32 = arith.constant 0 : i32
    %c0_i32_0 = arith.constant 0 : i32
    %c0_i32_1 = arith.constant 0 : i32
    return %arg0, %c0_i32, %c0_i32_0 : i32, i32, i32
  }
  func.func @transform_18(%arg0: i32) -> (i32, i32, i32) {
    %c0_i32 = arith.constant 0 : i32
    %c0_i32_0 = arith.constant 0 : i32
    %c0_i32_1 = arith.constant 0 : i32
    return %arg0, %c0_i32, %c0_i32_0 : i32, i32, i32
  }
  func.func @transform_19(%arg0: i32) -> (i32, i32, i32) {
    %c0_i32 = arith.constant 0 : i32
    %c0_i32_0 = arith.constant 0 : i32
    %c0_i32_1 = arith.constant 0 : i32
    return %arg0, %c0_i32, %c0_i32_0 : i32, i32, i32
  }
  func.func @transform_20(%arg0: i32) -> (i32, i32, i32) {
    %c0_i32 = arith.constant 0 : i32
    %c0_i32_0 = arith.constant 0 : i32
    %c0_i32_1 = arith.constant 0 : i32
    return %arg0, %c0_i32, %c0_i32_0 : i32, i32, i32
  }
  func.func @transform_21(%arg0: i32) -> (i32, i32, i32) {
    %c0_i32 = arith.constant 0 : i32
    %c0_i32_0 = arith.constant 0 : i32
    %c0_i32_1 = arith.constant 0 : i32
    return %arg0, %c0_i32, %c0_i32_0 : i32, i32, i32
  }
  func.func @transform_22(%arg0: i32) -> (i32, i32, i32) {
    %c0_i32 = arith.constant 0 : i32
    %c0_i32_0 = arith.constant 0 : i32
    %c0_i32_1 = arith.constant 0 : i32
    return %arg0, %c0_i32, %c0_i32_0 : i32, i32, i32
  }
  func.func @transform_23(%arg0: i32) -> (i32, i32, i32) {
    %c0_i32 = arith.constant 0 : i32
    %c0_i32_0 = arith.constant 0 : i32
    %c0_i32_1 = arith.constant 0 : i32
    return %arg0, %c0_i32, %c0_i32_0 : i32, i32, i32
  }
  func.func @transform_24(%arg0: i32) -> (i32, i32, i32) {
    %c0_i32 = arith.constant 0 : i32
    %c0_i32_0 = arith.constant 0 : i32
    %c0_i32_1 = arith.constant 0 : i32
    return %arg0, %c0_i32, %c0_i32_0 : i32, i32, i32
  }
  func.func @transform_25(%arg0: i32) -> (i32, i32, i32) {
    %c0_i32 = arith.constant 0 : i32
    %c0_i32_0 = arith.constant 0 : i32
    %c0_i32_1 = arith.constant 0 : i32
    return %arg0, %c0_i32, %c0_i32_0 : i32, i32, i32
  }
  func.func @transform_26(%arg0: i32) -> (i32, i32) {
    %c0_i32 = arith.constant 0 : i32
    %c0_i32_0 = arith.constant 0 : i32
    %c0_i32_1 = arith.constant 0 : i32
    return %c0_i32, %c0_i32_0 : i32, i32
  }
  func.func @transform_27(%arg0: i32) -> (i32, i32) {
    %c0_i32 = arith.constant 0 : i32
    %c0_i32_0 = arith.constant 0 : i32
    %c0_i32_1 = arith.constant 0 : i32
    return %c0_i32, %c0_i32_0 : i32, i32
  }
  func.func @transform_28(%arg0: i32) -> (i32, i32) {
    %c0_i32 = arith.constant 0 : i32
    %c0_i32_0 = arith.constant 0 : i32
    %c0_i32_1 = arith.constant 0 : i32
    return %c0_i32, %c0_i32_0 : i32, i32
  }
  func.func @transform_29(%arg0: i32) -> (i32, i32) {
    %c0_i32 = arith.constant 0 : i32
    %c0_i32_0 = arith.constant 0 : i32
    %c0_i32_1 = arith.constant 0 : i32
    return %c0_i32, %c0_i32_0 : i32, i32
  }
  func.func @transform_30(%arg0: i32) -> (i32, i32) {
    %c0_i32 = arith.constant 0 : i32
    %c0_i32_0 = arith.constant 0 : i32
    %c0_i32_1 = arith.constant 0 : i32
    return %c0_i32, %c0_i32_0 : i32, i32
  }
}

module attributes {stable_mosaic.version = 11 : i64} {
  func.func @_encoder_stack_kernel(%arg0: i32, %arg1: memref<16x32xf32, #tpu.memory_space<vmem>>, %arg2: memref<2x1x8xf32, #tpu.memory_space<vmem>>, %arg3: memref<1x32x32xbf16, #tpu.memory_space<vmem>>, %arg4: memref<1x1x32xf32, #tpu.memory_space<vmem>>, %arg5: memref<1x64x32xbf16, #tpu.memory_space<vmem>>, %arg6: memref<1x1x64xf32, #tpu.memory_space<vmem>>, %arg7: memref<1x32x32xbf16, #tpu.memory_space<vmem>>, %arg8: memref<1x1x32xf32, #tpu.memory_space<vmem>>, %arg9: memref<1x1x32xf32, #tpu.memory_space<vmem>>, %arg10: memref<1x1x32xf32, #tpu.memory_space<vmem>>, %arg11: memref<1x64x32xbf16, #tpu.memory_space<vmem>>, %arg12: memref<1x1x64xf32, #tpu.memory_space<vmem>>, %arg13: memref<1x32x64xbf16, #tpu.memory_space<vmem>>, %arg14: memref<1x1x32xf32, #tpu.memory_space<vmem>>, %arg15: memref<1x1x32xf32, #tpu.memory_space<vmem>>, %arg16: memref<1x1x32xf32, #tpu.memory_space<vmem>>, %arg17: memref<1x32xf32, #tpu.memory_space<vmem>>, %arg18: memref<1x32xf32, #tpu.memory_space<vmem>>, %arg19: memref<16x32xf32, #tpu.memory_space<vmem>>, %arg20: memref<16x32xf32, #tpu.memory_space<vmem>>) attributes {dimension_semantics = [#tpu.dimension_semantics<arbitrary>], iteration_bounds = array<i64: 2>, scalar_prefetch = 0 : i64, scratch_operands = 1 : i64, tpu.core_type = #tpu.core_type<tc>, window_params = [{pipeline_mode = #tpu.pipeline_mode<synchronous>, transform_indices = @transform_0, window_bounds = array<i64: 16, 32>}, {pipeline_mode = #tpu.pipeline_mode<synchronous>, transform_indices = @transform_1, window_bounds = array<i64: 2, 1, 8>}, {transform_indices = @transform_2, window_bounds = array<i64: 1, 32, 32>}, {transform_indices = @transform_3, window_bounds = array<i64: 1, 1, 32>}, {transform_indices = @transform_4, window_bounds = array<i64: 1, 64, 32>}, {transform_indices = @transform_5, window_bounds = array<i64: 1, 1, 64>}, {transform_indices = @transform_6, window_bounds = array<i64: 1, 32, 32>}, {transform_indices = @transform_7, window_bounds = array<i64: 1, 1, 32>}, {transform_indices = @transform_8, window_bounds = array<i64: 1, 1, 32>}, {transform_indices = @transform_9, window_bounds = array<i64: 1, 1, 32>}, {transform_indices = @transform_10, window_bounds = array<i64: 1, 64, 32>}, {transform_indices = @transform_11, window_bounds = array<i64: 1, 1, 64>}, {transform_indices = @transform_12, window_bounds = array<i64: 1, 32, 64>}, {transform_indices = @transform_13, window_bounds = array<i64: 1, 1, 32>}, {transform_indices = @transform_14, window_bounds = array<i64: 1, 1, 32>}, {transform_indices = @transform_15, window_bounds = array<i64: 1, 1, 32>}, {pipeline_mode = #tpu.pipeline_mode<synchronous>, transform_indices = @transform_16, window_bounds = array<i64: 1, 32>}, {pipeline_mode = #tpu.pipeline_mode<synchronous>, transform_indices = @transform_17, window_bounds = array<i64: 1, 32>}, {pipeline_mode = #tpu.pipeline_mode<synchronous>, transform_indices = @transform_18, window_bounds = array<i64: 16, 32>}]} {
    %c0_i32 = arith.constant 0 : i32
    %0 = arith.cmpi eq, %arg0, %c0_i32 : i32
    %1 = arith.extui %0 : i1 to i32
    %c0_i32_0 = arith.constant 0 : i32
    %2 = arith.cmpi ne, %1, %c0_i32_0 : i32
    scf.if %2 {
      %c0_107 = arith.constant 0 : index
      %c0_108 = arith.constant 0 : index
      %297 = vector.load %arg1[%c0_107, %c0_108] : memref<16x32xf32, #tpu.memory_space<vmem>>, vector<16x32xf32>
      %c0_109 = arith.constant 0 : index
      %c0_110 = arith.constant 0 : index
      %298 = vector.load %arg20[%c0_109, %c0_110] : memref<16x32xf32, #tpu.memory_space<vmem>>, vector<16x32xf32>
      tpu.vector_store %arg20[%c0_109, %c0_110], %297 {strides = array<i32>} : memref<16x32xf32, #tpu.memory_space<vmem>>, vector<16x32xf32>,
    } else {
    }
    %c0 = arith.constant 0 : index
    %c0_1 = arith.constant 0 : index
    %3 = vector.load %arg20[%c0, %c0_1] : memref<16x32xf32, #tpu.memory_space<vmem>>, vector<16x32xf32>
    %c0_2 = arith.constant 0 : index
    %c0_3 = arith.constant 0 : index
    %c0_4 = arith.constant 0 : index
    %4 = vector.load %arg2[%c0_2, %c0_3, %c0_4] : memref<2x1x8xf32, #tpu.memory_space<vmem>>, vector<1x1x8xf32>
    %5 = vector.shape_cast %4 : vector<1x1x8xf32> to vector<1x8xf32>
    %6 = vector.shape_cast %5 : vector<1x8xf32> to vector<1x8xf32>
    %7 = vector.broadcast %6 : vector<1x8xf32> to vector<8x8xf32>
    %c1 = arith.constant 1 : index
    %c0_5 = arith.constant 0 : index
    %c0_6 = arith.constant 0 : index
    %8 = vector.load %arg2[%c1, %c0_5, %c0_6] : memref<2x1x8xf32, #tpu.memory_space<vmem>>, vector<1x1x8xf32>
    %9 = vector.shape_cast %8 : vector<1x1x8xf32> to vector<1x8xf32>
    %10 = vector.shape_cast %9 : vector<1x8xf32> to vector<1x8xf32>
    %11 = vector.broadcast %10 : vector<1x8xf32> to vector<8x8xf32>
    %c0_7 = arith.constant 0 : index
    %c0_8 = arith.constant 0 : index
    %c0_9 = arith.constant 0 : index
    %12 = vector.load %arg3[%c0_7, %c0_8, %c0_9] : memref<1x32x32xbf16, #tpu.memory_space<vmem>>, vector<1x32x32xbf16>
    %13 = vector.shape_cast %12 : vector<1x32x32xbf16> to vector<32x32xbf16>
    %c0_10 = arith.constant 0 : index
    %c0_11 = arith.constant 0 : index
    %c0_12 = arith.constant 0 : index
    %14 = vector.load %arg4[%c0_10, %c0_11, %c0_12] : memref<1x1x32xf32, #tpu.memory_space<vmem>>, vector<1x1x32xf32>
    %15 = vector.shape_cast %14 : vector<1x1x32xf32> to vector<1x32xf32>
    %c0_13 = arith.constant 0 : index
    %c0_14 = arith.constant 0 : index
    %c0_15 = arith.constant 0 : index
    %16 = vector.load %arg5[%c0_13, %c0_14, %c0_15] : memref<1x64x32xbf16, #tpu.memory_space<vmem>>, vector<1x64x32xbf16>
    %17 = vector.shape_cast %16 : vector<1x64x32xbf16> to vector<64x32xbf16>
    %c0_16 = arith.constant 0 : index
    %c0_17 = arith.constant 0 : index
    %c0_18 = arith.constant 0 : index
    %18 = vector.load %arg6[%c0_16, %c0_17, %c0_18] : memref<1x1x64xf32, #tpu.memory_space<vmem>>, vector<1x1x64xf32>
    %19 = vector.shape_cast %18 : vector<1x1x64xf32> to vector<1x64xf32>
    %c0_19 = arith.constant 0 : index
    %c0_20 = arith.constant 0 : index
    %c0_21 = arith.constant 0 : index
    %20 = vector.load %arg7[%c0_19, %c0_20, %c0_21] : memref<1x32x32xbf16, #tpu.memory_space<vmem>>, vector<1x32x32xbf16>
    %21 = vector.shape_cast %20 : vector<1x32x32xbf16> to vector<32x32xbf16>
    %c0_22 = arith.constant 0 : index
    %c0_23 = arith.constant 0 : index
    %c0_24 = arith.constant 0 : index
    %22 = vector.load %arg8[%c0_22, %c0_23, %c0_24] : memref<1x1x32xf32, #tpu.memory_space<vmem>>, vector<1x1x32xf32>
    %23 = vector.shape_cast %22 : vector<1x1x32xf32> to vector<1x32xf32>
    %24 = arith.truncf %3 : vector<16x32xf32> to vector<16x32xbf16>
    %cst = arith.constant dense<0.000000e+00> : vector<16x32xf32>
    %25 = tpu.matmul %24, %13, %cst {dimension_numbers = #tpu.dot_dimension_numbers<[1], [1], [0], [0], [0, 0, 1, 0], [], []>} : vector<16x32xbf16>, vector<32x32xbf16>, vector<16x32xf32> -> vector<16x32xf32>
    %26 = vector.broadcast %15 : vector<1x32xf32> to vector<16x32xf32>
    %27 = arith.addf %25, %26 : vector<16x32xf32>
    %28 = arith.truncf %3 : vector<16x32xf32> to vector<16x32xbf16>
    %cst_25 = arith.constant dense<0.000000e+00> : vector<16x64xf32>
    %29 = tpu.matmul %28, %17, %cst_25 {dimension_numbers = #tpu.dot_dimension_numbers<[1], [1], [0], [0], [0, 0, 1, 0], [], []>} : vector<16x32xbf16>, vector<64x32xbf16>, vector<16x64xf32> -> vector<16x64xf32>
    %30 = vector.broadcast %19 : vector<1x64xf32> to vector<16x64xf32>
    %31 = arith.addf %29, %30 : vector<16x64xf32>
    %32 = vector.extract_strided_slice %27 {offsets = [0, 0], sizes = [8, 32], strides = [1, 1]} : vector<16x32xf32> to vector<8x32xf32>
    %33 = vector.extract_strided_slice %31 {offsets = [0, 0], sizes = [8, 32], strides = [1, 1]} : vector<16x64xf32> to vector<8x32xf32>
    %34 = vector.extract_strided_slice %31 {offsets = [0, 32], sizes = [8, 32], strides = [1, 1]} : vector<16x64xf32> to vector<8x32xf32>
    %35 = vector.extract_strided_slice %32 {offsets = [0, 0], sizes = [8, 8], strides = [1, 1]} : vector<8x32xf32> to vector<8x8xf32>
    %36 = arith.truncf %35 : vector<8x8xf32> to vector<8x8xbf16>
    %37 = vector.extract_strided_slice %33 {offsets = [0, 0], sizes = [8, 8], strides = [1, 1]} : vector<8x32xf32> to vector<8x8xf32>
    %38 = arith.truncf %37 : vector<8x8xf32> to vector<8x8xbf16>
    %cst_26 = arith.constant dense<0.000000e+00> : vector<8x8xf32>
    %39 = tpu.matmul %36, %38, %cst_26 {dimension_numbers = #tpu.dot_dimension_numbers<[1], [1], [0], [0], [0, 0, 1, 0], [], []>} : vector<8x8xbf16>, vector<8x8xbf16>, vector<8x8xf32> -> vector<8x8xf32>
    %cst_27 = arith.constant 0.353553385 : f32
    %40 = vector.broadcast %cst_27 : f32 to vector<8x8xf32>
    %41 = arith.mulf %39, %40 : vector<8x8xf32>
    %42 = arith.addf %41, %7 : vector<8x8xf32>
    %cst_28 = arith.constant dense<0xFF800000> : vector<8xf32>
    %43 = vector.multi_reduction <maximumf>, %42, %cst_28 [1] : vector<8x8xf32> to vector<8xf32>
    %44 = vector.shape_cast %43 : vector<8xf32> to vector<8x1xf32>
    %45 = vector.broadcast %44 : vector<8x1xf32> to vector<8x8xf32>
    %46 = arith.subf %42, %45 : vector<8x8xf32>
    %47 = math.exp %46 : vector<8x8xf32>
    %cst_29 = arith.constant dense<0.000000e+00> : vector<8xf32>
    %48 = vector.multi_reduction <add>, %47, %cst_29 [1] : vector<8x8xf32> to vector<8xf32>
    %49 = vector.shape_cast %48 : vector<8xf32> to vector<8x1xf32>
    %50 = tpu.reciprocal %49 {approx = true} : vector<8x1xf32> -> vector<8x1xf32>
    %51 = vector.broadcast %50 : vector<8x1xf32> to vector<8x8xf32>
    %52 = arith.mulf %47, %51 : vector<8x8xf32>
    %53 = arith.truncf %52 : vector<8x8xf32> to vector<8x8xbf16>
    %54 = vector.extract_strided_slice %34 {offsets = [0, 0], sizes = [8, 8], strides = [1, 1]} : vector<8x32xf32> to vector<8x8xf32>
    %55 = arith.truncf %54 : vector<8x8xf32> to vector<8x8xbf16>
    %cst_30 = arith.constant dense<0.000000e+00> : vector<8x8xf32>
    %56 = tpu.matmul %53, %55, %cst_30 {dimension_numbers = #tpu.dot_dimension_numbers<[1], [0], [0], [1], [0, 0, 1, 1], [], []>} : vector<8x8xbf16>, vector<8x8xbf16>, vector<8x8xf32> -> vector<8x8xf32>
    %57 = vector.extract_strided_slice %32 {offsets = [0, 8], sizes = [8, 8], strides = [1, 1]} : vector<8x32xf32> to vector<8x8xf32>
    %58 = arith.truncf %57 : vector<8x8xf32> to vector<8x8xbf16>
    %59 = vector.extract_strided_slice %33 {offsets = [0, 8], sizes = [8, 8], strides = [1, 1]} : vector<8x32xf32> to vector<8x8xf32>
    %60 = arith.truncf %59 : vector<8x8xf32> to vector<8x8xbf16>
    %cst_31 = arith.constant dense<0.000000e+00> : vector<8x8xf32>
    %61 = tpu.matmul %58, %60, %cst_31 {dimension_numbers = #tpu.dot_dimension_numbers<[1], [1], [0], [0], [0, 0, 1, 0], [], []>} : vector<8x8xbf16>, vector<8x8xbf16>, vector<8x8xf32> -> vector<8x8xf32>
    %cst_32 = arith.constant 0.353553385 : f32
    %62 = vector.broadcast %cst_32 : f32 to vector<8x8xf32>
    %63 = arith.mulf %61, %62 : vector<8x8xf32>
    %64 = arith.addf %63, %7 : vector<8x8xf32>
    %cst_33 = arith.constant dense<0xFF800000> : vector<8xf32>
    %65 = vector.multi_reduction <maximumf>, %64, %cst_33 [1] : vector<8x8xf32> to vector<8xf32>
    %66 = vector.shape_cast %65 : vector<8xf32> to vector<8x1xf32>
    %67 = vector.broadcast %66 : vector<8x1xf32> to vector<8x8xf32>
    %68 = arith.subf %64, %67 : vector<8x8xf32>
    %69 = math.exp %68 : vector<8x8xf32>
    %cst_34 = arith.constant dense<0.000000e+00> : vector<8xf32>
    %70 = vector.multi_reduction <add>, %69, %cst_34 [1] : vector<8x8xf32> to vector<8xf32>
    %71 = vector.shape_cast %70 : vector<8xf32> to vector<8x1xf32>
    %72 = tpu.reciprocal %71 {approx = true} : vector<8x1xf32> -> vector<8x1xf32>
    %73 = vector.broadcast %72 : vector<8x1xf32> to vector<8x8xf32>
    %74 = arith.mulf %69, %73 : vector<8x8xf32>
    %75 = arith.truncf %74 : vector<8x8xf32> to vector<8x8xbf16>
    %76 = vector.extract_strided_slice %34 {offsets = [0, 8], sizes = [8, 8], strides = [1, 1]} : vector<8x32xf32> to vector<8x8xf32>
    %77 = arith.truncf %76 : vector<8x8xf32> to vector<8x8xbf16>
    %cst_35 = arith.constant dense<0.000000e+00> : vector<8x8xf32>
    %78 = tpu.matmul %75, %77, %cst_35 {dimension_numbers = #tpu.dot_dimension_numbers<[1], [0], [0], [1], [0, 0, 1, 1], [], []>} : vector<8x8xbf16>, vector<8x8xbf16>, vector<8x8xf32> -> vector<8x8xf32>
    %79 = vector.extract_strided_slice %32 {offsets = [0, 16], sizes = [8, 8], strides = [1, 1]} : vector<8x32xf32> to vector<8x8xf32>
    %80 = arith.truncf %79 : vector<8x8xf32> to vector<8x8xbf16>
    %81 = vector.extract_strided_slice %33 {offsets = [0, 16], sizes = [8, 8], strides = [1, 1]} : vector<8x32xf32> to vector<8x8xf32>
    %82 = arith.truncf %81 : vector<8x8xf32> to vector<8x8xbf16>
    %cst_36 = arith.constant dense<0.000000e+00> : vector<8x8xf32>
    %83 = tpu.matmul %80, %82, %cst_36 {dimension_numbers = #tpu.dot_dimension_numbers<[1], [1], [0], [0], [0, 0, 1, 0], [], []>} : vector<8x8xbf16>, vector<8x8xbf16>, vector<8x8xf32> -> vector<8x8xf32>
    %cst_37 = arith.constant 0.353553385 : f32
    %84 = vector.broadcast %cst_37 : f32 to vector<8x8xf32>
    %85 = arith.mulf %83, %84 : vector<8x8xf32>
    %86 = arith.addf %85, %7 : vector<8x8xf32>
    %cst_38 = arith.constant dense<0xFF800000> : vector<8xf32>
    %87 = vector.multi_reduction <maximumf>, %86, %cst_38 [1] : vector<8x8xf32> to vector<8xf32>
    %88 = vector.shape_cast %87 : vector<8xf32> to vector<8x1xf32>
    %89 = vector.broadcast %88 : vector<8x1xf32> to vector<8x8xf32>
    %90 = arith.subf %86, %89 : vector<8x8xf32>
    %91 = math.exp %90 : vector<8x8xf32>
    %cst_39 = arith.constant dense<0.000000e+00> : vector<8xf32>
    %92 = vector.multi_reduction <add>, %91, %cst_39 [1] : vector<8x8xf32> to vector<8xf32>
    %93 = vector.shape_cast %92 : vector<8xf32> to vector<8x1xf32>
    %94 = tpu.reciprocal %93 {approx = true} : vector<8x1xf32> -> vector<8x1xf32>
    %95 = vector.broadcast %94 : vector<8x1xf32> to vector<8x8xf32>
    %96 = arith.mulf %91, %95 : vector<8x8xf32>
    %97 = arith.truncf %96 : vector<8x8xf32> to vector<8x8xbf16>
    %98 = vector.extract_strided_slice %34 {offsets = [0, 16], sizes = [8, 8], strides = [1, 1]} : vector<8x32xf32> to vector<8x8xf32>
    %99 = arith.truncf %98 : vector<8x8xf32> to vector<8x8xbf16>
    %cst_40 = arith.constant dense<0.000000e+00> : vector<8x8xf32>
    %100 = tpu.matmul %97, %99, %cst_40 {dimension_numbers = #tpu.dot_dimension_numbers<[1], [0], [0], [1], [0, 0, 1, 1], [], []>} : vector<8x8xbf16>, vector<8x8xbf16>, vector<8x8xf32> -> vector<8x8xf32>
    %101 = vector.extract_strided_slice %32 {offsets = [0, 24], sizes = [8, 8], strides = [1, 1]} : vector<8x32xf32> to vector<8x8xf32>
    %102 = arith.truncf %101 : vector<8x8xf32> to vector<8x8xbf16>
    %103 = vector.extract_strided_slice %33 {offsets = [0, 24], sizes = [8, 8], strides = [1, 1]} : vector<8x32xf32> to vector<8x8xf32>
    %104 = arith.truncf %103 : vector<8x8xf32> to vector<8x8xbf16>
    %cst_41 = arith.constant dense<0.000000e+00> : vector<8x8xf32>
    %105 = tpu.matmul %102, %104, %cst_41 {dimension_numbers = #tpu.dot_dimension_numbers<[1], [1], [0], [0], [0, 0, 1, 0], [], []>} : vector<8x8xbf16>, vector<8x8xbf16>, vector<8x8xf32> -> vector<8x8xf32>
    %cst_42 = arith.constant 0.353553385 : f32
    %106 = vector.broadcast %cst_42 : f32 to vector<8x8xf32>
    %107 = arith.mulf %105, %106 : vector<8x8xf32>
    %108 = arith.addf %107, %7 : vector<8x8xf32>
    %cst_43 = arith.constant dense<0xFF800000> : vector<8xf32>
    %109 = vector.multi_reduction <maximumf>, %108, %cst_43 [1] : vector<8x8xf32> to vector<8xf32>
    %110 = vector.shape_cast %109 : vector<8xf32> to vector<8x1xf32>
    %111 = vector.broadcast %110 : vector<8x1xf32> to vector<8x8xf32>
    %112 = arith.subf %108, %111 : vector<8x8xf32>
    %113 = math.exp %112 : vector<8x8xf32>
    %cst_44 = arith.constant dense<0.000000e+00> : vector<8xf32>
    %114 = vector.multi_reduction <add>, %113, %cst_44 [1] : vector<8x8xf32> to vector<8xf32>
    %115 = vector.shape_cast %114 : vector<8xf32> to vector<8x1xf32>
    %116 = tpu.reciprocal %115 {approx = true} : vector<8x1xf32> -> vector<8x1xf32>
    %117 = vector.broadcast %116 : vector<8x1xf32> to vector<8x8xf32>
    %118 = arith.mulf %113, %117 : vector<8x8xf32>
    %119 = arith.truncf %118 : vector<8x8xf32> to vector<8x8xbf16>
    %120 = vector.extract_strided_slice %34 {offsets = [0, 24], sizes = [8, 8], strides = [1, 1]} : vector<8x32xf32> to vector<8x8xf32>
    %121 = arith.truncf %120 : vector<8x8xf32> to vector<8x8xbf16>
    %cst_45 = arith.constant dense<0.000000e+00> : vector<8x8xf32>
    %122 = tpu.matmul %119, %121, %cst_45 {dimension_numbers = #tpu.dot_dimension_numbers<[1], [0], [0], [1], [0, 0, 1, 1], [], []>} : vector<8x8xbf16>, vector<8x8xbf16>, vector<8x8xf32> -> vector<8x8xf32>
    %123 = tpu.concatenate %56, %78, %100, %122 in 1 : vector<8x8xf32>, vector<8x8xf32>, vector<8x8xf32>, vector<8x8xf32> -> vector<8x32xf32>
    %124 = vector.extract_strided_slice %27 {offsets = [8, 0], sizes = [8, 32], strides = [1, 1]} : vector<16x32xf32> to vector<8x32xf32>
    %125 = vector.extract_strided_slice %31 {offsets = [8, 0], sizes = [8, 32], strides = [1, 1]} : vector<16x64xf32> to vector<8x32xf32>
    %126 = vector.extract_strided_slice %31 {offsets = [8, 32], sizes = [8, 32], strides = [1, 1]} : vector<16x64xf32> to vector<8x32xf32>
    %127 = vector.extract_strided_slice %124 {offsets = [0, 0], sizes = [8, 8], strides = [1, 1]} : vector<8x32xf32> to vector<8x8xf32>
    %128 = arith.truncf %127 : vector<8x8xf32> to vector<8x8xbf16>
    %129 = vector.extract_strided_slice %125 {offsets = [0, 0], sizes = [8, 8], strides = [1, 1]} : vector<8x32xf32> to vector<8x8xf32>
    %130 = arith.truncf %129 : vector<8x8xf32> to vector<8x8xbf16>
    %cst_46 = arith.constant dense<0.000000e+00> : vector<8x8xf32>
    %131 = tpu.matmul %128, %130, %cst_46 {dimension_numbers = #tpu.dot_dimension_numbers<[1], [1], [0], [0], [0, 0, 1, 0], [], []>} : vector<8x8xbf16>, vector<8x8xbf16>, vector<8x8xf32> -> vector<8x8xf32>
    %cst_47 = arith.constant 0.353553385 : f32
    %132 = vector.broadcast %cst_47 : f32 to vector<8x8xf32>
    %133 = arith.mulf %131, %132 : vector<8x8xf32>
    %134 = arith.addf %133, %11 : vector<8x8xf32>
    %cst_48 = arith.constant dense<0xFF800000> : vector<8xf32>
    %135 = vector.multi_reduction <maximumf>, %134, %cst_48 [1] : vector<8x8xf32> to vector<8xf32>
    %136 = vector.shape_cast %135 : vector<8xf32> to vector<8x1xf32>
    %137 = vector.broadcast %136 : vector<8x1xf32> to vector<8x8xf32>
    %138 = arith.subf %134, %137 : vector<8x8xf32>
    %139 = math.exp %138 : vector<8x8xf32>
    %cst_49 = arith.constant dense<0.000000e+00> : vector<8xf32>
    %140 = vector.multi_reduction <add>, %139, %cst_49 [1] : vector<8x8xf32> to vector<8xf32>
    %141 = vector.shape_cast %140 : vector<8xf32> to vector<8x1xf32>
    %142 = tpu.reciprocal %141 {approx = true} : vector<8x1xf32> -> vector<8x1xf32>
    %143 = vector.broadcast %142 : vector<8x1xf32> to vector<8x8xf32>
    %144 = arith.mulf %139, %143 : vector<8x8xf32>
    %145 = arith.truncf %144 : vector<8x8xf32> to vector<8x8xbf16>
    %146 = vector.extract_strided_slice %126 {offsets = [0, 0], sizes = [8, 8], strides = [1, 1]} : vector<8x32xf32> to vector<8x8xf32>
    %147 = arith.truncf %146 : vector<8x8xf32> to vector<8x8xbf16>
    %cst_50 = arith.constant dense<0.000000e+00> : vector<8x8xf32>
    %148 = tpu.matmul %145, %147, %cst_50 {dimension_numbers = #tpu.dot_dimension_numbers<[1], [0], [0], [1], [0, 0, 1, 1], [], []>} : vector<8x8xbf16>, vector<8x8xbf16>, vector<8x8xf32> -> vector<8x8xf32>
    %149 = vector.extract_strided_slice %124 {offsets = [0, 8], sizes = [8, 8], strides = [1, 1]} : vector<8x32xf32> to vector<8x8xf32>
    %150 = arith.truncf %149 : vector<8x8xf32> to vector<8x8xbf16>
    %151 = vector.extract_strided_slice %125 {offsets = [0, 8], sizes = [8, 8], strides = [1, 1]} : vector<8x32xf32> to vector<8x8xf32>
    %152 = arith.truncf %151 : vector<8x8xf32> to vector<8x8xbf16>
    %cst_51 = arith.constant dense<0.000000e+00> : vector<8x8xf32>
    %153 = tpu.matmul %150, %152, %cst_51 {dimension_numbers = #tpu.dot_dimension_numbers<[1], [1], [0], [0], [0, 0, 1, 0], [], []>} : vector<8x8xbf16>, vector<8x8xbf16>, vector<8x8xf32> -> vector<8x8xf32>
    %cst_52 = arith.constant 0.353553385 : f32
    %154 = vector.broadcast %cst_52 : f32 to vector<8x8xf32>
    %155 = arith.mulf %153, %154 : vector<8x8xf32>
    %156 = arith.addf %155, %11 : vector<8x8xf32>
    %cst_53 = arith.constant dense<0xFF800000> : vector<8xf32>
    %157 = vector.multi_reduction <maximumf>, %156, %cst_53 [1] : vector<8x8xf32> to vector<8xf32>
    %158 = vector.shape_cast %157 : vector<8xf32> to vector<8x1xf32>
    %159 = vector.broadcast %158 : vector<8x1xf32> to vector<8x8xf32>
    %160 = arith.subf %156, %159 : vector<8x8xf32>
    %161 = math.exp %160 : vector<8x8xf32>
    %cst_54 = arith.constant dense<0.000000e+00> : vector<8xf32>
    %162 = vector.multi_reduction <add>, %161, %cst_54 [1] : vector<8x8xf32> to vector<8xf32>
    %163 = vector.shape_cast %162 : vector<8xf32> to vector<8x1xf32>
    %164 = tpu.reciprocal %163 {approx = true} : vector<8x1xf32> -> vector<8x1xf32>
    %165 = vector.broadcast %164 : vector<8x1xf32> to vector<8x8xf32>
    %166 = arith.mulf %161, %165 : vector<8x8xf32>
    %167 = arith.truncf %166 : vector<8x8xf32> to vector<8x8xbf16>
    %168 = vector.extract_strided_slice %126 {offsets = [0, 8], sizes = [8, 8], strides = [1, 1]} : vector<8x32xf32> to vector<8x8xf32>
    %169 = arith.truncf %168 : vector<8x8xf32> to vector<8x8xbf16>
    %cst_55 = arith.constant dense<0.000000e+00> : vector<8x8xf32>
    %170 = tpu.matmul %167, %169, %cst_55 {dimension_numbers = #tpu.dot_dimension_numbers<[1], [0], [0], [1], [0, 0, 1, 1], [], []>} : vector<8x8xbf16>, vector<8x8xbf16>, vector<8x8xf32> -> vector<8x8xf32>
    %171 = vector.extract_strided_slice %124 {offsets = [0, 16], sizes = [8, 8], strides = [1, 1]} : vector<8x32xf32> to vector<8x8xf32>
    %172 = arith.truncf %171 : vector<8x8xf32> to vector<8x8xbf16>
    %173 = vector.extract_strided_slice %125 {offsets = [0, 16], sizes = [8, 8], strides = [1, 1]} : vector<8x32xf32> to vector<8x8xf32>
    %174 = arith.truncf %173 : vector<8x8xf32> to vector<8x8xbf16>
    %cst_56 = arith.constant dense<0.000000e+00> : vector<8x8xf32>
    %175 = tpu.matmul %172, %174, %cst_56 {dimension_numbers = #tpu.dot_dimension_numbers<[1], [1], [0], [0], [0, 0, 1, 0], [], []>} : vector<8x8xbf16>, vector<8x8xbf16>, vector<8x8xf32> -> vector<8x8xf32>
    %cst_57 = arith.constant 0.353553385 : f32
    %176 = vector.broadcast %cst_57 : f32 to vector<8x8xf32>
    %177 = arith.mulf %175, %176 : vector<8x8xf32>
    %178 = arith.addf %177, %11 : vector<8x8xf32>
    %cst_58 = arith.constant dense<0xFF800000> : vector<8xf32>
    %179 = vector.multi_reduction <maximumf>, %178, %cst_58 [1] : vector<8x8xf32> to vector<8xf32>
    %180 = vector.shape_cast %179 : vector<8xf32> to vector<8x1xf32>
    %181 = vector.broadcast %180 : vector<8x1xf32> to vector<8x8xf32>
    %182 = arith.subf %178, %181 : vector<8x8xf32>
    %183 = math.exp %182 : vector<8x8xf32>
    %cst_59 = arith.constant dense<0.000000e+00> : vector<8xf32>
    %184 = vector.multi_reduction <add>, %183, %cst_59 [1] : vector<8x8xf32> to vector<8xf32>
    %185 = vector.shape_cast %184 : vector<8xf32> to vector<8x1xf32>
    %186 = tpu.reciprocal %185 {approx = true} : vector<8x1xf32> -> vector<8x1xf32>
    %187 = vector.broadcast %186 : vector<8x1xf32> to vector<8x8xf32>
    %188 = arith.mulf %183, %187 : vector<8x8xf32>
    %189 = arith.truncf %188 : vector<8x8xf32> to vector<8x8xbf16>
    %190 = vector.extract_strided_slice %126 {offsets = [0, 16], sizes = [8, 8], strides = [1, 1]} : vector<8x32xf32> to vector<8x8xf32>
    %191 = arith.truncf %190 : vector<8x8xf32> to vector<8x8xbf16>
    %cst_60 = arith.constant dense<0.000000e+00> : vector<8x8xf32>
    %192 = tpu.matmul %189, %191, %cst_60 {dimension_numbers = #tpu.dot_dimension_numbers<[1], [0], [0], [1], [0, 0, 1, 1], [], []>} : vector<8x8xbf16>, vector<8x8xbf16>, vector<8x8xf32> -> vector<8x8xf32>
    %193 = vector.extract_strided_slice %124 {offsets = [0, 24], sizes = [8, 8], strides = [1, 1]} : vector<8x32xf32> to vector<8x8xf32>
    %194 = arith.truncf %193 : vector<8x8xf32> to vector<8x8xbf16>
    %195 = vector.extract_strided_slice %125 {offsets = [0, 24], sizes = [8, 8], strides = [1, 1]} : vector<8x32xf32> to vector<8x8xf32>
    %196 = arith.truncf %195 : vector<8x8xf32> to vector<8x8xbf16>
    %cst_61 = arith.constant dense<0.000000e+00> : vector<8x8xf32>
    %197 = tpu.matmul %194, %196, %cst_61 {dimension_numbers = #tpu.dot_dimension_numbers<[1], [1], [0], [0], [0, 0, 1, 0], [], []>} : vector<8x8xbf16>, vector<8x8xbf16>, vector<8x8xf32> -> vector<8x8xf32>
    %cst_62 = arith.constant 0.353553385 : f32
    %198 = vector.broadcast %cst_62 : f32 to vector<8x8xf32>
    %199 = arith.mulf %197, %198 : vector<8x8xf32>
    %200 = arith.addf %199, %11 : vector<8x8xf32>
    %cst_63 = arith.constant dense<0xFF800000> : vector<8xf32>
    %201 = vector.multi_reduction <maximumf>, %200, %cst_63 [1] : vector<8x8xf32> to vector<8xf32>
    %202 = vector.shape_cast %201 : vector<8xf32> to vector<8x1xf32>
    %203 = vector.broadcast %202 : vector<8x1xf32> to vector<8x8xf32>
    %204 = arith.subf %200, %203 : vector<8x8xf32>
    %205 = math.exp %204 : vector<8x8xf32>
    %cst_64 = arith.constant dense<0.000000e+00> : vector<8xf32>
    %206 = vector.multi_reduction <add>, %205, %cst_64 [1] : vector<8x8xf32> to vector<8xf32>
    %207 = vector.shape_cast %206 : vector<8xf32> to vector<8x1xf32>
    %208 = tpu.reciprocal %207 {approx = true} : vector<8x1xf32> -> vector<8x1xf32>
    %209 = vector.broadcast %208 : vector<8x1xf32> to vector<8x8xf32>
    %210 = arith.mulf %205, %209 : vector<8x8xf32>
    %211 = arith.truncf %210 : vector<8x8xf32> to vector<8x8xbf16>
    %212 = vector.extract_strided_slice %126 {offsets = [0, 24], sizes = [8, 8], strides = [1, 1]} : vector<8x32xf32> to vector<8x8xf32>
    %213 = arith.truncf %212 : vector<8x8xf32> to vector<8x8xbf16>
    %cst_65 = arith.constant dense<0.000000e+00> : vector<8x8xf32>
    %214 = tpu.matmul %211, %213, %cst_65 {dimension_numbers = #tpu.dot_dimension_numbers<[1], [0], [0], [1], [0, 0, 1, 1], [], []>} : vector<8x8xbf16>, vector<8x8xbf16>, vector<8x8xf32> -> vector<8x8xf32>
    %215 = tpu.concatenate %148, %170, %192, %214 in 1 : vector<8x8xf32>, vector<8x8xf32>, vector<8x8xf32>, vector<8x8xf32> -> vector<8x32xf32>
    %216 = tpu.concatenate %123, %215 in 0 : vector<8x32xf32>, vector<8x32xf32> -> vector<16x32xf32>
    %217 = arith.truncf %216 : vector<16x32xf32> to vector<16x32xbf16>
    %cst_66 = arith.constant dense<0.000000e+00> : vector<16x32xf32>
    %218 = tpu.matmul %217, %21, %cst_66 {dimension_numbers = #tpu.dot_dimension_numbers<[1], [1], [0], [0], [0, 0, 1, 0], [], []>} : vector<16x32xbf16>, vector<32x32xbf16>, vector<16x32xf32> -> vector<16x32xf32>
    %219 = vector.broadcast %23 : vector<1x32xf32> to vector<16x32xf32>
    %220 = arith.addf %218, %219 : vector<16x32xf32>
    %221 = arith.addf %3, %220 : vector<16x32xf32>
    %c0_67 = arith.constant 0 : index
    %c0_68 = arith.constant 0 : index
    %c0_69 = arith.constant 0 : index
    %222 = vector.load %arg9[%c0_67, %c0_68, %c0_69] : memref<1x1x32xf32, #tpu.memory_space<vmem>>, vector<1x1x32xf32>
    %223 = vector.shape_cast %222 : vector<1x1x32xf32> to vector<1x32xf32>
    %c0_70 = arith.constant 0 : index
    %c0_71 = arith.constant 0 : index
    %c0_72 = arith.constant 0 : index
    %224 = vector.load %arg10[%c0_70, %c0_71, %c0_72] : memref<1x1x32xf32, #tpu.memory_space<vmem>>, vector<1x1x32xf32>
    %225 = vector.shape_cast %224 : vector<1x1x32xf32> to vector<1x32xf32>
    %cst_73 = arith.constant dense<0.000000e+00> : vector<16xf32>
    %226 = vector.multi_reduction <add>, %221, %cst_73 [1] : vector<16x32xf32> to vector<16xf32>
    %227 = vector.shape_cast %226 : vector<16xf32> to vector<16x1xf32>
    %cst_74 = arith.constant 3.200000e+01 : f32
    %228 = vector.broadcast %cst_74 : f32 to vector<16x1xf32>
    %229 = arith.divf %227, %228 : vector<16x1xf32>
    %230 = vector.broadcast %229 : vector<16x1xf32> to vector<16x32xf32>
    %231 = arith.subf %221, %230 : vector<16x32xf32>
    %232 = arith.mulf %231, %231 : vector<16x32xf32>
    %cst_75 = arith.constant dense<0.000000e+00> : vector<16xf32>
    %233 = vector.multi_reduction <add>, %232, %cst_75 [1] : vector<16x32xf32> to vector<16xf32>
    %234 = vector.shape_cast %233 : vector<16xf32> to vector<16x1xf32>
    %cst_76 = arith.constant 3.200000e+01 : f32
    %235 = vector.broadcast %cst_76 : f32 to vector<16x1xf32>
    %236 = arith.divf %234, %235 : vector<16x1xf32>
    %237 = vector.broadcast %229 : vector<16x1xf32> to vector<16x32xf32>
    %238 = arith.subf %221, %237 : vector<16x32xf32>
    %cst_77 = arith.constant 9.99999974E-6 : f32
    %239 = vector.broadcast %cst_77 : f32 to vector<16x1xf32>
    %240 = arith.addf %236, %239 : vector<16x1xf32>
    %241 = math.rsqrt %240 : vector<16x1xf32>
    %242 = vector.broadcast %241 : vector<16x1xf32> to vector<16x32xf32>
    %243 = arith.mulf %238, %242 : vector<16x32xf32>
    %244 = vector.broadcast %223 : vector<1x32xf32> to vector<16x32xf32>
    %245 = arith.mulf %243, %244 : vector<16x32xf32>
    %246 = vector.broadcast %225 : vector<1x32xf32> to vector<16x32xf32>
    %247 = arith.addf %245, %246 : vector<16x32xf32>
    %c0_78 = arith.constant 0 : index
    %c0_79 = arith.constant 0 : index
    %c0_80 = arith.constant 0 : index
    %248 = vector.load %arg11[%c0_78, %c0_79, %c0_80] : memref<1x64x32xbf16, #tpu.memory_space<vmem>>, vector<1x64x32xbf16>
    %249 = vector.shape_cast %248 : vector<1x64x32xbf16> to vector<64x32xbf16>
    %c0_81 = arith.constant 0 : index
    %c0_82 = arith.constant 0 : index
    %c0_83 = arith.constant 0 : index
    %250 = vector.load %arg12[%c0_81, %c0_82, %c0_83] : memref<1x1x64xf32, #tpu.memory_space<vmem>>, vector<1x1x64xf32>
    %251 = vector.shape_cast %250 : vector<1x1x64xf32> to vector<1x64xf32>
    %c0_84 = arith.constant 0 : index
    %c0_85 = arith.constant 0 : index
    %c0_86 = arith.constant 0 : index
    %252 = vector.load %arg13[%c0_84, %c0_85, %c0_86] : memref<1x32x64xbf16, #tpu.memory_space<vmem>>, vector<1x32x64xbf16>
    %253 = vector.shape_cast %252 : vector<1x32x64xbf16> to vector<32x64xbf16>
    %c0_87 = arith.constant 0 : index
    %c0_88 = arith.constant 0 : index
    %c0_89 = arith.constant 0 : index
    %254 = vector.load %arg14[%c0_87, %c0_88, %c0_89] : memref<1x1x32xf32, #tpu.memory_space<vmem>>, vector<1x1x32xf32>
    %255 = vector.shape_cast %254 : vector<1x1x32xf32> to vector<1x32xf32>
    %256 = arith.truncf %247 : vector<16x32xf32> to vector<16x32xbf16>
    %cst_90 = arith.constant dense<0.000000e+00> : vector<16x64xf32>
    %257 = tpu.matmul %256, %249, %cst_90 {dimension_numbers = #tpu.dot_dimension_numbers<[1], [1], [0], [0], [0, 0, 1, 0], [], []>} : vector<16x32xbf16>, vector<64x32xbf16>, vector<16x64xf32> -> vector<16x64xf32>
    %258 = vector.broadcast %251 : vector<1x64xf32> to vector<16x64xf32>
    %259 = arith.addf %257, %258 : vector<16x64xf32>
    %cst_91 = arith.constant 0.000000e+00 : f32
    %260 = vector.broadcast %cst_91 : f32 to vector<16x64xf32>
    %261 = arith.maximumf %259, %260 : vector<16x64xf32>
    %262 = arith.truncf %261 : vector<16x64xf32> to vector<16x64xbf16>
    %cst_92 = arith.constant dense<0.000000e+00> : vector<16x32xf32>
    %263 = tpu.matmul %262, %253, %cst_92 {dimension_numbers = #tpu.dot_dimension_numbers<[1], [1], [0], [0], [0, 0, 1, 0], [], []>} : vector<16x64xbf16>, vector<32x64xbf16>, vector<16x32xf32> -> vector<16x32xf32>
    %264 = vector.broadcast %255 : vector<1x32xf32> to vector<16x32xf32>
    %265 = arith.addf %263, %264 : vector<16x32xf32>
    %266 = arith.addf %247, %265 : vector<16x32xf32>
    %c0_93 = arith.constant 0 : index
    %c0_94 = arith.constant 0 : index
    %c0_95 = arith.constant 0 : index
    %267 = vector.load %arg15[%c0_93, %c0_94, %c0_95] : memref<1x1x32xf32, #tpu.memory_space<vmem>>, vector<1x1x32xf32>
    %268 = vector.shape_cast %267 : vector<1x1x32xf32> to vector<1x32xf32>
    %c0_96 = arith.constant 0 : index
    %c0_97 = arith.constant 0 : index
    %c0_98 = arith.constant 0 : index
    %269 = vector.load %arg16[%c0_96, %c0_97, %c0_98] : memref<1x1x32xf32, #tpu.memory_space<vmem>>, vector<1x1x32xf32>
    %270 = vector.shape_cast %269 : vector<1x1x32xf32> to vector<1x32xf32>
    %cst_99 = arith.constant dense<0.000000e+00> : vector<16xf32>
    %271 = vector.multi_reduction <add>, %266, %cst_99 [1] : vector<16x32xf32> to vector<16xf32>
    %272 = vector.shape_cast %271 : vector<16xf32> to vector<16x1xf32>
    %cst_100 = arith.constant 3.200000e+01 : f32
    %273 = vector.broadcast %cst_100 : f32 to vector<16x1xf32>
    %274 = arith.divf %272, %273 : vector<16x1xf32>
    %275 = vector.broadcast %274 : vector<16x1xf32> to vector<16x32xf32>
    %276 = arith.subf %266, %275 : vector<16x32xf32>
    %277 = arith.mulf %276, %276 : vector<16x32xf32>
    %cst_101 = arith.constant dense<0.000000e+00> : vector<16xf32>
    %278 = vector.multi_reduction <add>, %277, %cst_101 [1] : vector<16x32xf32> to vector<16xf32>
    %279 = vector.shape_cast %278 : vector<16xf32> to vector<16x1xf32>
    %cst_102 = arith.constant 3.200000e+01 : f32
    %280 = vector.broadcast %cst_102 : f32 to vector<16x1xf32>
    %281 = arith.divf %279, %280 : vector<16x1xf32>
    %282 = vector.broadcast %274 : vector<16x1xf32> to vector<16x32xf32>
    %283 = arith.subf %266, %282 : vector<16x32xf32>
    %cst_103 = arith.constant 9.99999974E-6 : f32
    %284 = vector.broadcast %cst_103 : f32 to vector<16x1xf32>
    %285 = arith.addf %281, %284 : vector<16x1xf32>
    %286 = math.rsqrt %285 : vector<16x1xf32>
    %287 = vector.broadcast %286 : vector<16x1xf32> to vector<16x32xf32>
    %288 = arith.mulf %283, %287 : vector<16x32xf32>
    %289 = vector.broadcast %268 : vector<1x32xf32> to vector<16x32xf32>
    %290 = arith.mulf %288, %289 : vector<16x32xf32>
    %291 = vector.broadcast %270 : vector<1x32xf32> to vector<16x32xf32>
    %292 = arith.addf %290, %291 : vector<16x32xf32>
    %c0_104 = arith.constant 0 : index
    %c0_105 = arith.constant 0 : index
    %293 = vector.load %arg20[%c0_104, %c0_105] : memref<16x32xf32, #tpu.memory_space<vmem>>, vector<16x32xf32>
    tpu.vector_store %arg20[%c0_104, %c0_105], %292 {strides = array<i32>} : memref<16x32xf32, #tpu.memory_space<vmem>>, vector<16x32xf32>,
    %c1_i32 = arith.constant 1 : i32
    %294 = arith.cmpi eq, %arg0, %c1_i32 : i32
    %295 = arith.extui %294 : i1 to i32
    %c0_i32_106 = arith.constant 0 : i32
    %296 = arith.cmpi ne, %295, %c0_i32_106 : i32
    scf.if %296 {
      %c0_107 = arith.constant 0 : index
      %c0_108 = arith.constant 0 : index
      %297 = vector.load %arg17[%c0_107, %c0_108] : memref<1x32xf32, #tpu.memory_space<vmem>>, vector<1x32xf32>
      %c0_109 = arith.constant 0 : index
      %c0_110 = arith.constant 0 : index
      %298 = vector.load %arg18[%c0_109, %c0_110] : memref<1x32xf32, #tpu.memory_space<vmem>>, vector<1x32xf32>
      %cst_111 = arith.constant dense<0.000000e+00> : vector<16xf32>
      %299 = vector.multi_reduction <add>, %292, %cst_111 [1] : vector<16x32xf32> to vector<16xf32>
      %300 = vector.shape_cast %299 : vector<16xf32> to vector<16x1xf32>
      %cst_112 = arith.constant 3.200000e+01 : f32
      %301 = vector.broadcast %cst_112 : f32 to vector<16x1xf32>
      %302 = arith.divf %300, %301 : vector<16x1xf32>
      %303 = vector.broadcast %302 : vector<16x1xf32> to vector<16x32xf32>
      %304 = arith.subf %292, %303 : vector<16x32xf32>
      %305 = arith.mulf %304, %304 : vector<16x32xf32>
      %cst_113 = arith.constant dense<0.000000e+00> : vector<16xf32>
      %306 = vector.multi_reduction <add>, %305, %cst_113 [1] : vector<16x32xf32> to vector<16xf32>
      %307 = vector.shape_cast %306 : vector<16xf32> to vector<16x1xf32>
      %cst_114 = arith.constant 3.200000e+01 : f32
      %308 = vector.broadcast %cst_114 : f32 to vector<16x1xf32>
      %309 = arith.divf %307, %308 : vector<16x1xf32>
      %310 = vector.broadcast %302 : vector<16x1xf32> to vector<16x32xf32>
      %311 = arith.subf %292, %310 : vector<16x32xf32>
      %cst_115 = arith.constant 9.99999974E-6 : f32
      %312 = vector.broadcast %cst_115 : f32 to vector<16x1xf32>
      %313 = arith.addf %309, %312 : vector<16x1xf32>
      %314 = math.rsqrt %313 : vector<16x1xf32>
      %315 = vector.broadcast %314 : vector<16x1xf32> to vector<16x32xf32>
      %316 = arith.mulf %311, %315 : vector<16x32xf32>
      %317 = vector.broadcast %297 : vector<1x32xf32> to vector<16x32xf32>
      %318 = arith.mulf %316, %317 : vector<16x32xf32>
      %319 = vector.broadcast %298 : vector<1x32xf32> to vector<16x32xf32>
      %320 = arith.addf %318, %319 : vector<16x32xf32>
      %c0_116 = arith.constant 0 : index
      %c0_117 = arith.constant 0 : index
      %321 = vector.load %arg19[%c0_116, %c0_117] : memref<16x32xf32, #tpu.memory_space<vmem>>, vector<16x32xf32>
      tpu.vector_store %arg19[%c0_116, %c0_117], %320 {strides = array<i32>} : memref<16x32xf32, #tpu.memory_space<vmem>>, vector<16x32xf32>,
    } else {
    }
    return
  }
  func.func @transform_0(%arg0: i32) -> (i32, i32) {
    %c0_i32 = arith.constant 0 : i32
    %c0_i32_0 = arith.constant 0 : i32
    %c0_i32_1 = arith.constant 0 : i32
    return %c0_i32, %c0_i32_0 : i32, i32
  }
  func.func @transform_1(%arg0: i32) -> (i32, i32, i32) {
    %c0_i32 = arith.constant 0 : i32
    %c0_i32_0 = arith.constant 0 : i32
    %c0_i32_1 = arith.constant 0 : i32
    %c0_i32_2 = arith.constant 0 : i32
    return %c0_i32, %c0_i32_0, %c0_i32_1 : i32, i32, i32
  }
  func.func @transform_2(%arg0: i32) -> (i32, i32, i32) {
    %c0_i32 = arith.constant 0 : i32
    %c0_i32_0 = arith.constant 0 : i32
    %c0_i32_1 = arith.constant 0 : i32
    return %arg0, %c0_i32, %c0_i32_0 : i32, i32, i32
  }
  func.func @transform_3(%arg0: i32) -> (i32, i32, i32) {
    %c0_i32 = arith.constant 0 : i32
    %c0_i32_0 = arith.constant 0 : i32
    %c0_i32_1 = arith.constant 0 : i32
    return %arg0, %c0_i32, %c0_i32_0 : i32, i32, i32
  }
  func.func @transform_4(%arg0: i32) -> (i32, i32, i32) {
    %c0_i32 = arith.constant 0 : i32
    %c0_i32_0 = arith.constant 0 : i32
    %c0_i32_1 = arith.constant 0 : i32
    return %arg0, %c0_i32, %c0_i32_0 : i32, i32, i32
  }
  func.func @transform_5(%arg0: i32) -> (i32, i32, i32) {
    %c0_i32 = arith.constant 0 : i32
    %c0_i32_0 = arith.constant 0 : i32
    %c0_i32_1 = arith.constant 0 : i32
    return %arg0, %c0_i32, %c0_i32_0 : i32, i32, i32
  }
  func.func @transform_6(%arg0: i32) -> (i32, i32, i32) {
    %c0_i32 = arith.constant 0 : i32
    %c0_i32_0 = arith.constant 0 : i32
    %c0_i32_1 = arith.constant 0 : i32
    return %arg0, %c0_i32, %c0_i32_0 : i32, i32, i32
  }
  func.func @transform_7(%arg0: i32) -> (i32, i32, i32) {
    %c0_i32 = arith.constant 0 : i32
    %c0_i32_0 = arith.constant 0 : i32
    %c0_i32_1 = arith.constant 0 : i32
    return %arg0, %c0_i32, %c0_i32_0 : i32, i32, i32
  }
  func.func @transform_8(%arg0: i32) -> (i32, i32, i32) {
    %c0_i32 = arith.constant 0 : i32
    %c0_i32_0 = arith.constant 0 : i32
    %c0_i32_1 = arith.constant 0 : i32
    return %arg0, %c0_i32, %c0_i32_0 : i32, i32, i32
  }
  func.func @transform_9(%arg0: i32) -> (i32, i32, i32) {
    %c0_i32 = arith.constant 0 : i32
    %c0_i32_0 = arith.constant 0 : i32
    %c0_i32_1 = arith.constant 0 : i32
    return %arg0, %c0_i32, %c0_i32_0 : i32, i32, i32
  }
  func.func @transform_10(%arg0: i32) -> (i32, i32, i32) {
    %c0_i32 = arith.constant 0 : i32
    %c0_i32_0 = arith.constant 0 : i32
    %c0_i32_1 = arith.constant 0 : i32
    return %arg0, %c0_i32, %c0_i32_0 : i32, i32, i32
  }
  func.func @transform_11(%arg0: i32) -> (i32, i32, i32) {
    %c0_i32 = arith.constant 0 : i32
    %c0_i32_0 = arith.constant 0 : i32
    %c0_i32_1 = arith.constant 0 : i32
    return %arg0, %c0_i32, %c0_i32_0 : i32, i32, i32
  }
  func.func @transform_12(%arg0: i32) -> (i32, i32, i32) {
    %c0_i32 = arith.constant 0 : i32
    %c0_i32_0 = arith.constant 0 : i32
    %c0_i32_1 = arith.constant 0 : i32
    return %arg0, %c0_i32, %c0_i32_0 : i32, i32, i32
  }
  func.func @transform_13(%arg0: i32) -> (i32, i32, i32) {
    %c0_i32 = arith.constant 0 : i32
    %c0_i32_0 = arith.constant 0 : i32
    %c0_i32_1 = arith.constant 0 : i32
    return %arg0, %c0_i32, %c0_i32_0 : i32, i32, i32
  }
  func.func @transform_14(%arg0: i32) -> (i32, i32, i32) {
    %c0_i32 = arith.constant 0 : i32
    %c0_i32_0 = arith.constant 0 : i32
    %c0_i32_1 = arith.constant 0 : i32
    return %arg0, %c0_i32, %c0_i32_0 : i32, i32, i32
  }
  func.func @transform_15(%arg0: i32) -> (i32, i32, i32) {
    %c0_i32 = arith.constant 0 : i32
    %c0_i32_0 = arith.constant 0 : i32
    %c0_i32_1 = arith.constant 0 : i32
    return %arg0, %c0_i32, %c0_i32_0 : i32, i32, i32
  }
  func.func @transform_16(%arg0: i32) -> (i32, i32) {
    %c0_i32 = arith.constant 0 : i32
    %c0_i32_0 = arith.constant 0 : i32
    %c0_i32_1 = arith.constant 0 : i32
    return %c0_i32, %c0_i32_0 : i32, i32
  }
  func.func @transform_17(%arg0: i32) -> (i32, i32) {
    %c0_i32 = arith.constant 0 : i32
    %c0_i32_0 = arith.constant 0 : i32
    %c0_i32_1 = arith.constant 0 : i32
    return %c0_i32, %c0_i32_0 : i32, i32
  }
  func.func @transform_18(%arg0: i32) -> (i32, i32) {
    %c0_i32 = arith.constant 0 : i32
    %c0_i32_0 = arith.constant 0 : i32
    %c0_i32_1 = arith.constant 0 : i32
    return %c0_i32, %c0_i32_0 : i32, i32
  }
}

</mosaic_0001>

<bundles_post_ra>
// kernel: seq2seq_transformer_forward.2
= control target key start
LH: loop header
LB: loop body
LE: loop exit
PB: predicated region body
PF: predicated region fallthrough
CT: control target
= control target key end

     0   :  { %s2901_s27 = smov 0   ;;  %s3300_s0 = inlined_call_operand.vmem [shape: f32[16,32], index: 0, kind: input, shape index: {}]   ;;  %s3301_s1 = inlined_call_operand.vmem [shape: f32[2,1,8], index: 1, kind: input, shape index: {}]   ;;  %s3302_s2 = inlined_call_operand.vmem [shape: bf16[2,32,32], index: 2, kind: input, shape index: {}]   ;;  %s3303_s3 = inlined_call_operand.vmem [shape: f32[2,1,32], index: 3, kind: input, shape index: {}]   ;;  %s3304_s4 = inlined_call_operand.vmem [shape: bf16[2,64,32], index: 4, kind: input, shape index: {}]   ;;  %s3305_s5 = inlined_call_operand.vmem [shape: f32[2,1,64], index: 5, kind: input, shape index: {}]   ;;  %s3306_s6 = inlined_call_operand.vmem [shape: bf16[2,32,32], index: 6, kind: input, shape index: {}]   ;;  %s3307_s7 = inlined_call_operand.vmem [shape: f32[2,1,32], index: 7, kind: input, shape index: {}]   ;;  %s3308_s8 = inlined_call_operand.vmem [shape: f32[2,1,32], index: 8, kind: input, shape index: {}]   ;;  %s3309_s9 = inlined_call_operand.vmem [shape: f32[2,1,32], index: 9, kind: input, shape index: {}]   ;;  %s3310_s10 = inlined_call_operand.vmem [shape: bf16[2,64,32], index: 10, kind: input, shape index: {}]   ;;  %s3311_s11 = inlined_call_operand.vmem [shape: f32[2,1,64], index: 11, kind: input, shape index: {}]   ;;  %s3312_s12 = inlined_call_operand.vmem [shape: bf16[2,32,64], index: 12, kind: input, shape index: {}]   ;;  %s3313_s13 = inlined_call_operand.vmem [shape: f32[2,1,32], index: 13, kind: input, shape index: {}]   ;;  %s3314_s14 = inlined_call_operand.vmem [shape: f32[2,1,32], index: 14, kind: input, shape index: {}]   ;;  %s3315_s15 = inlined_call_operand.vmem [shape: f32[2,1,32], index: 15, kind: input, shape index: {}]   ;;  %s3316_s16 = inlined_call_operand.vmem [shape: f32[1,32], index: 16, kind: input, shape index: {}]   ;;  %s3317_s17 = inlined_call_operand.vmem [shape: f32[1,32], index: 17, kind: input, shape index: {}]   ;;  %s3318_s18 = inlined_call_operand.vmem [shape: f32[16,32], index: 18, kind: output, shape index: {}]  }
   0x1   :  { %3325 = sst [smem:[#allocation6_spill]] %s3300_s0 }
   0x2   :  { %3326 = sst [smem:[#allocation7_spill]] %s3301_s1 }
   0x3   :  { %3327 = sst [smem:[#allocation8_spill]] %s3302_s2 }
   0x4   :  { %3328 = sst [smem:[#allocation9_spill]] %s3303_s3 }
   0x5   :  { %3329 = sst [smem:[#allocation10_spill]] %s3304_s4 }
   0x6   :  { %3330 = sst [smem:[#allocation11_spill]] %s3306_s6 }
   0x7   :  { %3331 = sst [smem:[#allocation12_spill]] %s3316_s16 }
   0x8   :  { %3332 = sst [smem:[#allocation13_spill]] %s3317_s17 }
   0x9   :  { %3333 = sst [smem:[#allocation14_spill]] %s3318_s18 }
   0xa LB: > { %3334 = sst [smem:[#allocation3_spill]] %s2792_s27  ;;  %s2907_s28 = sadd.s32 4294967295, %s2792_s27   ;;  %s2792_s27 = sphi %s2901_s27, %s28_s27  }
   0xb   : > { %3335 = sst [smem:[#allocation4_spill]] %s2907_s28  ;;  %p2429_p0 = scmp.ge.s32.totalorder %s2792_s27, 1 }
   0xc   : > { %p619_p1 = scmp.lt.s32.totalorder %s2792_s27, 3 }
   0xe   : > { %p620_p2 = pnand %p2429_p0, %p619_p1 }
  0x10   : > { %623 = sbr.rel (%p620_p2) target bundleno = 3402 (0xd4a), region = 92 }
  0x17   : > { %p715_p3 = scmp.lt.s32.totalorder %s2907_s28, 1  ;;  %s3337_s22 = sld [smem:[#allocation8_spill]] }
  0x18   : > { %s3339_s4 = sld [smem:[#allocation10_spill]]  ;;  %s3340_s6 = sld [smem:[#allocation11_spill]] }
  0x19   : > { %s2913_s29 = scalar_select %p715_p3, %s2907_s28, 1 }
  0x1a   : > { %s3341_s20 = sld [smem:[#allocation4_spill]] }
  0x1b   : > { %s2493_s30 = sshll.u32 %s2913_s29, 4  ;;  %s2494_s23 = sshll.u32 %s2913_s29, 5 }
  0x1c   : > { %s2955_s27 = scalar_lea.vmem %s3310_s10, %s2494_s23  ;;  %s752_s17 = scalar_lea.vmem %s3311_s11, %s2913_s29 }
  0x1d   : > { %s2923_s2 = scalar_lea.vmem %s3337_s22, %s2493_s30  ;;  %s2964_s19 = scalar_lea.vmem %s3312_s12, %s2493_s30 }
  0x1e   : > { %3338 = sst [smem:[#allocation5_spill]] %s2923_s2  ;;  %s2929_s26 = scalar_lea.vmem %s3339_s4, %s2494_s23 }
  0x1f   : > { %s2938_s0 = scalar_lea.vmem %s3340_s6, %s2493_s30  ;;  %s760_s3 = scalar_lea.vmem %s3313_s13, %s2913_s29 }
  0x20   : > { %s763_s4 = scalar_lea.vmem %s3314_s14, %s2913_s29  ;;  %s766_s18 = scalar_lea.vmem %s3315_s15, %s2913_s29 }
  0x21   : > { %p2440_p4 = scmp.ne.s32.totalorder %s3341_s20, 0 }
  0x22   : > { %s3342_s6 = sld [smem:[#allocation6_spill]] (!%p2440_p4)  ;;  %vm774_vm0 = vcmask (!%p2440_p4), 261120  }
  0x23   : > { %771 = sbr.rel (%p2440_p4) target bundleno = 42 (0x2a), region = 96 }
  0x28   : > { %v772_v0 = vld [vmem:[%s3342_s6] sm:$0xff] (!%p2440_p4)  ;;  %v773_v1 = vld [vmem:[%s3342_s6 + $0x8] sm:$0xff] (!%p2440_p4) }
  0x29   : > { %775 = vst.msk [vmem:[#allocation2] sm:$0xff] (!%p2440_p4), %vm774_vm0, %v772_v0  ;;  %776 = vst.msk [vmem:[#allocation2 + $0x8] sm:$0xff] (!%p2440_p4), %vm774_vm0, %v773_v1 }
  0x2a PF: > { %vm830_vm1 = vcmask 261120   ;;  %s3343_s21 = sld [smem:[#allocation5_spill]]  ;;  %v2794_v2 = vmov 0.0   ;;  %v2728_v3 = vld [vmem:[%s2929_s26] sm:$0xff]   ;;  %vm2795_vm2 = vmmov 0   ;;  %v2729_v5 = vld [vmem:[%s2929_s26 + $0x8] sm:$0xff]   ;;  %s3344_s22 = scalar_lea.vmem %s3305_s5, %s2913_s29 }
  0x2b   : > { %2557 = vmatprep.subr.bf16.mxu1 %v2794_v2  ;;  %2549 = vmatprep.subr.bf16.mxu0 %v2794_v2  ;;  %v908_v4 = vsel %vm830_vm1, %v2728_v3, 0  ;;  %v911_v9 = vsel %vm830_vm1, %v2729_v5, 0  ;;  %v2730_v11 = vld [vmem:[%s2929_s26 + $0x10] sm:$0xff]   ;;  %v2732_v16 = vld [vmem:[%s2929_s26 + $0x18] sm:$0xff]   ;;  %v2448_v22 = vld [vmem:[%s3344_s22] ss:$0 sm:$0xff]  ;;  %s3349_s22 = scalar_lea.vmem %s3308_s8, %s2913_s29 }
  0x2c   : > { %2565 = vmatprep.mubr.msk.bf16.mxu1 %vm2795_vm2, %v2794_v2  ;;  %2553 = vmatprep.mubr.msk.bf16.mxu0 %vm2795_vm2, %v2794_v2  ;;  %v914_v12 = vsel %vm830_vm1, %v2730_v11, 0  ;;  %v917_v17 = vsel %vm830_vm1, %v2732_v16, 0  ;;  %s3345_s2 = sld [smem:[#allocation9_spill]]  ;;  %vm962_vm3 = vcmask 64512   ;;  %s2796_s16 = smov 96   ;;  %vm1029_vm4 = vcmask 1043456  }
  0x2d   : > { %2558 = vmatpush3.bf16.xpose.msra.mxu1 %v908_v4  ;;  %s2797_s28 = smov 120   ;;  %s2798_s30 = smov 112   ;;  %vm1423_vm5 = vcmask 130048   ;;  %vm1425_vm6 = vcmask 195584   ;;  %vm2120_vm7 = vcmask 523264  }
  0x2e   : > { %2559 = vmatprep.subr.bf16.mxu1 %v2794_v2  ;;  %s2799_s1 = smov 104   ;;  %s3347_s20 = sld [smem:[#allocation7_spill]] }
  0x2f   : > { %s2800_s25 = smov 80  }
  0x30   : > { %v2731_v6 = vld [vmem:[%s3343_s21] sm:$0xff]   ;;  %v2733_v8 = vld [vmem:[%s3343_s21 + $0x8] sm:$0xff]   ;;  %s3348_s21 = scalar_lea.vmem %s3307_s7, %s2913_s29 }
  0x31   : > { %v835_v7 = vsel %vm830_vm1, %v2731_v6, 0  ;;  %v838_v10 = vsel %vm830_vm1, %v2733_v8, 0  ;;  %v3005_v13 = vld [vmem:[#allocation2] sm:$0xff]  ;;  %v3007_v14 = vld [vmem:[#allocation2 + $0x8] sm:$0xff] }
  0x32   : > { %2550 = vmatpush3.bf16.xpose.msra.mxu0 %v835_v7  ;;  %v813_v15 = vpack.c.bf16 %v3007_v14, %v3005_v13  ;;  %s3346_s23 = scalar_lea.vmem %s3345_s2, %s2913_s29  ;;  %s2801_s2 = smov 88  }
  0x33   : > { %2551 = vmatprep.subr.bf16.mxu0 %v2794_v2  ;;  %v2444_v27 = vld [vmem:[%s3346_s23] ss:$0 sm:$0xff]  ;;  %s2802_s23 = smov 72  }
  0x34   : > { %v3061_v40 = vld [vmem:[%s3347_s20] ss:$0 sm:$0xff] }
  0x35   : > { %2560 = vmatpush3.bf16.xpose.msra.mxu1 %v911_v9 }
  0x36   : > { %2561 = vmatprep.subr.bf16.mxu1 %v2794_v2 }
  0x3a   : > { %2552 = vmatpush3.bf16.xpose.msra.mxu0 %v838_v10 }
  0x3b   : > { %2569 = vmatprep.subr.bf16.mxu0 %v2794_v2 }
  0x3d   : > { %2562 = vmatpush3.bf16.xpose.msra.mxu1 %v914_v12 }
  0x3e   : > { %2563 = vmatprep.subr.bf16.mxu1 %v2794_v2 }
  0x41   : > { %2554 = vmatmul.mubr.msk.bf16.vlgmr.msra.gmra.mrb[0].mxu0 %vm830_vm1, %v813_v15 }
  0x42   : > { %2571 = vmatprep.mubr.msk.bf16.mxu0 %vm2795_vm2, %v2794_v2 }
  0x45   : > { %2564 = vmatpush3.bf16.xpose.msra.mxu1 %v917_v17 }
  0x46   : > { %2587 = vmatprep.subr.bf16.mxu1 %v2794_v2 }
  0x4c   : > { %2566 = vmatmul.mubr.msk.bf16.vlgmr.msra.gmra.mrb[0].mxu1 %vm830_vm1, %v813_v15 }
  0x4d   : > { %2589 = vmatprep.mubr.msk.bf16.mxu1 %vm2795_vm2, %v2794_v2 }
 0x114   : > { %v874_v18 = vpop.f32.mrb[0].mxu0 }
 0x115   : > { %v2555_v19 = vpop.f32.mrb[1].mxu0  ;;  %v875_v30 = vadd.f32 %v2444_v27, %v874_v18 }
 0x116   : > { %v877_v20 = vpop.f32.mrb[2].mxu0 }
 0x117   : > { %v2556_v21 = vpop.f32.mrb[3].mxu0  ;;  %v960_v32 = vpack.c.bf16 %v875_v30, %v875_v30  ;;  %v878_v35 = vadd.f32 %v2444_v27, %v877_v20 }
 0x119   : > { %v1427_v36 = vpack.c.bf16 %v878_v35, %v878_v35 }
 0x11f   : > { %v953_v23 = vpop.f32.mrb[0].mxu1 }
 0x120   : > { %v954_v24 = vadd.f32 %v2448_v22, %v953_v23  ;;  %v2567_v25 = vpop.f32.mrb[1].mxu1 }
 0x121   : > { %v956_v26 = vpop.f32.mrb[2].mxu1 }
 0x122   : > { %v3031_v28 = vpack.c.bf16 %v954_v24, %v954_v24  ;;  %v2568_v29 = vpop.f32.mrb[3].mxu1  ;;  %v957_v33 = vadd.f32 %v2448_v22, %v956_v26 }
 0x124   : > { %1024 = vrot.lane.b32.xlu1 %v3031_v28, %s2796_s16  ;;  %v967_v31 = vsel %vm962_vm3, %v3031_v28, 0  ;;  %v3049_v34 = vpack.c.bf16 %v957_v33, %v957_v33 }
 0x125   : > { %2570 = vmatpush3.bf16.xpose.msra.mxu0 %v967_v31 }
 0x126   : > { %2575 = vmatprep.subr.bf16.mxu0 %v2794_v2  ;;  %v1433_v1 = vsel %vm962_vm3, %v3049_v34, 0 }
 0x128   : > { %1076 = vrot.lane.b32.xlu1 %v3031_v28, %s2797_s28 }
 0x12c   : > { %1188 = vrot.lane.b32.xlu1 %v3031_v28, %s2798_s30  ;;  %2572 = vmatmul.mubr.msk.bf16.vlgmr.msra.gmra.mrb[4].mxu0 %vm962_vm3, %v960_v32 }
 0x12d   : > { %2577 = vmatprep.mubr.msk.bf16.mxu0 %vm2795_vm2, %v2794_v2 }
 0x130   : > { %1186 = vrot.lane.b32.xlu1 %v960_v32, %s2798_s30 }
 0x134   : > { %1300 = vrot.lane.b32.xlu1 %v3031_v28, %s2799_s1 }
 0x138   : > { %1298 = vrot.lane.b32.xlu1 %v960_v32, %s2799_s1 }
 0x13c   : > { %1541 = vrot.lane.b32.xlu1 %v3049_v34, %s2797_s28 }
 0x140   : > { %1539 = vrot.lane.b32.xlu1 %v1427_v36, %s2797_s28 }
 0x144   : > { %1651 = vrot.lane.b32.xlu1 %v1427_v36, %s2798_s30 }
 0x148   : > { %1763 = vrot.lane.b32.xlu1 %v1427_v36, %s2799_s1 }
 0x196   : > { %v1025_v37 = vpop.permute.xlu1 %1024 }
 0x197   : > { %v1031_v38 = vsel %vm1029_vm4, %v1025_v37, 0 }
 0x198   : > { %2576 = vmatpush3.bf16.msra.mxu0 %v1031_v38 }
 0x199   : > { %2581 = vmatprep.subr.bf16.mxu0 %v2794_v2 }
 0x19a   : > { %v1077_v54 = vpop.permute.xlu1 %1076 }
 0x19b   : > { %v1082_v57 = vsel %vm962_vm3, %v1077_v54, 0 }
 0x19e   : > { %v1189_v58 = vpop.permute.xlu1 %1188 }
 0x19f   : > { %v1194_v61 = vsel %vm962_vm3, %v1189_v58, 0 }
 0x1a2   : > { %v1187_v59 = vpop.permute.xlu1 %1186 }
 0x1a6   : > { %v1301_v62 = vpop.permute.xlu1 %1300 }
 0x1a7   : > { %v1306_v63 = vsel %vm962_vm3, %v1301_v62, 0 }
 0x1aa   : > { %v1299_v0 = vpop.permute.xlu1 %1298 }
 0x1ae   : > { %v1542_v3 = vpop.permute.xlu1 %1541 }
 0x1af   : > { %v1547_v4 = vsel %vm962_vm3, %v1542_v3, 0 }
 0x1b2   : > { %v1540_v6 = vpop.permute.xlu1 %1539 }
 0x1b6   : > { %v1652_v9 = vpop.permute.xlu1 %1651 }
 0x1ba   : > { %v1764_v11 = vpop.permute.xlu1 %1763 }
 0x1ff   : > { %v1003_v39 = vpop.f32.mrb[4].mxu0 }
 0x200   : > { %v1009_v41 = vmul.f32 0.35355338, %v1003_v39  ;;  %v2573_v42 = vpop.f32.mrb[5].mxu0 }
 0x201   : > { %v1006_v43 = vpop.f32.mrb[6].mxu0 }
 0x202   : > { %v2574_v44 = vpop.f32.mrb[7].mxu0  ;;  %v1010_v45 = vadd.f32 %v3061_v40, %v1009_v41  ;;  %v2443_v43 = vld [vmem:[%s3347_s20 + $0x1] ss:$0 sm:$0xff] }
 0x204   : > { %v1011_v46 = vsel %vm962_vm3, %v1010_v45, -inf }
 0x205   : > { %1012 = vmax.xlane.f32.xlu0 %v1011_v46 }
 0x292   : > { %v1013_v47 = vpop.xlane.xlu0 %1012 }
 0x293   : > { %v1014_v48 = vsub.f32 %v1010_v45, %v1013_v47 }
 0x295   : > { %v1015_v49 = vmul.f32 1.442695, %v1014_v48 }
 0x297   : > { %2742 = vpow2.f32 %v1015_v49 }
 0x2a1   : > { %v2743_v50 = vpop.eup %2742 }
 0x2a2   : > { %v1017_v51 = vsel %vm962_vm3, %v2743_v50, 0.0 }
 0x2a3   : > { %1018 = vadd.xlane.f32.xlu0 %v1017_v51 }
 0x2b9   : > { %1074 = vrot.lane.b32.xlu0 %v960_v32, %s2797_s28  ;;  %s2804_s28 = smov 16  }
 0x2bd   : > { %1653 = vrot.lane.b32.xlu0 %v3049_v34, %s2798_s30 }
 0x2c1   : > { %1765 = vrot.lane.b32.xlu0 %v3049_v34, %s2799_s1  ;;  %s3351_s1 = sld [smem:[#allocation4_spill]] }
 0x2c7   : > { %p2488_p5 = scmp.ne.s32.totalorder %s3351_s1, 1 }
 0x2c8   : > { %s3353_s26 = sld [smem:[#allocation13_spill]] (!%p2488_p5) }
 0x330   : > { %v1019_v52 = vpop.xlane.xlu0 %1018 }
 0x331   : > { %2744 = vrcp.f32 %v1019_v52 }
 0x334   : > { %v1075_v60 = vpop.permute.xlu0 %1074 }
 0x338   : > { %v1654_v5 = vpop.permute.xlu0 %1653 }
 0x339   : > { %v1659_v7 = vsel %vm962_vm3, %v1654_v5, 0 }
 0x33b   : > { %v2745_v53 = vpop.eup %2744 }
 0x33c   : > { %v1021_v55 = vmul.f32 %v2745_v53, %v2743_v50  ;;  %v1766_v8 = vpop.permute.xlu0 %1765 }
 0x33d   : > { %v1771_v10 = vsel %vm962_vm3, %v1766_v8, 0 }
 0x33e   : > { %v1022_v56 = vpack.c.bf16 %v1021_v55, %v1021_v55 }
 0x340   : > { %2578 = vmatmul.mubr.msk.bf16.vlgmr.msra.gmra.mrb[8].mxu0 %vm962_vm3, %v1022_v56 }
 0x341   : > { %2582 = vmatpush3.bf16.xpose.msra.mxu0 %v1082_v57  ;;  %2583 = vmatprep.mubr.msk.bf16.mxu0 %vm2795_vm2, %v2794_v2 }
 0x342   : > { %2593 = vmatprep.subr.bf16.mxu0 %v2794_v2 }
 0x348   : > { %2584 = vmatmul.mubr.msk.bf16.vlgmr.msra.gmra.mrb[12].mxu0 %vm962_vm3, %v1075_v60 }
 0x349   : > { %2594 = vmatpush3.bf16.xpose.msra.mxu0 %v1194_v61  ;;  %2595 = vmatprep.mubr.msk.bf16.mxu0 %vm2795_vm2, %v2794_v2 }
 0x34a   : > { %2605 = vmatprep.subr.bf16.mxu0 %v2794_v2 }
 0x350   : > { %2596 = vmatmul.mubr.msk.bf16.vlgmr.msra.gmra.mrb[16].mxu0 %vm962_vm3, %v1187_v59 }
 0x351   : > { %2606 = vmatpush3.bf16.xpose.msra.mxu0 %v1306_v63  ;;  %2607 = vmatprep.mubr.msk.bf16.mxu0 %vm2795_vm2, %v2794_v2 }
 0x352   : > { %2617 = vmatprep.subr.bf16.mxu0 %v2794_v2 }
 0x358   : > { %2608 = vmatmul.mubr.msk.bf16.vlgmr.msra.gmra.mrb[20].mxu0 %vm962_vm3, %v1299_v0 }
 0x359   : > { %2618 = vmatpush3.bf16.xpose.msra.mxu0 %v1433_v1  ;;  %2619 = vmatprep.mubr.msk.bf16.mxu0 %vm2795_vm2, %v2794_v2 }
 0x35a   : > { %2629 = vmatprep.subr.bf16.mxu0 %v2794_v2 }
 0x360   : > { %2620 = vmatmul.mubr.msk.bf16.vlgmr.msra.gmra.mrb[24].mxu0 %vm962_vm3, %v1427_v36 }
 0x361   : > { %2630 = vmatpush3.bf16.xpose.msra.mxu0 %v1547_v4  ;;  %2631 = vmatprep.mubr.msk.bf16.mxu0 %vm2795_vm2, %v2794_v2 }
 0x362   : > { %2641 = vmatprep.subr.bf16.mxu0 %v2794_v2 }
 0x368   : > { %2632 = vmatmul.mubr.msk.bf16.vlgmr.msra.gmra.mrb[28].mxu0 %vm962_vm3, %v1540_v6 }
 0x369   : > { %2642 = vmatpush3.bf16.xpose.msra.mxu0 %v1659_v7  ;;  %2643 = vmatprep.mubr.msk.bf16.mxu0 %vm2795_vm2, %v2794_v2 }
 0x36a   : > { %2653 = vmatprep.subr.bf16.mxu0 %v2794_v2 }
 0x370   : > { %2644 = vmatmul.mubr.msk.bf16.vlgmr.msra.gmra.mrb[32].mxu0 %vm962_vm3, %v1652_v9 }
 0x371   : > { %2654 = vmatpush3.bf16.xpose.msra.mxu0 %v1771_v10  ;;  %2655 = vmatprep.mubr.msk.bf16.mxu0 %vm2795_vm2, %v2794_v2 }
 0x372   : > { %2665 = vmatprep.subr.bf16.mxu0 %v2794_v2 }
 0x378   : > { %2656 = vmatmul.mubr.msk.bf16.vlgmr.msra.gmra.mrb[36].mxu0 %vm962_vm3, %v1764_v11 }
 0x379   : > { %2669 = vmatprep.mubr.msk.bf16.mxu0 %vm2795_vm2, %v2794_v2 }
 0x413   : > { %v3110_v12 = vpop.f32.mrb[8].mxu0 }
 0x414   : > { %v2579_v15 = vpop.f32.mrb[9].mxu0 }
 0x415   : > { %v1070_v16 = vpop.f32.mrb[10].mxu0 }
 0x416   : > { %v2580_v17 = vpop.f32.mrb[11].mxu0 }
 0x41b   : > { %v1118_v18 = vpop.f32.mrb[12].mxu0 }
 0x41c   : > { %v1124_v19 = vmul.f32 0.35355338, %v1118_v18  ;;  %v2585_v20 = vpop.f32.mrb[13].mxu0 }
 0x41d   : > { %v1121_v21 = vpop.f32.mrb[14].mxu0 }
 0x41e   : > { %v2586_v22 = vpop.f32.mrb[15].mxu0  ;;  %v1125_v23 = vadd.f32 %v3061_v40, %v1124_v19 }
 0x420   : > { %v1126_v24 = vsel %vm962_vm3, %v1125_v23, -inf }
 0x421   : > { %1127 = vmax.xlane.f32.xlu0 %v1126_v24 }
 0x423   : > { %v1230_v25 = vpop.f32.mrb[16].mxu0 }
 0x424   : > { %v1236_v26 = vmul.f32 0.35355338, %v1230_v25  ;;  %v2597_v27 = vpop.f32.mrb[17].mxu0 }
 0x425   : > { %v1233_v29 = vpop.f32.mrb[18].mxu0 }
 0x426   : > { %v2598_v30 = vpop.f32.mrb[19].mxu0  ;;  %v1237_v31 = vadd.f32 %v3061_v40, %v1236_v26 }
 0x428   : > { %v1238_v32 = vsel %vm962_vm3, %v1237_v31, -inf }
 0x429   : > { %1239 = vmax.xlane.f32.xlu1 %v1238_v32 }
 0x42b   : > { %v1342_v33 = vpop.f32.mrb[20].mxu0 }
 0x42c   : > { %v1348_v35 = vmul.f32 0.35355338, %v1342_v33  ;;  %v2609_v36 = vpop.f32.mrb[21].mxu0 }
 0x42d   : > { %v1345_v37 = vpop.f32.mrb[22].mxu0 }
 0x42e   : > { %v2610_v38 = vpop.f32.mrb[23].mxu0  ;;  %v1349_v39 = vadd.f32 %v3061_v40, %v1348_v35 }
 0x430   : > { %v1350_v41 = vsel %vm962_vm3, %v1349_v39, -inf }
 0x431   : > { %1351 = vmax.xlane.f32.xlu0 %v1350_v41 }
 0x433   : > { %v1469_v42 = vpop.f32.mrb[24].mxu0 }
 0x434   : > { %v1475_v44 = vmul.f32 0.35355338, %v1469_v42  ;;  %v2621_v45 = vpop.f32.mrb[25].mxu0 }
 0x435   : > { %v1472_v46 = vpop.f32.mrb[26].mxu0 }
 0x436   : > { %v2622_v47 = vpop.f32.mrb[27].mxu0  ;;  %v3121_v48 = vadd.f32 %v2443_v43, %v1475_v44 }
 0x438   : > { %v1477_v49 = vsel %vm962_vm3, %v3121_v48, -inf }
 0x439   : > { %1478 = vmax.xlane.f32.xlu0 %v1477_v49 }
 0x43b   : > { %v1583_v50 = vpop.f32.mrb[28].mxu0 }
 0x43c   : > { %v1589_v40 = vmul.f32 0.35355338, %v1583_v50  ;;  %v2633_v51 = vpop.f32.mrb[29].mxu0 }
 0x43d   : > { %v1586_v52 = vpop.f32.mrb[30].mxu0 }
 0x43e   : > { %v2634_v53 = vpop.f32.mrb[31].mxu0  ;;  %v1590_v54 = vadd.f32 %v2443_v43, %v1589_v40 }
 0x440   : > { %v1591_v55 = vsel %vm962_vm3, %v1590_v54, -inf }
 0x441   : > { %1592 = vmax.xlane.f32.xlu1 %v1591_v55 }
 0x443   : > { %v1695_v56 = vpop.f32.mrb[32].mxu0 }
 0x444   : > { %v1701_v57 = vmul.f32 0.35355338, %v1695_v56  ;;  %v2645_v58 = vpop.f32.mrb[33].mxu0 }
 0x445   : > { %v1698_v59 = vpop.f32.mrb[34].mxu0 }
 0x446   : > { %v2646_v60 = vpop.f32.mrb[35].mxu0  ;;  %v1702_v61 = vadd.f32 %v2443_v43, %v1701_v57 }
 0x448   : > { %v1703_v62 = vsel %vm962_vm3, %v1702_v61, -inf }
 0x449   : > { %1704 = vmax.xlane.f32.xlu0 %v1703_v62 }
 0x44b   : > { %v1807_v63 = vpop.f32.mrb[36].mxu0 }
 0x44c   : > { %v2657_v0 = vpop.f32.mrb[37].mxu0  ;;  %v1813_v4 = vmul.f32 0.35355338, %v1807_v63 }
 0x44d   : > { %v1810_v1 = vpop.f32.mrb[38].mxu0 }
 0x44e   : > { %v2658_v3 = vpop.f32.mrb[39].mxu0  ;;  %v1814_v5 = vadd.f32 %v2443_v43, %v1813_v4 }
 0x450   : > { %v1815_v6 = vsel %vm962_vm3, %v1814_v5, -inf }
 0x452   : > { %1250 = vrot.lane.b32.xlu1 %v3031_v28, %s2800_s25 }
 0x45f   : > { %1138 = vrot.lane.b32.xlu0 %v3031_v28, %s2801_s2 }
 0x476   : > { %1816 = vmax.xlane.f32.xlu1 %v1815_v6 }
 0x4ae   : > { %v1128_v7 = vpop.xlane.xlu0 %1127 }
 0x4af   : > { %v1129_v8 = vsub.f32 %v1125_v23, %v1128_v7 }
 0x4b1   : > { %v1130_v9 = vmul.f32 1.442695, %v1129_v8 }
 0x4b3   : > { %2746 = vpow2.f32 %v1130_v9 }
 0x4b6   : > { %v1240_v10 = vpop.xlane.xlu1 %1239 }
 0x4b7   : > { %v1241_v11 = vsub.f32 %v1237_v31, %v1240_v10 }
 0x4b9   : > { %v1242_v15 = vmul.f32 1.442695, %v1241_v11 }
 0x4bb   : > { %2748 = vpow2.f32 %v1242_v15 }
 0x4bd   : > { %v2747_v16 = vpop.eup %2746 }
 0x4be   : > { %v1352_v17 = vpop.xlane.xlu0 %1351  ;;  %v1132_v18 = vsel %vm962_vm3, %v2747_v16, 0.0 }
 0x4bf   : > { %v1353_v19 = vsub.f32 %v1349_v39, %v1352_v17  ;;  %1133 = vadd.xlane.f32.xlu0 %v1132_v18 }
 0x4c1   : > { %v1354_v20 = vmul.f32 1.442695, %v1353_v19 }
 0x4c3   : > { %2750 = vpow2.f32 %v1354_v20 }
 0x4c5   : > { %v2749_v21 = vpop.eup %2748 }
 0x4c6   : > { %v1244_v22 = vsel %vm962_vm3, %v2749_v21, 0.0  ;;  %v1479_v25 = vpop.xlane.xlu0 %1478 }
 0x4c7   : > { %1245 = vadd.xlane.f32.xlu1 %v1244_v22  ;;  %v1480_v30 = vsub.f32 %v3121_v48, %v1479_v25 }
 0x4c9   : > { %v1481_v32 = vmul.f32 1.442695, %v1480_v30 }
 0x4cb   : > { %2752 = vpow2.f32 %v1481_v32 }
 0x4cd   : > { %v3134_v24 = vpop.eup %2750 }
 0x4ce   : > { %v1356_v23 = vsel %vm962_vm3, %v3134_v24, 0.0  ;;  %v1593_v31 = vpop.xlane.xlu1 %1592 }
 0x4cf   : > { %1357 = vadd.xlane.f32.xlu0 %v1356_v23  ;;  %v1594_v33 = vsub.f32 %v1590_v54, %v1593_v31 }
 0x4d1   : > { %v1595_v35 = vmul.f32 1.442695, %v1594_v33 }
 0x4d2   : > { %v1251_v41 = vpop.permute.xlu1 %1250 }
 0x4d3   : > { %2754 = vpow2.f32 %v1595_v35  ;;  %v1256_v54 = vsel %vm1029_vm4, %v1251_v41, 0 }
 0x4d6   : > { %v1705_v26 = vpop.xlane.xlu0 %1704 }
 0x4d7   : > { %v1706_v36 = vsub.f32 %v1702_v61, %v1705_v26 }
 0x4d8   : > { %1362 = vrot.lane.b32.xlu1 %v3031_v28, %s2802_s23  ;;  %v2753_v28 = vpop.eup %2752 }
 0x4d9   : > { %v1707_v37 = vmul.f32 1.442695, %v1706_v36  ;;  %v1483_v38 = vsel %vm962_vm3, %v2753_v28, 0.0 }
 0x4da   : > { %v1139_v27 = vpop.permute.xlu0 %1138 }
 0x4db   : > { %v1144_v29 = vsel %vm1029_vm4, %v1139_v27, 0  ;;  %2756 = vpow2.f32 %v1707_v37 }
 0x4dc   : > { %2588 = vmatpush3.bf16.msra.mxu1 %v1144_v29 }
 0x4dd   : > { %2599 = vmatprep.subr.bf16.mxu1 %v2794_v2  ;;  %v3146_v39 = vpop.eup %2754 }
 0x4de   : > { %v1597_v42 = vsel %vm962_vm3, %v3146_v39, 0.0 }
 0x4e5   : > { %1490 = vrot.lane.b32.xlu0 %v3049_v34, %s2796_s16  ;;  %v3150_v43 = vpop.eup %2756  ;;  %s2803_s16 = smov 8  }
 0x4e6   : > { %v1709_v45 = vsel %vm962_vm3, %v3150_v43, 0.0 }
 0x4fc   : > { %1484 = vadd.xlane.f32.xlu1 %v1483_v38 }
 0x500   : > { %1598 = vadd.xlane.f32.xlu1 %v1597_v42 }
 0x503   : > { %v1817_v44 = vpop.xlane.xlu1 %1816 }
 0x504   : > { %v1818_v46 = vsub.f32 %v1814_v5, %v1817_v44  ;;  %1710 = vadd.xlane.f32.xlu0 %v1709_v45  ;;  %v2734_v45 = vld [vmem:[%s2938_s0] sm:$0xff]  }
 0x506   : > { %v1819_v47 = vmul.f32 1.442695, %v1818_v46  ;;  %v1911_v46 = vsel %vm830_vm1, %v2734_v45, 0 }
 0x507   : > { %2666 = vmatpush3.bf16.xpose.msra.mxu0 %v1911_v46  ;;  %v2740_v46 = vld [vmem:[%s2964_s19] sm:$0xff]  }
 0x508   : > { %2758 = vpow2.f32 %v1819_v47  ;;  %2667 = vmatprep.subr.bf16.mxu0 %v2794_v2 }
 0x512   : > { %v3154_v48 = vpop.eup %2758 }
 0x513   : > { %v1821_v49 = vsel %vm962_vm3, %v3154_v48, 0.0 }
 0x514   : > { %1822 = vadd.xlane.f32.xlu1 %v1821_v49 }
 0x51a   : > { %1715 = vrot.lane.b32.xlu0 %v3049_v34, %s2800_s25  ;;  %s3354_s25 = sld [smem:[#allocation14_spill]] (!%p2488_p5) }
 0x51e   : > { %1827 = vrot.lane.b32.xlu0 %v3049_v34, %s2802_s23 }
 0x525   : > { %1603 = vrot.lane.b32.xlu1 %v3049_v34, %s2801_s2  ;;  %s3350_s2 = scalar_lea.vmem %s3309_s9, %s2913_s29 }
 0x54c   : > { %v1134_v50 = vpop.xlane.xlu0 %1133 }
 0x54d   : > { %2760 = vrcp.f32 %v1134_v50 }
 0x554   : > { %v1246_v40 = vpop.xlane.xlu1 %1245 }
 0x555   : > { %2762 = vrcp.f32 %v1246_v40 }
 0x557   : > { %v2761_v51 = vpop.eup %2760 }
 0x558   : > { %v1136_v52 = vmul.f32 %v2761_v51, %v2747_v16  ;;  %v1363_v57 = vpop.permute.xlu1 %1362 }
 0x559   : > { %v1368_v59 = vsel %vm1029_vm4, %v1363_v57, 0 }
 0x55a   : > { %v1137_v53 = vpack.c.bf16 %v1136_v52, %v1136_v52 }
 0x55c   : > { %2590 = vmatmul.mubr.msk.bf16.vlgmr.msra.gmra.mrb[4].mxu1 %vm962_vm3, %v1137_v53  ;;  %v1358_v55 = vpop.xlane.xlu0 %1357 }
 0x55d   : > { %2600 = vmatpush3.bf16.msra.mxu1 %v1256_v54  ;;  %2764 = vrcp.f32 %v1358_v55  ;;  %2601 = vmatprep.mubr.msk.bf16.mxu1 %vm2795_vm2, %v2794_v2 }
 0x55e   : > { %2611 = vmatprep.subr.bf16.mxu1 %v2794_v2 }
 0x55f   : > { %v2763_v34 = vpop.eup %2762 }
 0x560   : > { %v1248_v56 = vmul.f32 %v2763_v34, %v2749_v21  ;;  %v1491_v62 = vpop.permute.xlu0 %1490 }
 0x561   : > { %v1496_v0 = vsel %vm1029_vm4, %v1491_v62, 0 }
 0x562   : > { %v1249_v58 = vpack.c.bf16 %v1248_v56, %v1248_v56 }
 0x564   : > { %2602 = vmatmul.mubr.msk.bf16.vlgmr.msra.gmra.mrb[8].mxu1 %vm962_vm3, %v1249_v58 }
 0x565   : > { %2612 = vmatpush3.bf16.msra.mxu1 %v1368_v59  ;;  %2613 = vmatprep.mubr.msk.bf16.mxu1 %vm2795_vm2, %v2794_v2 }
 0x566   : > { %2623 = vmatprep.subr.bf16.mxu1 %v2794_v2 }
 0x567   : > { %v2765_v60 = vpop.eup %2764 }
 0x568   : > { %v1360_v61 = vmul.f32 %v2765_v60, %v3134_v24 }
 0x56a   : > { %v1361_v63 = vpack.c.bf16 %v1360_v61, %v1360_v61 }
 0x56c   : > { %2614 = vmatmul.mubr.msk.bf16.vlgmr.msra.gmra.mrb[12].mxu1 %vm962_vm3, %v1361_v63 }
 0x56d   : > { %2624 = vmatpush3.bf16.msra.mxu1 %v1496_v0  ;;  %2625 = vmatprep.mubr.msk.bf16.mxu1 %vm2795_vm2, %v2794_v2 }
 0x56e   : > { %2635 = vmatprep.subr.bf16.mxu1 %v2794_v2 }
 0x589   : > { %v1485_v1 = vpop.xlane.xlu1 %1484 }
 0x58a   : > { %2766 = vrcp.f32 %v1485_v1 }
 0x58d   : > { %v1599_v4 = vpop.xlane.xlu1 %1598 }
 0x58e   : > { %2768 = vrcp.f32 %v1599_v4 }
 0x591   : > { %v1711_v7 = vpop.xlane.xlu0 %1710 }
 0x592   : > { %2770 = vrcp.f32 %v1711_v7 }
 0x594   : > { %v2767_v3 = vpop.eup %2766 }
 0x595   : > { %v1487_v5 = vmul.f32 %v2767_v3, %v2753_v28  ;;  %v1716_v16 = vpop.permute.xlu0 %1715 }
 0x596   : > { %v1721_v19 = vsel %vm1029_vm4, %v1716_v16, 0 }
 0x597   : > { %v1488_v6 = vpack.c.bf16 %v1487_v5, %v1487_v5 }
 0x598   : > { %v2769_v8 = vpop.eup %2768 }
 0x599   : > { %2626 = vmatmul.mubr.msk.bf16.vlgmr.msra.gmra.mrb[16].mxu1 %vm962_vm3, %v1488_v6  ;;  %v1601_v10 = vmul.f32 %v2769_v8, %v3146_v39  ;;  %v1828_v21 = vpop.permute.xlu0 %1827 }
 0x59a   : > { %2637 = vmatprep.mubr.msk.bf16.mxu1 %vm2795_vm2, %v2794_v2  ;;  %v1833_v23 = vsel %vm1029_vm4, %v1828_v21, 0 }
 0x59b   : > { %v1602_v17 = vpack.c.bf16 %v1601_v10, %v1601_v10 }
 0x59c   : > { %v2771_v18 = vpop.eup %2770 }
 0x59d   : > { %v1713_v20 = vmul.f32 %v2771_v18, %v3150_v43  ;;  %v2470_v18 = vld [vmem:[%s3348_s21] ss:$0 sm:$0xff] }
 0x59f   : > { %v1714_v22 = vpack.c.bf16 %v1713_v20, %v1713_v20 }
 0x5a1   : > { %v1823_v9 = vpop.xlane.xlu1 %1822 }
 0x5a2   : > { %2772 = vrcp.f32 %v1823_v9 }
 0x5a5   : > { %v1604_v11 = vpop.permute.xlu1 %1603 }
 0x5a6   : > { %v1609_v15 = vsel %vm1029_vm4, %v1604_v11, 0 }
 0x5a7   : > { %2636 = vmatpush3.bf16.msra.mxu1 %v1609_v15 }
 0x5a8   : > { %2647 = vmatprep.subr.bf16.mxu1 %v2794_v2 }
 0x5aa   : > { %2638 = vmatmul.mubr.msk.bf16.vlgmr.msra.gmra.mrb[20].mxu1 %vm962_vm3, %v1602_v17 }
 0x5ab   : > { %2648 = vmatpush3.bf16.msra.mxu1 %v1721_v19  ;;  %2649 = vmatprep.mubr.msk.bf16.mxu1 %vm2795_vm2, %v2794_v2 }
 0x5ac   : > { %2659 = vmatprep.subr.bf16.mxu1 %v2794_v2  ;;  %v2773_v24 = vpop.eup %2772 }
 0x5ad   : > { %v1825_v25 = vmul.f32 %v2773_v24, %v3154_v48  ;;  %v2735_v48 = vld [vmem:[%s2938_s0 + $0x8] sm:$0xff]   ;;  %s2805_s0 = smov 24  }
 0x5ae   : > { %v1914_v51 = vsel %vm830_vm1, %v2735_v48, 0 }
 0x5af   : > { %v1826_v26 = vpack.c.bf16 %v1825_v25, %v1825_v25  ;;  %2668 = vmatpush3.bf16.xpose.msra.mxu0 %v1914_v51 }
 0x5b0   : > { %2685 = vmatprep.subr.bf16.mxu0 %v2794_v2 }
 0x5b2   : > { %2650 = vmatmul.mubr.msk.bf16.vlgmr.msra.gmra.mrb[24].mxu1 %vm962_vm3, %v1714_v22 }
 0x5b3   : > { %2660 = vmatpush3.bf16.msra.mxu1 %v1833_v23  ;;  %2661 = vmatprep.mubr.msk.bf16.mxu1 %vm2795_vm2, %v2794_v2 }
 0x5b4   : > { %2673 = vmatprep.subr.bf16.mxu1 %v2794_v2 }
 0x5ba   : > { %2662 = vmatmul.mubr.msk.bf16.vlgmr.msra.gmra.mrb[28].mxu1 %vm962_vm3, %v1826_v26 }
 0x5bb   : > { %2681 = vmatprep.mubr.msk.bf16.mxu1 %vm2795_vm2, %v2794_v2 }
 0x62f   : > { %v1180_v27 = vpop.f32.mrb[4].mxu1 }
 0x630   : > { %v2591_v29 = vpop.f32.mrb[5].mxu1 }
 0x631   : > { %v1183_v30 = vpop.f32.mrb[6].mxu1  ;;  %v2736_v29 = vld [vmem:[%s2955_s27] sm:$0xff]  }
 0x632   : > { %v2592_v31 = vpop.f32.mrb[7].mxu1  ;;  %v2049_v30 = vsel %vm830_vm1, %v2736_v29, 0 }
 0x633   : > { %2674 = vmatpush3.bf16.xpose.msra.mxu1 %v2049_v30 }
 0x634   : > { %2675 = vmatprep.subr.bf16.mxu1 %v2794_v2 }
 0x637   : > { %v1292_v32 = vpop.f32.mrb[8].mxu1 }
 0x638   : > { %v2603_v33 = vpop.f32.mrb[9].mxu1 }
 0x639   : > { %v1295_v35 = vpop.f32.mrb[10].mxu1 }
 0x63a   : > { %v2604_v36 = vpop.f32.mrb[11].mxu1 }
 0x63f   : > { %v1404_v37 = vpop.f32.mrb[12].mxu1 }
 0x640   : > { %v2615_v28 = vpop.f32.mrb[13].mxu1 }
 0x641   : > { %v1407_v38 = vpop.f32.mrb[14].mxu1 }
 0x642   : > { %v2616_v39 = vpop.f32.mrb[15].mxu1 }
 0x643   : > { %v2737_v39 = vld [vmem:[%s2955_s27 + $0x8] sm:$0xff]  }
 0x66c   : > { %v1532_v41 = vpop.f32.mrb[16].mxu1 }
 0x66d   : > { %v2627_v42 = vpop.f32.mrb[17].mxu1 }
 0x66e   : > { %v1535_v43 = vpop.f32.mrb[18].mxu1  ;;  %v2738_v42 = vld [vmem:[%s2955_s27 + $0x10] sm:$0xff]  }
 0x66f   : > { %v2628_v44 = vpop.f32.mrb[19].mxu1  ;;  %v2055_v43 = vsel %vm830_vm1, %v2738_v42, 0 }
 0x670   : > { %v2739_v44 = vld [vmem:[%s2955_s27 + $0x18] sm:$0xff]  }
 0x671   : > { %v2058_v45 = vsel %vm830_vm1, %v2739_v44, 0  ;;  %v2487_v44 = vld [vmem:[%s766_s18] ss:$0 sm:$0xff]  ;;  %s3352_s18 = sld [smem:[#allocation12_spill]] (!%p2488_p5) }
 0x67d   : > { %v1645_v47 = vpop.f32.mrb[20].mxu1 }
 0x67e   : > { %v2713_v49 = vpack.i.bf16 %v1645_v47, %v1180_v27  ;;  %v2639_v50 = vpop.f32.mrb[21].mxu1  ;;  %v2125_v47 = vsel %vm2120_vm7, %v2740_v46, 0 }
 0x67f   : > { %v1648_v40 = vpop.f32.mrb[22].mxu1 }
 0x680   : > { %2714 = vrot.lane.b32.xlu1 %v2713_v49, %s2803_s16  ;;  %v2640_v52 = vpop.f32.mrb[23].mxu1 }
 0x685   : > { %v1757_v53 = vpop.f32.mrb[24].mxu1 }
 0x686   : > { %v2718_v54 = vpack.i.bf16 %v1757_v53, %v1292_v32  ;;  %v2651_v55 = vpop.f32.mrb[25].mxu1 }
 0x687   : > { %v1760_v34 = vpop.f32.mrb[26].mxu1  ;;  %v2474_v55 = vld [vmem:[%s3349_s22] ss:$0 sm:$0xff] }
 0x688   : > { %2719 = vrot.lane.b32.xlu0 %v2718_v54, %s2804_s28  ;;  %v2652_v56 = vpop.f32.mrb[27].mxu1 }
 0x68d   : > { %v1869_v57 = vpop.f32.mrb[28].mxu1 }
 0x68e   : > { %v2723_v58 = vpack.i.bf16 %v1869_v57, %v1404_v37  ;;  %v2663_v59 = vpop.f32.mrb[29].mxu1  ;;  %v2475_v57 = vld [vmem:[%s3350_s2] ss:$0 sm:$0xff] }
 0x68f   : > { %v1872_v60 = vpop.f32.mrb[30].mxu1 }
 0x690   : > { %2724 = vrot.lane.b32.xlu1 %v2723_v58, %s2805_s0  ;;  %v2664_v61 = vpop.f32.mrb[31].mxu1 }
 0x6f2   : > { %v2715_v62 = vpop.permute.xlu1 %2714 }
 0x6f3   : > { %v2717_v0 = vunpack.i.h.bf16 %v2715_v62  ;;  %v2716_v1 = vunpack.i.l.bf16 %v2715_v62  ;;  %v2741_v62 = vld [vmem:[%s2964_s19 + $0x8] sm:$0xff]  }
 0x6f5   : > { %v1887_v6 = vsel %vm962_vm3, %v1532_v41, %v2717_v0  ;;  %v1422_v7 = vsel %vm962_vm3, %v3110_v12, %v2716_v1  ;;  %v2052_v41 = vsel %vm830_vm1, %v2737_v39, 0  ;;  %v2476_v0 = vld [vmem:[%s752_s17] ss:$0 sm:$0xff] }
 0x6f6   : > { %2676 = vmatpush3.bf16.xpose.msra.mxu1 %v2052_v41  ;;  %v2486_v41 = vld [vmem:[%s763_s4] ss:$0 sm:$0xff] }
 0x6f7   : > { %2677 = vmatprep.subr.bf16.mxu1 %v2794_v2 }
 0x6fa   : > { %v2720_v63 = vpop.permute.xlu0 %2719 }
 0x6fb   : > { %v2722_v3 = vunpack.i.h.bf16 %v2720_v63  ;;  %v2721_v4 = vunpack.i.l.bf16 %v2720_v63  ;;  %v2128_v63 = vsel %vm2120_vm7, %v2741_v62, 0 }
 0x6fd   : > { %v1888_v10 = vsel %vm1423_vm5, %v1887_v6, %v2722_v3  ;;  %v1424_v11 = vsel %vm1423_vm5, %v1422_v7, %v2721_v4 }
 0x6fe   : > { %2678 = vmatpush3.bf16.xpose.msra.mxu1 %v2055_v43 }
 0x6ff   : > { %2679 = vmatprep.subr.bf16.mxu1 %v2794_v2 }
 0x702   : > { %v2725_v5 = vpop.permute.xlu1 %2724 }
 0x703   : > { %v2727_v8 = vunpack.i.h.bf16 %v2725_v5  ;;  %v2726_v9 = vunpack.i.l.bf16 %v2725_v5 }
 0x705   : > { %v1889_v15 = vsel %vm1425_vm6, %v1888_v10, %v2727_v8  ;;  %v1426_v16 = vsel %vm1425_vm6, %v1424_v11, %v2726_v9  ;;  %v2482_v11 = vld [vmem:[%s760_s3] ss:$0 sm:$0xff] }
 0x706   : > { %v1890_v17 = vpack.c.bf16 %v1889_v15, %v1426_v16  ;;  %2680 = vmatpush3.bf16.xpose.msra.mxu1 %v2058_v45 }
 0x708   : > { %2670 = vmatmul.mubr.msk.bf16.vlgmr.msra.gmra.mrb[40].mxu0 %vm830_vm1, %v1890_v17 }
 0x709   : > { %2689 = vmatprep.mubr.msk.bf16.mxu0 %vm2795_vm2, %v2794_v2  ;;  %2686 = vmatpush3.bf16.xpose.msra.mxu0 %v2125_v47 }
 0x70a   : > { %2687 = vmatprep.subr.bf16.mxu0 %v2794_v2 }
 0x711   : > { %2688 = vmatpush3.bf16.xpose.msra.mxu0 %v2128_v63 }
 0x7db   : > { %v1950_v19 = vpop.f32.mrb[40].mxu0 }
 0x7dc   : > { %v1951_v12 = vadd.f32 %v2470_v18, %v1950_v19  ;;  %v2671_v20 = vpop.f32.mrb[41].mxu0 }
 0x7dd   : > { %v1953_v21 = vpop.f32.mrb[42].mxu0 }
 0x7de   : > { %v1954_v22 = vadd.f32 %v2470_v18, %v1953_v21  ;;  %v2672_v24 = vpop.f32.mrb[43].mxu0  ;;  %v1957_v23 = vadd.f32 %v1951_v12, %v3005_v13 }
 0x7e0   : > { %v1961_v25 = vsel %vm830_vm1, %v1957_v23, 0.0  ;;  %v1958_v26 = vadd.f32 %v1954_v22, %v3007_v14 }
 0x7e1   : > { %1962 = vadd.xlane.f32.xlu0 %v1961_v25 }
 0x7e2   : > { %v1964_v27 = vsel %vm830_vm1, %v1958_v26, 0.0 }
 0x7e3   : > { %1965 = vadd.xlane.f32.xlu1 %v1964_v27 }
 0x86e   : > { %v1963_v31 = vpop.xlane.xlu0 %1962 }
 0x86f   : > { %v1968_v32 = vmul.f32 0.03125, %v1963_v31 }
 0x870   : > { %v1966_v33 = vpop.xlane.xlu1 %1965 }
 0x871   : > { %v1970_v13 = vsub.f32 %v1957_v23, %v1968_v32  ;;  %v1969_v35 = vmul.f32 0.03125, %v1966_v33 }
 0x873   : > { %v1971_v36 = vsub.f32 %v1958_v26, %v1969_v35  ;;  %v1972_v14 = vmul.f32 %v1970_v13, %v1970_v13 }
 0x875   : > { %v1974_v37 = vsel %vm830_vm1, %v1972_v14, 0.0  ;;  %v1973_v28 = vmul.f32 %v1971_v36, %v1971_v36 }
 0x876   : > { %1975 = vadd.xlane.f32.xlu0 %v1974_v37 }
 0x877   : > { %v1977_v38 = vsel %vm830_vm1, %v1973_v28, 0.0 }
 0x87a   : > { %1978 = vadd.xlane.f32.xlu0 %v1977_v38 }
 0x903   : > { %v1976_v48 = vpop.xlane.xlu0 %1975 }
 0x904   : > { %v1980_v49 = vmul.f32 0.03125, %v1976_v48 }
 0x906   : > { %v1982_v50 = vadd.f32 1e-05, %v1980_v49 }
 0x907   : > { %v1979_v40 = vpop.xlane.xlu0 %1978 }
 0x908   : > { %2774 = vrsqrt.f32 %v1982_v50  ;;  %v1981_v51 = vmul.f32 0.03125, %v1979_v40 }
 0x90a   : > { %v1983_v52 = vadd.f32 1e-05, %v1981_v51 }
 0x90c   : > { %2776 = vrsqrt.f32 %v1983_v52 }
 0x912   : > { %v2775_v53 = vpop.eup %2774 }
 0x913   : > { %v1986_v54 = vmul.f32 %v2775_v53, %v1970_v13 }
 0x915   : > { %v1994_v56 = vmul.f32 %v2474_v55, %v1986_v54 }
 0x916   : > { %v2777_v34 = vpop.eup %2776 }
 0x917   : > { %v1987_v2 = vmul.f32 %v2777_v34, %v1971_v36  ;;  %v2002_v59 = vadd.f32 %v2475_v57, %v1994_v56 }
 0x919   : > { %v1995_v58 = vmul.f32 %v2474_v55, %v1987_v2 }
 0x91b   : > { %v2003_v60 = vadd.f32 %v2475_v57, %v1995_v58 }
 0x91d   : > { %v2018_v61 = vpack.c.bf16 %v2003_v60, %v2002_v59 }
 0x91f   : > { %2682 = vmatmul.mubr.msk.bf16.vlgmr.msra.gmra.mrb[32].mxu1 %vm830_vm1, %v2018_v61 }
 0x9f2   : > { %v2094_v1 = vpop.f32.mrb[32].mxu1 }
 0x9f3   : > { %v2095_v3 = vadd.f32 %v2476_v0, %v2094_v1  ;;  %v2683_v4 = vpop.f32.mrb[33].mxu1 }
 0x9f4   : > { %v2097_v5 = vpop.f32.mrb[34].mxu1 }
 0x9f5   : > { %v2098_v6 = vadd.f32 %v2476_v0, %v2097_v5  ;;  %v2684_v7 = vpop.f32.mrb[35].mxu1  ;;  %v2101_v8 = vmax.f32 %v2095_v3, 0.0  ;;  %v2489_v3 = vld [vmem:[%s3352_s18] ss:$0 sm:$0xff] (!%p2488_p5) }
 0x9f6   : > { %v2490_v5 = vld [vmem:[%s3353_s26] ss:$0 sm:$0xff] (!%p2488_p5) }
 0x9f7   : > { %v2102_v9 = vmax.f32 %v2098_v6, 0.0 }
 0x9f9   : > { %v2103_v10 = vpack.c.bf16 %v2102_v9, %v2101_v8 }
 0x9fb   : > { %2690 = vmatmul.mubr.msk.bf16.vlgmr.msra.gmra.mrb[44].mxu0 %vm2120_vm7, %v2103_v10 }
 0xace   : > { %v2164_v15 = vpop.f32.mrb[44].mxu0 }
 0xacf   : > { %v2165_v16 = vadd.f32 %v2482_v11, %v2164_v15  ;;  %v2691_v17 = vpop.f32.mrb[45].mxu0 }
 0xad0   : > { %v2167_v18 = vpop.f32.mrb[46].mxu0 }
 0xad1   : > { %v2168_v19 = vadd.f32 %v2482_v11, %v2167_v18  ;;  %v2692_v12 = vpop.f32.mrb[47].mxu0  ;;  %v2171_v20 = vadd.f32 %v2165_v16, %v2002_v59 }
 0xad3   : > { %v2175_v21 = vsel %vm830_vm1, %v2171_v20, 0.0  ;;  %v2172_v22 = vadd.f32 %v2168_v19, %v2003_v60 }
 0xad4   : > { %2176 = vadd.xlane.f32.xlu1 %v2175_v21 }
 0xad5   : > { %v2178_v24 = vsel %vm830_vm1, %v2172_v22, 0.0 }
 0xad6   : > { %2179 = vadd.xlane.f32.xlu0 %v2178_v24 }
 0xb61   : > { %v2177_v23 = vpop.xlane.xlu1 %2176 }
 0xb62   : > { %v2181_v25 = vmul.f32 0.03125, %v2177_v23 }
 0xb63   : > { %v2180_v26 = vpop.xlane.xlu0 %2179 }
 0xb64   : > { %v2183_v27 = vsub.f32 %v2171_v20, %v2181_v25  ;;  %v2182_v29 = vmul.f32 0.03125, %v2180_v26 }
 0xb66   : > { %v2184_v30 = vsub.f32 %v2172_v22, %v2182_v29  ;;  %v2185_v31 = vmul.f32 %v2183_v27, %v2183_v27 }
 0xb68   : > { %v2187_v32 = vsel %vm830_vm1, %v2185_v31, 0.0  ;;  %v2186_v33 = vmul.f32 %v2184_v30, %v2184_v30 }
 0xb69   : > { %2188 = vadd.xlane.f32.xlu1 %v2187_v32 }
 0xb6a   : > { %v2190_v13 = vsel %vm830_vm1, %v2186_v33, 0.0 }
 0xb6b   : > { %2191 = vadd.xlane.f32.xlu0 %v2190_v13 }
 0xbf6   : > { %v2189_v35 = vpop.xlane.xlu1 %2188 }
 0xbf7   : > { %v2193_v36 = vmul.f32 0.03125, %v2189_v35 }
 0xbf8   : > { %v2192_v14 = vpop.xlane.xlu0 %2191 }
 0xbf9   : > { %v2195_v37 = vadd.f32 1e-05, %v2193_v36  ;;  %v2194_v28 = vmul.f32 0.03125, %v2192_v14 }
 0xbfb   : > { %2778 = vrsqrt.f32 %v2195_v37  ;;  %v2196_v38 = vadd.f32 1e-05, %v2194_v28 }
 0xbfd   : > { %2780 = vrsqrt.f32 %v2196_v38 }
 0xc05   : > { %v2779_v39 = vpop.eup %2778 }
 0xc06   : > { %v2199_v42 = vmul.f32 %v2779_v39, %v2183_v27 }
 0xc07   : > { %v2781_v43 = vpop.eup %2780 }
 0xc08   : > { %v2207_v45 = vmul.f32 %v2486_v41, %v2199_v42  ;;  %v2200_v46 = vmul.f32 %v2781_v43, %v2184_v30  ;;  %2222 = sbr.rel (%p2488_p5) target bundleno = 3402 (0xd4a), region = 100 }
 0xc0a   : > { %v2215_v47 = vadd.f32 %v2487_v44, %v2207_v45  ;;  %v2208_v48 = vmul.f32 %v2486_v41, %v2200_v46 }
 0xc0c   : > { %2217 = vst.msk [vmem:[#allocation2] sm:$0xff] %vm830_vm1, %v2215_v47  ;;  %v2216_v49 = vadd.f32 %v2487_v44, %v2208_v48  ;;  %v2225_v50 = vsel (!%p2488_p5), %vm830_vm1, %v2215_v47, 0.0 }
 0xc0d   : > { %2226 = vadd.xlane.f32.xlu0 (!%p2488_p5), %v2225_v50 }
 0xc0e   : > { %2218 = vst.msk [vmem:[#allocation2 + $0x8] sm:$0xff] %vm830_vm1, %v2216_v49  ;;  %v2228_v40 = vsel (!%p2488_p5), %vm830_vm1, %v2216_v49, 0.0 }
 0xc11   : > { %2229 = vadd.xlane.f32.xlu0 %v2228_v40 }
 0xc9a   : > { %v2227_v51 = vpop.xlane.xlu0 %2226 }
 0xc9b   : > { %v2231_v52 = vmul.f32 0.03125, %v2227_v51 }
 0xc9d   : > { %v2233_v53 = vsub.f32 %v2215_v47, %v2231_v52 }
 0xc9e   : > { %v2230_v54 = vpop.xlane.xlu0 %2229 }
 0xc9f   : > { %v2232_v55 = vmul.f32 0.03125, %v2230_v54  ;;  %v2235_v34 = vmul.f32 %v2233_v53, %v2233_v53 }
 0xca1   : > { %v2234_v56 = vsub.f32 %v2216_v49, %v2232_v55  ;;  %v2237_v2 = vsel %vm830_vm1, %v2235_v34, 0.0 }
 0xca2   : > { %2238 = vadd.xlane.f32.xlu1 %v2237_v2 }
 0xca3   : > { %v2236_v57 = vmul.f32 %v2234_v56, %v2234_v56 }
 0xca5   : > { %v2240_v58 = vsel %vm830_vm1, %v2236_v57, 0.0 }
 0xca6   : > { %2241 = vadd.xlane.f32.xlu1 %v2240_v58 }
 0xd2f   : > { %v2239_v59 = vpop.xlane.xlu1 %2238 }
 0xd30   : > { %v2243_v60 = vmul.f32 0.03125, %v2239_v59 }
 0xd32   : > { %v2245_v61 = vadd.f32 1e-05, %v2243_v60 }
 0xd33   : > { %v2242_v62 = vpop.xlane.xlu1 %2241 }
 0xd34   : > { %2782 = vrsqrt.f32 %v2245_v61  ;;  %v2244_v63 = vmul.f32 0.03125, %v2242_v62 }
 0xd36   : > { %v2246_v0 = vadd.f32 1e-05, %v2244_v63 }
 0xd38   : > { %2784 = vrsqrt.f32 %v2246_v0 }
 0xd3e   : > { %v2783_v1 = vpop.eup %2782 }
 0xd3f   : > { %v2249_v4 = vmul.f32 %v2783_v1, %v2233_v53 }
 0xd41   : > { %v2257_v6 = vmul.f32 %v2489_v3, %v2249_v4 }
 0xd42   : > { %v2785_v7 = vpop.eup %2784 }
 0xd43   : > { %v2265_v8 = vadd.f32 %v2490_v5, %v2257_v6  ;;  %v2250_v9 = vmul.f32 %v2785_v7, %v2234_v56 }
 0xd45   : > { %2267 = vst.msk [vmem:[%s3354_s25] sm:$0xff] %vm830_vm1, %v2265_v8  ;;  %v2258_v10 = vmul.f32 %v2489_v3, %v2250_v9 }
 0xd47   : > { %v2266_v11 = vadd.f32 %v2490_v5, %v2258_v10 }
 0xd49   : > { %2268 = vst.msk [vmem:[%s3354_s25 + $0x8] sm:$0xff] %vm830_vm1, %v2266_v11 }
 0xd4a PF: > { %s3355_s16 = sld [smem:[#allocation3_spill]] }
 0xd50   : > { %s28_s27 = sadd.s32 1, %s3355_s16  }
 0xd51   : > { %p25_p6 = scmp.ge.s32.totalorder %s28_s27, 4  }
 0xd53   :  { %27 = sbr.rel (!%p25_p6) target bundleno = 10 (0xa), region = 166 }

// kernel: seq2seq_transformer_forward.3
= control target key start
LH: loop header
LB: loop body
LE: loop exit
PB: predicated region body
PF: predicated region fallthrough
CT: control target
= control target key end

     0   :  { %s5134_s6 = smov 1   ;;  %s5135_s10 = smov 2   ;;  %s5978_s0 = inlined_call_operand.smem [shape: u32[31], index: -1, kind: input, shape index: {}] }
   0x1   :  { %s5188_s5 = sld [smem:[%s5978_s0]]   ;;  %s5136_s14 = smov 3  }
   0x2   :  { %s5193_s9 = sld [smem:[%s5978_s0 + %s5134_s6]]   ;;  %s5137_s18 = smov 4  }
   0x3   :  { %s5198_s13 = sld [smem:[%s5978_s0 + %s5135_s10]]   ;;  %s5138_s22 = smov 5  }
   0x4   :  { %s5203_s17 = sld [smem:[%s5978_s0 + %s5136_s14]]   ;;  %s5139_s26 = smov 6  }
   0x5   :  { %s5208_s21 = sld [smem:[%s5978_s0 + %s5137_s18]]   ;;  %s5140_s30 = smov 7  }
   0x6   :  { %s5213_s25 = sld [smem:[%s5978_s0 + %s5138_s22]]   ;;  %s5141_s4 = smov 8  }
   0x7   :  { %5990 = sst [smem:[#allocation6_spill]] %s5188_s5  ;;  %s5142_s10 = smov 9  }
   0x8   :  { %5991 = sst [smem:[#allocation7_spill]] %s5193_s9  ;;  %s5143_s15 = smov 10  }
   0x9   :  { %5992 = sst [smem:[#allocation8_spill]] %s5198_s13  ;;  %s5144_s20 = smov 11  }
   0xa   :  { %5993 = sst [smem:[#allocation9_spill]] %s5203_s17  ;;  %s5146_s1 = smov 13  }
   0xb   :  { %5994 = sst [smem:[#allocation10_spill]] %s5208_s21  ;;  %s5147_s7 = smov 14  }
   0xc   :  { %5995 = sst [smem:[#allocation11_spill]] %s5213_s25  ;;  %s5149_s22 = smov 16  }
   0xd   :  { %s5218_s29 = sld [smem:[%s5978_s0 + %s5139_s26]]   ;;  %s5145_s26 = smov 12  }
   0xe   :  { %s5223_s3 = sld [smem:[%s5978_s0 + %s5140_s30]]   ;;  %s5150_s28 = smov 17  }
   0xf   :  { %s5228_s8 = sld [smem:[%s5978_s0 + %s5141_s4]]  }
  0x10   :  { %s5233_s14 = sld [smem:[%s5978_s0 + %s5142_s10]]  }
  0x11   :  { %s5238_s19 = sld [smem:[%s5978_s0 + %s5143_s15]]   ;;  %s5148_s15 = smov 15  }
  0x12   :  { %s5243_s24 = sld [smem:[%s5978_s0 + %s5144_s20]]  }
  0x13   :  { %5996 = sst [smem:[#allocation12_spill]] %s5218_s29 }
  0x14   :  { %5997 = sst [smem:[#allocation13_spill]] %s5223_s3 }
  0x15   :  { %5998 = sst [smem:[#allocation14_spill]] %s5228_s8 }
  0x16   :  { %5999 = sst [smem:[#allocation15_spill]] %s5233_s14 }
  0x17   :  { %6000 = sst [smem:[#allocation16_spill]] %s5238_s19 }
  0x18   :  { %6001 = sst [smem:[#allocation17_spill]] %s5243_s24 }
  0x19   :  { %s5248_s30 = sld [smem:[%s5978_s0 + %s5145_s26]]  }
  0x1a   :  { %s5253_s6 = sld [smem:[%s5978_s0 + %s5146_s1]]  }
  0x1b   :  { %s5258_s12 = sld [smem:[%s5978_s0 + %s5147_s7]]   ;;  %s5151_s7 = smov 18  }
  0x1c   :  { %s5263_s20 = sld [smem:[%s5978_s0 + %s5148_s15]]   ;;  %s5152_s15 = smov 19  }
  0x1d   :  { %s5268_s27 = sld [smem:[%s5978_s0 + %s5149_s22]]   ;;  %s5153_s22 = smov 20  }
  0x1e   :  { %s5273_s4 = sld [smem:[%s5978_s0 + %s5150_s28]]   ;;  %s5154_s28 = smov 21  }
  0x1f   :  { %6002 = sst [smem:[#allocation18_spill]] %s5248_s30 }
  0x20   :  { %s5278_s9 = sld [smem:[%s5978_s0 + %s5151_s7]]   ;;  %s5155_s7 = smov 22  }
  0x21   :  { %s5283_s17 = sld [smem:[%s5978_s0 + %s5152_s15]]   ;;  %s5156_s15 = smov 23  }
  0x22   :  { %s5288_s13 = sld [smem:[%s5978_s0 + %s5153_s22]]   ;;  %s5157_s22 = smov 24  }
  0x23   :  { %s5293_s5 = sld [smem:[%s5978_s0 + %s5154_s28]]   ;;  %s5158_s28 = smov 25  }
  0x26   :  { %6003 = sst [smem:[#allocation19_spill]] %s5278_s9 }
  0x27   :  { %6004 = sst [smem:[#allocation20_spill]] %s5283_s17 }
  0x28   :  { %6005 = sst [smem:[#allocation21_spill]] %s5288_s13 }
  0x29   :  { %6006 = sst [smem:[#allocation22_spill]] %s5293_s5 }
  0x2a   :  { %s5298_s9 = sld [smem:[%s5978_s0 + %s5155_s7]]   ;;  %s5159_s7 = smov 26  }
  0x2b   :  { %s5303_s17 = sld [smem:[%s5978_s0 + %s5156_s15]]   ;;  %s5160_s15 = smov 27  }
  0x2c   :  { %s5308_s13 = sld [smem:[%s5978_s0 + %s5157_s22]]   ;;  %s5161_s22 = smov 28  }
  0x2d   :  { %s5313_s5 = sld [smem:[%s5978_s0 + %s5158_s28]]   ;;  %s5162_s28 = smov 29  }
  0x30   :  { %6007 = sst [smem:[#allocation23_spill]] %s5298_s9 }
  0x31   :  { %6008 = sst [smem:[#allocation24_spill]] %s5303_s17 }
  0x32   :  { %6009 = sst [smem:[#allocation25_spill]] %s5308_s13 }
  0x33   :  { %6010 = sst [smem:[#allocation26_spill]] %s5313_s5 }
  0x34   :  { %s5318_s9 = sld [smem:[%s5978_s0 + %s5159_s7]]   ;;  %s5163_s7 = smov 30  }
  0x35   :  { %s5323_s17 = sld [smem:[%s5978_s0 + %s5160_s15]]  }
  0x36   :  { %s5328_s13 = sld [smem:[%s5978_s0 + %s5161_s22]]  }
  0x37   :  { %s5333_s5 = sld [smem:[%s5978_s0 + %s5162_s28]]  }
  0x3a   :  { %6011 = sst [smem:[#allocation27_spill]] %s5318_s9 }
  0x3b   :  { %6012 = sst [smem:[#allocation28_spill]] %s5323_s17 }
  0x3c   :  { %6013 = sst [smem:[#allocation29_spill]] %s5328_s13 }
  0x3d   :  { %6014 = sst [smem:[#allocation30_spill]] %s5333_s5 }
  0x3e   :  { %s5338_s9 = sld [smem:[%s5978_s0 + %s5163_s7]]  }
  0x44   :  { %6015 = sst [smem:[#allocation31_spill]] %s5338_s9 }
  0x45   :  { %66 = vsyncpa [#allocation4], 0  ;;  %s5340_s15 = smov 0  }
  0x46 LB: > { %6016 = sst [smem:[#allocation32_spill]] %s5132_s15  ;;  %s5346_s16 = sadd.s32 4294967295, %s5132_s15   ;;  %s5132_s15 = sphi %s5340_s15, %s72_s15  }
  0x47   : > { %6017 = sst [smem:[#allocation33_spill]] %s5346_s16  ;;  %p4383_p0 = scmp.ge.s32.totalorder %s5132_s15, 1 }
  0x48   : > { %p1021_p1 = scmp.lt.s32.totalorder %s5132_s15, 3 }
  0x4a   : > { %p1022_p2 = pnand %p4383_p0, %p1021_p1 }
  0x4c   : > { %1025 = sbr.rel (%p1022_p2) target bundleno = 5957 (0x1745), region = 140 }
  0x53   : > { %s6019_s21 = sld [smem:[#allocation10_spill]]  ;;  %s6020_s29 = sld [smem:[#allocation12_spill]] }
  0x54   : > { %s6022_s8 = sld [smem:[#allocation14_spill]]  ;;  %s6026_s30 = sld [smem:[#allocation18_spill]] }
  0x55   : > { %p1171_p3 = scmp.lt.s32.totalorder %s5346_s16, 1  ;;  %s6027_s22 = sld [smem:[#allocation19_spill]] }
  0x56   : > { %s6028_s26 = sld [smem:[#allocation20_spill]]  ;;  %s6030_s1 = sld [smem:[#allocation21_spill]] }
  0x57   : > { %s5352_s0 = scalar_select %p1171_p3, %s5346_s16, 1 }
  0x58   : > { %s6031_s7 = sld [smem:[#allocation22_spill]]  ;;  %s6033_s11 = sld [smem:[#allocation23_spill]] }
  0x59   : > { %s4497_s18 = sshll.u32 %s5352_s0, 4  ;;  %s4498_s2 = sshll.u32 %s5352_s0, 5 }
  0x5a   : > { %s5358_s28 = scalar_lea.vmem %s6019_s21, %s4497_s18  ;;  %s5362_s10 = scalar_lea.vmem %s6020_s29, %s4498_s2 }
  0x5b   : > { %6029 = sst [smem:[#allocation34_spill]] %s5358_s28  ;;  %s5367_s5 = scalar_lea.vmem %s6022_s8, %s4497_s18 }
  0x5c   : > { %6032 = sst [smem:[#allocation35_spill]] %s5362_s10  ;;  %s5376_s28 = scalar_lea.vmem %s6026_s30, %s4497_s18 }
  0x5d   : > { %6035 = sst [smem:[#allocation36_spill]] %s5367_s5  ;;  %s5381_s29 = scalar_lea.vmem %s5258_s12, %s4498_s2 }
  0x5e   : > { %s1216_s10 = scalar_lea.vmem %s5263_s20, %s5352_s0  ;;  %s5386_s3 = scalar_lea.vmem %s5268_s27, %s4497_s18 }
  0x5f   : > { %s1224_s15 = scalar_lea.vmem %s5273_s4, %s5352_s0  ;;  %s1227_s8 = scalar_lea.vmem %s6027_s22, %s5352_s0 }
  0x60   : > { %s1230_s5 = scalar_lea.vmem %s6028_s26, %s5352_s0  ;;  %s5395_s13 = scalar_lea.vmem %s6030_s1, %s4498_s2 }
  0x61   : > { %s1238_s14 = scalar_lea.vmem %s6031_s7, %s5352_s0  ;;  %s5400_s19 = scalar_lea.vmem %s6033_s11, %s4497_s18 }
  0x62   : > { %s6038_s30 = sld [smem:[#allocation33_spill]] }
  0x68   : > { %p4400_p4 = scmp.ne.s32.totalorder %s6038_s30, 0 }
  0x69   : > { %s6039_s16 = sld [smem:[#allocation6_spill]] (!%p4400_p4)  ;;  %vm1260_vm0 = vcmask (!%p4400_p4), 261120  }
  0x6a   : > { %1257 = sbr.rel (%p4400_p4) target bundleno = 113 (0x71), region = 144 }
  0x6f   : > { %v1258_v0 = vld [vmem:[%s6039_s16] sm:$0xff] (!%p4400_p4)  ;;  %v1259_v1 = vld [vmem:[%s6039_s16 + $0x8] sm:$0xff] (!%p4400_p4) }
  0x70   : > { %1261 = vst.msk [vmem:[#allocation2] sm:$0xff] (!%p4400_p4), %vm1260_vm0, %v1258_v0  ;;  %1262 = vst.msk [vmem:[#allocation2 + $0x8] sm:$0xff] (!%p4400_p4), %vm1260_vm0, %v1259_v1 }
  0x71 PF: > { %vm1321_vm1 = vcmask 261120   ;;  %s6040_s22 = sld [smem:[#allocation35_spill]]  ;;  %s6041_s18 = sld [smem:[#allocation34_spill]]  ;;  %v5164_v2 = vmov 0.0   ;;  %vm5165_vm2 = vmmov 0   ;;  %vm1453_vm3 = vcmask 64512  }
  0x72   : > { %4616 = vmatprep.subr.bf16.mxu1 %v5164_v2  ;;  %4608 = vmatprep.subr.bf16.mxu0 %v5164_v2  ;;  %s6042_s9 = sld [smem:[#allocation13_spill]]  ;;  %s6043_s17 = sld [smem:[#allocation11_spill]]  ;;  %vm1520_vm4 = vcmask 1043456   ;;  %vm1914_vm5 = vcmask 130048   ;;  %vm1916_vm6 = vcmask 195584   ;;  %vm3811_vm7 = vcmask 523264  }
  0x73   : > { %4624 = vmatprep.mubr.msk.bf16.mxu1 %vm5165_vm2, %v5164_v2  ;;  %4612 = vmatprep.mubr.msk.bf16.mxu0 %vm5165_vm2, %v5164_v2  ;;  %s5166_s26 = smov 96   ;;  %s5167_s1 = smov 120  }
  0x74   : > { %s5168_s2 = smov 112   ;;  %s5169_s7 = smov 104  }
  0x75   : > { %s6046_s11 = sld [smem:[#allocation8_spill]]  ;;  %s6049_s24 = sld [smem:[#allocation15_spill]] }
  0x77   : > { %v4986_v3 = vld [vmem:[%s6040_s22] sm:$0xff]   ;;  %v4987_v4 = vld [vmem:[%s6040_s22 + $0x8] sm:$0xff]   ;;  %v4988_v6 = vld [vmem:[%s6040_s22 + $0x10] sm:$0xff]  }
  0x78   : > { %v1399_v5 = vsel %vm1321_vm1, %v4986_v3, 0  ;;  %v4989_v7 = vld [vmem:[%s6041_s18] sm:$0xff]   ;;  %v4991_v9 = vld [vmem:[%s6041_s18 + $0x8] sm:$0xff]   ;;  %v1402_v10 = vsel %vm1321_vm1, %v4987_v4, 0  ;;  %v1405_v11 = vsel %vm1321_vm1, %v4988_v6, 0  ;;  %v4990_v16 = vld [vmem:[%s6040_s22 + $0x18] sm:$0xff]   ;;  %s6044_s30 = scalar_lea.vmem %s6042_s9, %s5352_s0  ;;  %s6045_s23 = scalar_lea.vmem %s6043_s17, %s5352_s0 }
  0x79   : > { %4617 = vmatpush3.bf16.xpose.msra.mxu1 %v1399_v5  ;;  %v1326_v8 = vsel %vm1321_vm1, %v4989_v7, 0  ;;  %v1329_v12 = vsel %vm1321_vm1, %v4991_v9, 0  ;;  %v5430_v13 = vld [vmem:[#allocation2] sm:$0xff]  ;;  %v5432_v14 = vld [vmem:[#allocation2 + $0x8] sm:$0xff]  ;;  %v1408_v17 = vsel %vm1321_vm1, %v4990_v16, 0  ;;  %s6047_s22 = sld [smem:[#allocation9_spill]] }
  0x7a   : > { %4618 = vmatprep.subr.bf16.mxu1 %v5164_v2  ;;  %4609 = vmatpush3.bf16.xpose.msra.mxu0 %v1326_v8  ;;  %v1304_v15 = vpack.c.bf16 %v5432_v14, %v5430_v13  ;;  %v4408_v22 = vld [vmem:[%s6044_s30] ss:$0 sm:$0xff]  ;;  %s5170_s18 = smov 80   ;;  %s5171_s9 = smov 88  }
  0x7b   : > { %4610 = vmatprep.subr.bf16.mxu0 %v5164_v2  ;;  %v4404_v27 = vld [vmem:[%s6045_s23] ss:$0 sm:$0xff]  ;;  %s5172_s17 = smov 72   ;;  %s6048_s30 = sld [smem:[#allocation36_spill]] }
  0x7c   : > { %v5486_v39 = vld [vmem:[%s6046_s11] sm:$0xff]  ;;  %s5173_s23 = smov 8   ;;  %s5174_s11 = smov 16  }
  0x7d   : > { %s6050_s21 = scalar_lea.vmem %s6049_s24, %s5352_s0  ;;  %s6052_s24 = sld [smem:[#allocation16_spill]] }
  0x7f   : > { %v4401_v40 = vld [vmem:[%s6047_s22] ss:$0 sm:$0xff] }
  0x80   : > { %v5490_v41 = vadd.f32 %v4401_v40, %v5486_v39 }
  0x81   : > { %4619 = vmatpush3.bf16.xpose.msra.mxu1 %v1402_v10 }
  0x82   : > { %4620 = vmatprep.subr.bf16.mxu1 %v5164_v2  ;;  %4611 = vmatpush3.bf16.xpose.msra.mxu0 %v1329_v12 }
  0x83   : > { %4628 = vmatprep.subr.bf16.mxu0 %v5164_v2 }
  0x89   : > { %4621 = vmatpush3.bf16.xpose.msra.mxu1 %v1405_v11  ;;  %4613 = vmatmul.mubr.msk.bf16.vlgmr.msra.gmra.mrb[0].mxu0 %vm1321_vm1, %v1304_v15 }
  0x8a   : > { %4622 = vmatprep.subr.bf16.mxu1 %v5164_v2  ;;  %4630 = vmatprep.mubr.msk.bf16.mxu0 %vm5165_vm2, %v5164_v2 }
  0x91   : > { %4623 = vmatpush3.bf16.xpose.msra.mxu1 %v1408_v17 }
  0x92   : > { %4646 = vmatprep.subr.bf16.mxu1 %v5164_v2 }
  0x98   : > { %4625 = vmatmul.mubr.msk.bf16.vlgmr.msra.gmra.mrb[0].mxu1 %vm1321_vm1, %v1304_v15 }
  0x99   : > { %4648 = vmatprep.mubr.msk.bf16.mxu1 %vm5165_vm2, %v5164_v2 }
 0x15c   : > { %v1365_v18 = vpop.f32.mrb[0].mxu0 }
 0x15d   : > { %v4614_v19 = vpop.f32.mrb[1].mxu0  ;;  %v1366_v30 = vadd.f32 %v4404_v27, %v1365_v18 }
 0x15e   : > { %v1368_v20 = vpop.f32.mrb[2].mxu0 }
 0x15f   : > { %v4615_v21 = vpop.f32.mrb[3].mxu0  ;;  %v1451_v32 = vpack.c.bf16 %v1366_v30, %v1366_v30  ;;  %v1369_v35 = vadd.f32 %v4404_v27, %v1368_v20 }
 0x161   : > { %v5475_v36 = vpack.c.bf16 %v1369_v35, %v1369_v35 }
 0x16b   : > { %v1444_v23 = vpop.f32.mrb[0].mxu1 }
 0x16c   : > { %v1445_v24 = vadd.f32 %v4408_v22, %v1444_v23  ;;  %v4626_v25 = vpop.f32.mrb[1].mxu1 }
 0x16d   : > { %v1447_v26 = vpop.f32.mrb[2].mxu1 }
 0x16e   : > { %v5453_v28 = vpack.c.bf16 %v1445_v24, %v1445_v24  ;;  %v4627_v29 = vpop.f32.mrb[3].mxu1  ;;  %v1448_v33 = vadd.f32 %v4408_v22, %v1447_v26 }
 0x170   : > { %1515 = vrot.lane.b32.xlu1 %v5453_v28, %s5166_s26  ;;  %v1458_v31 = vsel %vm1453_vm3, %v5453_v28, 0  ;;  %v5471_v34 = vpack.c.bf16 %v1448_v33, %v1448_v33 }
 0x171   : > { %4629 = vmatpush3.bf16.xpose.msra.mxu0 %v1458_v31 }
 0x172   : > { %4634 = vmatprep.subr.bf16.mxu0 %v5164_v2  ;;  %v1924_v4 = vsel %vm1453_vm3, %v5471_v34, 0 }
 0x174   : > { %1567 = vrot.lane.b32.xlu1 %v5453_v28, %s5167_s1 }
 0x178   : > { %1679 = vrot.lane.b32.xlu1 %v5453_v28, %s5168_s2  ;;  %4631 = vmatmul.mubr.msk.bf16.vlgmr.msra.gmra.mrb[4].mxu0 %vm1453_vm3, %v1451_v32 }
 0x179   : > { %4636 = vmatprep.mubr.msk.bf16.mxu0 %vm5165_vm2, %v5164_v2 }
 0x17c   : > { %1677 = vrot.lane.b32.xlu1 %v1451_v32, %s5168_s2 }
 0x180   : > { %1791 = vrot.lane.b32.xlu1 %v5453_v28, %s5169_s7 }
 0x184   : > { %1789 = vrot.lane.b32.xlu1 %v1451_v32, %s5169_s7 }
 0x188   : > { %2032 = vrot.lane.b32.xlu1 %v5471_v34, %s5167_s1 }
 0x18c   : > { %2030 = vrot.lane.b32.xlu1 %v5475_v36, %s5167_s1 }
 0x190   : > { %2142 = vrot.lane.b32.xlu1 %v5475_v36, %s5168_s2 }
 0x194   : > { %2254 = vrot.lane.b32.xlu1 %v5475_v36, %s5169_s7 }
 0x1e2   : > { %v1516_v37 = vpop.permute.xlu1 %1515 }
 0x1e3   : > { %v1522_v38 = vsel %vm1520_vm4, %v1516_v37, 0 }
 0x1e4   : > { %4635 = vmatpush3.bf16.msra.mxu0 %v1522_v38 }
 0x1e5   : > { %4640 = vmatprep.subr.bf16.mxu0 %v5164_v2 }
 0x1e6   : > { %v1568_v56 = vpop.permute.xlu1 %1567 }
 0x1e7   : > { %v1573_v59 = vsel %vm1453_vm3, %v1568_v56, 0 }
 0x1ea   : > { %v1680_v60 = vpop.permute.xlu1 %1679 }
 0x1eb   : > { %v1685_v63 = vsel %vm1453_vm3, %v1680_v60, 0 }
 0x1ee   : > { %v1678_v61 = vpop.permute.xlu1 %1677 }
 0x1f2   : > { %v1792_v0 = vpop.permute.xlu1 %1791 }
 0x1f3   : > { %v1797_v1 = vsel %vm1453_vm3, %v1792_v0, 0 }
 0x1f6   : > { %v1790_v3 = vpop.permute.xlu1 %1789 }
 0x1fa   : > { %v2033_v5 = vpop.permute.xlu1 %2032 }
 0x1fb   : > { %v2038_v6 = vsel %vm1453_vm3, %v2033_v5, 0 }
 0x1fe   : > { %v2031_v8 = vpop.permute.xlu1 %2030 }
 0x202   : > { %v2143_v11 = vpop.permute.xlu1 %2142 }
 0x206   : > { %v2255_v15 = vpop.permute.xlu1 %2254 }
 0x24b   : > { %v1494_v42 = vpop.f32.mrb[4].mxu0 }
 0x24c   : > { %v1500_v43 = vmul.f32 0.35355338, %v1494_v42  ;;  %v4632_v44 = vpop.f32.mrb[5].mxu0 }
 0x24d   : > { %v1497_v45 = vpop.f32.mrb[6].mxu0  ;;  %v4403_v44 = vld [vmem:[%s6047_s22 + $0x1] ss:$0 sm:$0xff] }
 0x24e   : > { %v4633_v46 = vpop.f32.mrb[7].mxu0  ;;  %v1501_v47 = vadd.f32 %v1500_v43, %v5490_v41 }
 0x24f   : > { %v1284_v46 = vadd.f32 %v4403_v44, %v5486_v39 }
 0x250   : > { %v1502_v48 = vsel %vm1453_vm3, %v1501_v47, -inf }
 0x251   : > { %1503 = vmax.xlane.f32.xlu0 %v1502_v48 }
 0x2de   : > { %v1504_v49 = vpop.xlane.xlu0 %1503 }
 0x2df   : > { %v1505_v50 = vsub.f32 %v1501_v47, %v1504_v49 }
 0x2e1   : > { %v1506_v51 = vmul.f32 1.442695, %v1505_v50 }
 0x2e3   : > { %5008 = vpow2.f32 %v1506_v51 }
 0x2ed   : > { %v5009_v52 = vpop.eup %5008 }
 0x2ee   : > { %v1508_v53 = vsel %vm1453_vm3, %v5009_v52, 0.0 }
 0x2ef   : > { %1509 = vadd.xlane.f32.xlu0 %v1508_v53 }
 0x305   : > { %1565 = vrot.lane.b32.xlu0 %v1451_v32, %s5167_s1 }
 0x309   : > { %2144 = vrot.lane.b32.xlu0 %v5471_v34, %s5168_s2 }
 0x30d   : > { %2256 = vrot.lane.b32.xlu0 %v5471_v34, %s5169_s7 }
 0x37c   : > { %v1510_v54 = vpop.xlane.xlu0 %1509 }
 0x37d   : > { %5010 = vrcp.f32 %v1510_v54 }
 0x380   : > { %v1566_v62 = vpop.permute.xlu0 %1565 }
 0x384   : > { %v2145_v7 = vpop.permute.xlu0 %2144 }
 0x385   : > { %v2150_v9 = vsel %vm1453_vm3, %v2145_v7, 0 }
 0x387   : > { %v5011_v55 = vpop.eup %5010 }
 0x388   : > { %v1512_v57 = vmul.f32 %v5011_v55, %v5009_v52  ;;  %v2257_v10 = vpop.permute.xlu0 %2256 }
 0x389   : > { %v2262_v12 = vsel %vm1453_vm3, %v2257_v10, 0 }
 0x38a   : > { %v1513_v58 = vpack.c.bf16 %v1512_v57, %v1512_v57 }
 0x38c   : > { %4637 = vmatmul.mubr.msk.bf16.vlgmr.msra.gmra.mrb[8].mxu0 %vm1453_vm3, %v1513_v58 }
 0x38d   : > { %4641 = vmatpush3.bf16.xpose.msra.mxu0 %v1573_v59  ;;  %4642 = vmatprep.mubr.msk.bf16.mxu0 %vm5165_vm2, %v5164_v2 }
 0x38e   : > { %4652 = vmatprep.subr.bf16.mxu0 %v5164_v2 }
 0x394   : > { %4643 = vmatmul.mubr.msk.bf16.vlgmr.msra.gmra.mrb[12].mxu0 %vm1453_vm3, %v1566_v62 }
 0x395   : > { %4653 = vmatpush3.bf16.xpose.msra.mxu0 %v1685_v63  ;;  %4654 = vmatprep.mubr.msk.bf16.mxu0 %vm5165_vm2, %v5164_v2 }
 0x396   : > { %4664 = vmatprep.subr.bf16.mxu0 %v5164_v2 }
 0x39c   : > { %4655 = vmatmul.mubr.msk.bf16.vlgmr.msra.gmra.mrb[16].mxu0 %vm1453_vm3, %v1678_v61 }
 0x39d   : > { %4665 = vmatpush3.bf16.xpose.msra.mxu0 %v1797_v1  ;;  %4666 = vmatprep.mubr.msk.bf16.mxu0 %vm5165_vm2, %v5164_v2 }
 0x39e   : > { %4676 = vmatprep.subr.bf16.mxu0 %v5164_v2 }
 0x3a4   : > { %4667 = vmatmul.mubr.msk.bf16.vlgmr.msra.gmra.mrb[20].mxu0 %vm1453_vm3, %v1790_v3 }
 0x3a5   : > { %4677 = vmatpush3.bf16.xpose.msra.mxu0 %v1924_v4  ;;  %4678 = vmatprep.mubr.msk.bf16.mxu0 %vm5165_vm2, %v5164_v2 }
 0x3a6   : > { %4688 = vmatprep.subr.bf16.mxu0 %v5164_v2 }
 0x3ac   : > { %4679 = vmatmul.mubr.msk.bf16.vlgmr.msra.gmra.mrb[24].mxu0 %vm1453_vm3, %v5475_v36 }
 0x3ad   : > { %4689 = vmatpush3.bf16.xpose.msra.mxu0 %v2038_v6  ;;  %4690 = vmatprep.mubr.msk.bf16.mxu0 %vm5165_vm2, %v5164_v2 }
 0x3ae   : > { %4700 = vmatprep.subr.bf16.mxu0 %v5164_v2 }
 0x3b4   : > { %4691 = vmatmul.mubr.msk.bf16.vlgmr.msra.gmra.mrb[28].mxu0 %vm1453_vm3, %v2031_v8 }
 0x3b5   : > { %4701 = vmatpush3.bf16.xpose.msra.mxu0 %v2150_v9  ;;  %4702 = vmatprep.mubr.msk.bf16.mxu0 %vm5165_vm2, %v5164_v2 }
 0x3b6   : > { %4712 = vmatprep.subr.bf16.mxu0 %v5164_v2 }
 0x3bc   : > { %4703 = vmatmul.mubr.msk.bf16.vlgmr.msra.gmra.mrb[32].mxu0 %vm1453_vm3, %v2143_v11 }
 0x3bd   : > { %4713 = vmatpush3.bf16.xpose.msra.mxu0 %v2262_v12  ;;  %4714 = vmatprep.mubr.msk.bf16.mxu0 %vm5165_vm2, %v5164_v2 }
 0x3be   : > { %4724 = vmatprep.subr.bf16.mxu0 %v5164_v2 }
 0x3c4   : > { %4715 = vmatmul.mubr.msk.bf16.vlgmr.msra.gmra.mrb[36].mxu0 %vm1453_vm3, %v2255_v15 }
 0x3c5   : > { %4728 = vmatprep.mubr.msk.bf16.mxu0 %vm5165_vm2, %v5164_v2 }
 0x45f   : > { %v5540_v16 = vpop.f32.mrb[8].mxu0 }
 0x460   : > { %v4638_v17 = vpop.f32.mrb[9].mxu0 }
 0x461   : > { %v1561_v18 = vpop.f32.mrb[10].mxu0 }
 0x462   : > { %v4639_v19 = vpop.f32.mrb[11].mxu0 }
 0x467   : > { %v1609_v20 = vpop.f32.mrb[12].mxu0 }
 0x468   : > { %v1615_v21 = vmul.f32 0.35355338, %v1609_v20  ;;  %v4644_v22 = vpop.f32.mrb[13].mxu0 }
 0x469   : > { %v1612_v23 = vpop.f32.mrb[14].mxu0 }
 0x46a   : > { %v4645_v24 = vpop.f32.mrb[15].mxu0  ;;  %v1616_v25 = vadd.f32 %v1615_v21, %v5490_v41 }
 0x46c   : > { %v1617_v26 = vsel %vm1453_vm3, %v1616_v25, -inf }
 0x46d   : > { %1618 = vmax.xlane.f32.xlu0 %v1617_v26 }
 0x46f   : > { %v1721_v27 = vpop.f32.mrb[16].mxu0 }
 0x470   : > { %v1727_v29 = vmul.f32 0.35355338, %v1721_v27  ;;  %v4656_v30 = vpop.f32.mrb[17].mxu0 }
 0x471   : > { %v1724_v31 = vpop.f32.mrb[18].mxu0 }
 0x472   : > { %v4657_v32 = vpop.f32.mrb[19].mxu0  ;;  %v1728_v33 = vadd.f32 %v1727_v29, %v5490_v41 }
 0x474   : > { %v1729_v35 = vsel %vm1453_vm3, %v1728_v33, -inf }
 0x475   : > { %1730 = vmax.xlane.f32.xlu1 %v1729_v35 }
 0x477   : > { %v1833_v36 = vpop.f32.mrb[20].mxu0 }
 0x478   : > { %v1839_v37 = vmul.f32 0.35355338, %v1833_v36  ;;  %v4668_v38 = vpop.f32.mrb[21].mxu0 }
 0x479   : > { %v1836_v40 = vpop.f32.mrb[22].mxu0 }
 0x47a   : > { %v4669_v42 = vpop.f32.mrb[23].mxu0  ;;  %v1840_v43 = vadd.f32 %v1839_v37, %v5490_v41 }
 0x47c   : > { %v1841_v45 = vsel %vm1453_vm3, %v1840_v43, -inf }
 0x47d   : > { %1842 = vmax.xlane.f32.xlu0 %v1841_v45 }
 0x47f   : > { %v1960_v47 = vpop.f32.mrb[24].mxu0 }
 0x480   : > { %v1966_v48 = vmul.f32 0.35355338, %v1960_v47  ;;  %v4680_v49 = vpop.f32.mrb[25].mxu0 }
 0x481   : > { %v1963_v50 = vpop.f32.mrb[26].mxu0 }
 0x482   : > { %v4681_v51 = vpop.f32.mrb[27].mxu0  ;;  %v5550_v52 = vadd.f32 %v1966_v48, %v1284_v46 }
 0x484   : > { %v1968_v53 = vsel %vm1453_vm3, %v5550_v52, -inf }
 0x485   : > { %1969 = vmax.xlane.f32.xlu0 %v1968_v53 }
 0x487   : > { %v2074_v54 = vpop.f32.mrb[28].mxu0 }
 0x488   : > { %v2080_v55 = vmul.f32 0.35355338, %v2074_v54  ;;  %v4692_v41 = vpop.f32.mrb[29].mxu0 }
 0x489   : > { %v2077_v56 = vpop.f32.mrb[30].mxu0 }
 0x48a   : > { %v4693_v57 = vpop.f32.mrb[31].mxu0  ;;  %v2081_v58 = vadd.f32 %v2080_v55, %v1284_v46 }
 0x48c   : > { %v2082_v59 = vsel %vm1453_vm3, %v2081_v58, -inf }
 0x48d   : > { %2083 = vmax.xlane.f32.xlu1 %v2082_v59 }
 0x48f   : > { %v2186_v39 = vpop.f32.mrb[32].mxu0 }
 0x490   : > { %v2192_v60 = vmul.f32 0.35355338, %v2186_v39  ;;  %v4704_v61 = vpop.f32.mrb[33].mxu0 }
 0x491   : > { %v2189_v62 = vpop.f32.mrb[34].mxu0 }
 0x492   : > { %v4705_v63 = vpop.f32.mrb[35].mxu0  ;;  %v2193_v0 = vadd.f32 %v2192_v60, %v1284_v46 }
 0x494   : > { %v2194_v1 = vsel %vm1453_vm3, %v2193_v0, -inf }
 0x495   : > { %2195 = vmax.xlane.f32.xlu0 %v2194_v1 }
 0x497   : > { %v2298_v3 = vpop.f32.mrb[36].mxu0 }
 0x498   : > { %v4716_v4 = vpop.f32.mrb[37].mxu0  ;;  %v2304_v7 = vmul.f32 0.35355338, %v2298_v3 }
 0x499   : > { %v2301_v5 = vpop.f32.mrb[38].mxu0 }
 0x49a   : > { %v4717_v6 = vpop.f32.mrb[39].mxu0  ;;  %v2305_v8 = vadd.f32 %v2304_v7, %v1284_v46 }
 0x49c   : > { %v2306_v9 = vsel %vm1453_vm3, %v2305_v8, -inf }
 0x49e   : > { %1741 = vrot.lane.b32.xlu1 %v5453_v28, %s5170_s18 }
 0x4ab   : > { %1629 = vrot.lane.b32.xlu0 %v5453_v28, %s5171_s9 }
 0x4c2   : > { %2307 = vmax.xlane.f32.xlu1 %v2306_v9 }
 0x4fa   : > { %v1619_v10 = vpop.xlane.xlu0 %1618 }
 0x4fb   : > { %v1620_v11 = vsub.f32 %v1616_v25, %v1619_v10 }
 0x4fd   : > { %v1621_v12 = vmul.f32 1.442695, %v1620_v11 }
 0x4ff   : > { %5012 = vpow2.f32 %v1621_v12 }
 0x502   : > { %v1731_v15 = vpop.xlane.xlu1 %1730 }
 0x503   : > { %v1732_v17 = vsub.f32 %v1728_v33, %v1731_v15 }
 0x505   : > { %v1733_v18 = vmul.f32 1.442695, %v1732_v17 }
 0x507   : > { %5014 = vpow2.f32 %v1733_v18 }
 0x509   : > { %v5013_v19 = vpop.eup %5012 }
 0x50a   : > { %v1843_v20 = vpop.xlane.xlu0 %1842  ;;  %v1623_v21 = vsel %vm1453_vm3, %v5013_v19, 0.0 }
 0x50b   : > { %v1844_v22 = vsub.f32 %v1840_v43, %v1843_v20  ;;  %1624 = vadd.xlane.f32.xlu0 %v1623_v21 }
 0x50d   : > { %v1845_v23 = vmul.f32 1.442695, %v1844_v22 }
 0x50f   : > { %5016 = vpow2.f32 %v1845_v23 }
 0x511   : > { %v5015_v24 = vpop.eup %5014 }
 0x512   : > { %v1735_v26 = vsel %vm1453_vm3, %v5015_v24, 0.0  ;;  %v1970_v29 = vpop.xlane.xlu0 %1969 }
 0x513   : > { %1736 = vadd.xlane.f32.xlu1 %v1735_v26  ;;  %v1971_v33 = vsub.f32 %v5550_v52, %v1970_v29 }
 0x515   : > { %v1972_v36 = vmul.f32 1.442695, %v1971_v33 }
 0x517   : > { %5018 = vpow2.f32 %v1972_v36 }
 0x519   : > { %v5563_v27 = vpop.eup %5016 }
 0x51a   : > { %v1847_v25 = vsel %vm1453_vm3, %v5563_v27, 0.0  ;;  %v2084_v35 = vpop.xlane.xlu1 %2083 }
 0x51b   : > { %1848 = vadd.xlane.f32.xlu0 %v1847_v25  ;;  %v2085_v37 = vsub.f32 %v2081_v58, %v2084_v35 }
 0x51d   : > { %v2086_v38 = vmul.f32 1.442695, %v2085_v37 }
 0x51e   : > { %v1742_v45 = vpop.permute.xlu1 %1741 }
 0x51f   : > { %5020 = vpow2.f32 %v2086_v38  ;;  %v1747_v58 = vsel %vm1520_vm4, %v1742_v45, 0 }
 0x522   : > { %v2196_v30 = vpop.xlane.xlu0 %2195 }
 0x523   : > { %v2197_v40 = vsub.f32 %v2193_v0, %v2196_v30 }
 0x524   : > { %1853 = vrot.lane.b32.xlu1 %v5453_v28, %s5172_s17  ;;  %v5019_v28 = vpop.eup %5018 }
 0x525   : > { %v2198_v42 = vmul.f32 1.442695, %v2197_v40  ;;  %v1974_v43 = vsel %vm1453_vm3, %v5019_v28, 0.0 }
 0x526   : > { %v1630_v31 = vpop.permute.xlu0 %1629 }
 0x527   : > { %v1635_v32 = vsel %vm1520_vm4, %v1630_v31, 0  ;;  %5022 = vpow2.f32 %v2198_v42 }
 0x528   : > { %4647 = vmatpush3.bf16.msra.mxu1 %v1635_v32 }
 0x529   : > { %4658 = vmatprep.subr.bf16.mxu1 %v5164_v2  ;;  %v5575_v44 = vpop.eup %5020 }
 0x52a   : > { %v2088_v46 = vsel %vm1453_vm3, %v5575_v44, 0.0 }
 0x531   : > { %1981 = vrot.lane.b32.xlu0 %v5471_v34, %s5166_s26  ;;  %v5579_v47 = vpop.eup %5022 }
 0x532   : > { %v2200_v49 = vsel %vm1453_vm3, %v5579_v47, 0.0 }
 0x548   : > { %1975 = vadd.xlane.f32.xlu1 %v1974_v43 }
 0x54c   : > { %2089 = vadd.xlane.f32.xlu1 %v2088_v46 }
 0x54f   : > { %v2308_v48 = vpop.xlane.xlu1 %2307 }
 0x550   : > { %v2309_v50 = vsub.f32 %v2305_v8, %v2308_v48  ;;  %2201 = vadd.xlane.f32.xlu0 %v2200_v49  ;;  %v4992_v49 = vld [vmem:[%s6048_s30] sm:$0xff]  }
 0x552   : > { %v2310_v51 = vmul.f32 1.442695, %v2309_v50  ;;  %v2402_v50 = vsel %vm1321_vm1, %v4992_v49, 0 }
 0x553   : > { %4725 = vmatpush3.bf16.xpose.msra.mxu0 %v2402_v50  ;;  %v4998_v50 = vld [vmem:[%s5376_s28] sm:$0xff]  }
 0x554   : > { %5024 = vpow2.f32 %v2310_v51  ;;  %4726 = vmatprep.subr.bf16.mxu0 %v5164_v2 }
 0x55e   : > { %v5583_v52 = vpop.eup %5024 }
 0x55f   : > { %v2312_v53 = vsel %vm1453_vm3, %v5583_v52, 0.0 }
 0x560   : > { %2313 = vadd.xlane.f32.xlu1 %v2312_v53 }
 0x566   : > { %2206 = vrot.lane.b32.xlu0 %v5471_v34, %s5170_s18 }
 0x56a   : > { %2318 = vrot.lane.b32.xlu0 %v5471_v34, %s5172_s17 }
 0x571   : > { %2094 = vrot.lane.b32.xlu1 %v5471_v34, %s5171_s9 }
 0x598   : > { %v1625_v54 = vpop.xlane.xlu0 %1624 }
 0x599   : > { %5026 = vrcp.f32 %v1625_v54 }
 0x5a0   : > { %v1737_v55 = vpop.xlane.xlu1 %1736 }
 0x5a1   : > { %5028 = vrcp.f32 %v1737_v55 }
 0x5a3   : > { %v5027_v41 = vpop.eup %5026 }
 0x5a4   : > { %v1627_v56 = vmul.f32 %v5027_v41, %v5013_v19  ;;  %v1854_v60 = vpop.permute.xlu1 %1853 }
 0x5a5   : > { %v1859_v62 = vsel %vm1520_vm4, %v1854_v60, 0 }
 0x5a6   : > { %v1628_v57 = vpack.c.bf16 %v1627_v56, %v1627_v56 }
 0x5a8   : > { %4649 = vmatmul.mubr.msk.bf16.vlgmr.msra.gmra.mrb[4].mxu1 %vm1453_vm3, %v1628_v57  ;;  %v1849_v59 = vpop.xlane.xlu0 %1848 }
 0x5a9   : > { %4659 = vmatpush3.bf16.msra.mxu1 %v1747_v58  ;;  %5030 = vrcp.f32 %v1849_v59  ;;  %4660 = vmatprep.mubr.msk.bf16.mxu1 %vm5165_vm2, %v5164_v2 }
 0x5aa   : > { %4670 = vmatprep.subr.bf16.mxu1 %v5164_v2 }
 0x5ab   : > { %v5029_v34 = vpop.eup %5028 }
 0x5ac   : > { %v1739_v39 = vmul.f32 %v5029_v34, %v5015_v24  ;;  %v1982_v1 = vpop.permute.xlu0 %1981 }
 0x5ad   : > { %v1987_v4 = vsel %vm1520_vm4, %v1982_v1, 0 }
 0x5ae   : > { %v1740_v61 = vpack.c.bf16 %v1739_v39, %v1739_v39 }
 0x5b0   : > { %4661 = vmatmul.mubr.msk.bf16.vlgmr.msra.gmra.mrb[8].mxu1 %vm1453_vm3, %v1740_v61 }
 0x5b1   : > { %4671 = vmatpush3.bf16.msra.mxu1 %v1859_v62  ;;  %4672 = vmatprep.mubr.msk.bf16.mxu1 %vm5165_vm2, %v5164_v2 }
 0x5b2   : > { %4682 = vmatprep.subr.bf16.mxu1 %v5164_v2 }
 0x5b3   : > { %v5031_v63 = vpop.eup %5030 }
 0x5b4   : > { %v1851_v0 = vmul.f32 %v5031_v63, %v5563_v27 }
 0x5b6   : > { %v1852_v3 = vpack.c.bf16 %v1851_v0, %v1851_v0 }
 0x5b8   : > { %4673 = vmatmul.mubr.msk.bf16.vlgmr.msra.gmra.mrb[12].mxu1 %vm1453_vm3, %v1852_v3 }
 0x5b9   : > { %4683 = vmatpush3.bf16.msra.mxu1 %v1987_v4  ;;  %4684 = vmatprep.mubr.msk.bf16.mxu1 %vm5165_vm2, %v5164_v2 }
 0x5ba   : > { %4694 = vmatprep.subr.bf16.mxu1 %v5164_v2 }
 0x5d5   : > { %v1976_v5 = vpop.xlane.xlu1 %1975 }
 0x5d6   : > { %5032 = vrcp.f32 %v1976_v5 }
 0x5d9   : > { %v2090_v7 = vpop.xlane.xlu1 %2089 }
 0x5da   : > { %5034 = vrcp.f32 %v2090_v7 }
 0x5dd   : > { %v2202_v10 = vpop.xlane.xlu0 %2201 }
 0x5de   : > { %5036 = vrcp.f32 %v2202_v10 }
 0x5e0   : > { %v5033_v6 = vpop.eup %5032 }
 0x5e1   : > { %v1978_v8 = vmul.f32 %v5033_v6, %v5019_v28  ;;  %v2207_v19 = vpop.permute.xlu0 %2206 }
 0x5e2   : > { %v2212_v22 = vsel %vm1520_vm4, %v2207_v19, 0 }
 0x5e3   : > { %v1979_v9 = vpack.c.bf16 %v1978_v8, %v1978_v8 }
 0x5e4   : > { %v5035_v11 = vpop.eup %5034 }
 0x5e5   : > { %4685 = vmatmul.mubr.msk.bf16.vlgmr.msra.gmra.mrb[16].mxu1 %vm1453_vm3, %v1979_v9  ;;  %v2092_v15 = vmul.f32 %v5035_v11, %v5575_v44  ;;  %v2319_v24 = vpop.permute.xlu0 %2318 }
 0x5e6   : > { %4696 = vmatprep.mubr.msk.bf16.mxu1 %vm5165_vm2, %v5164_v2  ;;  %v2324_v25 = vsel %vm1520_vm4, %v2319_v24, 0 }
 0x5e7   : > { %v2093_v20 = vpack.c.bf16 %v2092_v15, %v2092_v15 }
 0x5e8   : > { %v5037_v21 = vpop.eup %5036 }
 0x5e9   : > { %v2204_v23 = vmul.f32 %v5037_v21, %v5579_v47  ;;  %v4430_v21 = vld [vmem:[%s6050_s21] ss:$0 sm:$0xff]  ;;  %s6051_s21 = sld [smem:[#allocation7_spill]] }
 0x5eb   : > { %v2205_v26 = vpack.c.bf16 %v2204_v23, %v2204_v23 }
 0x5ed   : > { %v2314_v12 = vpop.xlane.xlu1 %2313 }
 0x5ee   : > { %5038 = vrcp.f32 %v2314_v12 }
 0x5f1   : > { %v2095_v17 = vpop.permute.xlu1 %2094 }
 0x5f2   : > { %v2100_v18 = vsel %vm1520_vm4, %v2095_v17, 0 }
 0x5f3   : > { %4695 = vmatpush3.bf16.msra.mxu1 %v2100_v18 }
 0x5f4   : > { %4706 = vmatprep.subr.bf16.mxu1 %v5164_v2 }
 0x5f6   : > { %4697 = vmatmul.mubr.msk.bf16.vlgmr.msra.gmra.mrb[20].mxu1 %vm1453_vm3, %v2093_v20 }
 0x5f7   : > { %4707 = vmatpush3.bf16.msra.mxu1 %v2212_v22  ;;  %4708 = vmatprep.mubr.msk.bf16.mxu1 %vm5165_vm2, %v5164_v2 }
 0x5f8   : > { %4718 = vmatprep.subr.bf16.mxu1 %v5164_v2  ;;  %v5039_v27 = vpop.eup %5038 }
 0x5f9   : > { %v2316_v29 = vmul.f32 %v5039_v27, %v5583_v52  ;;  %v4993_v52 = vld [vmem:[%s6048_s30 + $0x8] sm:$0xff]   ;;  %s5175_s30 = smov 24  }
 0x5fa   : > { %v2405_v41 = vsel %vm1321_vm1, %v4993_v52, 0  ;;  %v1265_v52 = vld [vmem:[%s6051_s21] sm:$0xff] }
 0x5fb   : > { %v2317_v30 = vpack.c.bf16 %v2316_v29, %v2316_v29  ;;  %4727 = vmatpush3.bf16.xpose.msra.mxu0 %v2405_v41 }
 0x5fc   : > { %4740 = vmatprep.subr.bf16.mxu0 %v5164_v2 }
 0x5fe   : > { %4709 = vmatmul.mubr.msk.bf16.vlgmr.msra.gmra.mrb[24].mxu1 %vm1453_vm3, %v2205_v26 }
 0x5ff   : > { %4719 = vmatpush3.bf16.msra.mxu1 %v2324_v25  ;;  %4720 = vmatprep.mubr.msk.bf16.mxu1 %vm5165_vm2, %v5164_v2 }
 0x600   : > { %4732 = vmatprep.subr.bf16.mxu1 %v5164_v2 }
 0x606   : > { %4721 = vmatmul.mubr.msk.bf16.vlgmr.msra.gmra.mrb[28].mxu1 %vm1453_vm3, %v2317_v30 }
 0x607   : > { %4736 = vmatprep.mubr.msk.bf16.mxu1 %vm5165_vm2, %v5164_v2 }
 0x67b   : > { %v1671_v31 = vpop.f32.mrb[4].mxu1 }
 0x67c   : > { %v4650_v32 = vpop.f32.mrb[5].mxu1 }
 0x67d   : > { %v1674_v33 = vpop.f32.mrb[6].mxu1  ;;  %v4994_v32 = vld [vmem:[%s5381_s29] sm:$0xff]  }
 0x67e   : > { %v4651_v35 = vpop.f32.mrb[7].mxu1  ;;  %v2612_v33 = vsel %vm1321_vm1, %v4994_v32, 0 }
 0x67f   : > { %v4995_v35 = vld [vmem:[%s5381_s29 + $0x8] sm:$0xff]  }
 0x683   : > { %v1783_v36 = vpop.f32.mrb[8].mxu1 }
 0x684   : > { %v4662_v37 = vpop.f32.mrb[9].mxu1 }
 0x685   : > { %v1786_v38 = vpop.f32.mrb[10].mxu1 }
 0x686   : > { %v4663_v40 = vpop.f32.mrb[11].mxu1 }
 0x68b   : > { %v1895_v42 = vpop.f32.mrb[12].mxu1 }
 0x68c   : > { %v4674_v28 = vpop.f32.mrb[13].mxu1 }
 0x68d   : > { %v1898_v43 = vpop.f32.mrb[14].mxu1 }
 0x68e   : > { %v4675_v44 = vpop.f32.mrb[15].mxu1 }
 0x6b8   : > { %v2023_v45 = vpop.f32.mrb[16].mxu1 }
 0x6b9   : > { %v4686_v46 = vpop.f32.mrb[17].mxu1 }
 0x6ba   : > { %v2026_v47 = vpop.f32.mrb[18].mxu1  ;;  %v4996_v46 = vld [vmem:[%s5381_s29 + $0x10] sm:$0xff]  }
 0x6bb   : > { %v4687_v48 = vpop.f32.mrb[19].mxu1  ;;  %v2618_v47 = vsel %vm1321_vm1, %v4996_v46, 0 }
 0x6bc   : > { %v4997_v48 = vld [vmem:[%s5381_s29 + $0x18] sm:$0xff]   ;;  %s6053_s29 = sld [smem:[#allocation17_spill]] }
 0x6bd   : > { %v2621_v49 = vsel %vm1321_vm1, %v4997_v48, 0 }
 0x6c2   : > { %s6055_s25 = scalar_lea.vmem %s6053_s29, %s5352_s0 }
 0x6c9   : > { %v2136_v51 = vpop.f32.mrb[20].mxu1 }
 0x6ca   : > { %v4956_v53 = vpack.i.bf16 %v2136_v51, %v1671_v31  ;;  %v4698_v54 = vpop.f32.mrb[21].mxu1  ;;  %v2535_v51 = vsel %vm1321_vm1, %v4998_v50, 0 }
 0x6cb   : > { %v2139_v55 = vpop.f32.mrb[22].mxu1  ;;  %4733 = vmatpush3.bf16.xpose.msra.mxu1 %v2535_v51 }
 0x6cc   : > { %4957 = vrot.lane.b32.xlu1 %v4956_v53, %s5173_s23  ;;  %v4699_v56 = vpop.f32.mrb[23].mxu1  ;;  %v1266_v53 = vld [vmem:[%s6051_s21 + $0x8] sm:$0xff]  ;;  %4734 = vmatprep.subr.bf16.mxu1 %v5164_v2 }
 0x6cd   : > { %v2581_v54 = vpack.c.bf16 %v1266_v53, %v1265_v52  ;;  %v4999_v55 = vld [vmem:[%s5376_s28 + $0x8] sm:$0xff]   ;;  %s6054_s28 = scalar_lea.vmem %s6052_s24, %s5352_s0 }
 0x6ce   : > { %v2538_v41 = vsel %vm1321_vm1, %v4999_v55, 0 }
 0x6d1   : > { %v2248_v57 = vpop.f32.mrb[24].mxu1 }
 0x6d2   : > { %v4961_v58 = vpack.i.bf16 %v2248_v57, %v1783_v36  ;;  %v4710_v59 = vpop.f32.mrb[25].mxu1  ;;  %v2615_v36 = vsel %vm1321_vm1, %v4995_v35, 0 }
 0x6d3   : > { %v2251_v34 = vpop.f32.mrb[26].mxu1  ;;  %4735 = vmatpush3.bf16.xpose.msra.mxu1 %v2538_v41 }
 0x6d4   : > { %4962 = vrot.lane.b32.xlu0 %v4961_v58, %s5174_s11  ;;  %v4711_v39 = vpop.f32.mrb[27].mxu1  ;;  %4752 = vmatprep.subr.bf16.mxu1 %v5164_v2 }
 0x6d9   : > { %v2360_v60 = vpop.f32.mrb[28].mxu1 }
 0x6da   : > { %v4966_v61 = vpack.i.bf16 %v2360_v60, %v1895_v42  ;;  %v4722_v62 = vpop.f32.mrb[29].mxu1 }
 0x6db   : > { %v2363_v63 = vpop.f32.mrb[30].mxu1  ;;  %v4434_v62 = vld [vmem:[%s6054_s28] ss:$0 sm:$0xff] }
 0x6dc   : > { %4967 = vrot.lane.b32.xlu1 %v4966_v61, %s5175_s30  ;;  %v4723_v0 = vpop.f32.mrb[31].mxu1 }
 0x73e   : > { %v4958_v1 = vpop.permute.xlu1 %4957 }
 0x73f   : > { %v4960_v4 = vunpack.i.h.bf16 %v4958_v1  ;;  %v4959_v5 = vunpack.i.l.bf16 %v4958_v1 }
 0x741   : > { %v2378_v9 = vsel %vm1453_vm3, %v2023_v45, %v4960_v4  ;;  %v1913_v10 = vsel %vm1453_vm3, %v5540_v16, %v4959_v5 }
 0x746   : > { %v4963_v3 = vpop.permute.xlu0 %4962 }
 0x747   : > { %v4965_v6 = vunpack.i.h.bf16 %v4963_v3  ;;  %v4964_v7 = vunpack.i.l.bf16 %v4963_v3  ;;  %v4435_v3 = vld [vmem:[%s6055_s25] ss:$0 sm:$0xff]  ;;  %s6056_s25 = scalar_lea.vmem %s5253_s6, %s5352_s0 }
 0x749   : > { %v2379_v15 = vsel %vm1914_vm5, %v2378_v9, %v4965_v6  ;;  %v1915_v17 = vsel %vm1914_vm5, %v1913_v10, %v4964_v7 }
 0x74e   : > { %v4968_v8 = vpop.permute.xlu1 %4967 }
 0x74f   : > { %v4970_v11 = vunpack.i.h.bf16 %v4968_v8  ;;  %v4969_v12 = vunpack.i.l.bf16 %v4968_v8  ;;  %v4440_v8 = vld [vmem:[%s1216_s10] ss:$0 sm:$0xff]  ;;  %s6060_s10 = sld [smem:[#allocation24_spill]] }
 0x751   : > { %v2380_v18 = vsel %vm1916_vm6, %v2379_v15, %v4970_v11  ;;  %v1917_v19 = vsel %vm1916_vm6, %v1915_v17, %v4969_v12 }
 0x752   : > { %v2381_v20 = vpack.c.bf16 %v2380_v18, %v1917_v19 }
 0x754   : > { %4729 = vmatmul.mubr.msk.bf16.vlgmr.msra.gmra.mrb[40].mxu0 %vm1321_vm1, %v2381_v20  ;;  %v4436_v20 = vld [vmem:[%s6056_s25] ss:$0 sm:$0xff] }
 0x755   : > { %4748 = vmatprep.mubr.msk.bf16.mxu0 %vm5165_vm2, %v5164_v2  ;;  %4741 = vmatpush3.bf16.xpose.msra.mxu0 %v2612_v33 }
 0x756   : > { %4742 = vmatprep.subr.bf16.mxu0 %v5164_v2 }
 0x75d   : > { %4743 = vmatpush3.bf16.xpose.msra.mxu0 %v2615_v36 }
 0x75e   : > { %4744 = vmatprep.subr.bf16.mxu0 %v5164_v2 }
 0x765   : > { %4745 = vmatpush3.bf16.xpose.msra.mxu0 %v2618_v47 }
 0x766   : > { %4746 = vmatprep.subr.bf16.mxu0 %v5164_v2 }
 0x76d   : > { %4747 = vmatpush3.bf16.xpose.msra.mxu0 %v2621_v49 }
 0x76e   : > { %4776 = vmatprep.subr.bf16.mxu0 %v5164_v2 }
 0x774   : > { %4749 = vmatmul.mubr.msk.bf16.vlgmr.msra.gmra.mrb[44].mxu0 %vm1321_vm1, %v2581_v54 }
 0x775   : > { %4778 = vmatprep.mubr.msk.bf16.mxu0 %vm5165_vm2, %v5164_v2 }
 0x827   : > { %v2441_v16 = vpop.f32.mrb[40].mxu0 }
 0x828   : > { %v2442_v22 = vadd.f32 %v4430_v21, %v2441_v16  ;;  %v4730_v23 = vpop.f32.mrb[41].mxu0 }
 0x829   : > { %v2444_v24 = vpop.f32.mrb[42].mxu0 }
 0x82a   : > { %v2445_v26 = vadd.f32 %v4430_v21, %v2444_v24  ;;  %v4731_v27 = vpop.f32.mrb[43].mxu0  ;;  %v2448_v25 = vadd.f32 %v2442_v22, %v5430_v13 }
 0x82c   : > { %v2452_v29 = vsel %vm1321_vm1, %v2448_v25, 0.0  ;;  %v2449_v30 = vadd.f32 %v2445_v26, %v5432_v14 }
 0x82d   : > { %2453 = vadd.xlane.f32.xlu0 %v2452_v29 }
 0x82e   : > { %v2455_v31 = vsel %vm1321_vm1, %v2449_v30, 0.0 }
 0x82f   : > { %2456 = vadd.xlane.f32.xlu1 %v2455_v31 }
 0x847   : > { %v2657_v9 = vpop.f32.mrb[44].mxu0 }
 0x848   : > { %v2658_v10 = vadd.f32 %v4440_v8, %v2657_v9  ;;  %v4750_v11 = vpop.f32.mrb[45].mxu0 }
 0x849   : > { %v2660_v12 = vpop.f32.mrb[46].mxu0 }
 0x84a   : > { %v5699_v15 = vpack.c.bf16 %v2658_v10, %v2658_v10  ;;  %v2661_v17 = vadd.f32 %v4440_v8, %v2660_v12  ;;  %v4751_v18 = vpop.f32.mrb[47].mxu0 }
 0x84c   : > { %v2670_v19 = vsel %vm1453_vm3, %v5699_v15, 0  ;;  %v5718_v35 = vpack.c.bf16 %v2661_v17, %v2661_v17 }
 0x84e   : > { %v3129_v41 = vsel %vm1453_vm3, %v5718_v35, 0 }
 0x8ba   : > { %v2454_v13 = vpop.xlane.xlu0 %2453 }
 0x8bb   : > { %v2459_v14 = vmul.f32 0.03125, %v2454_v13 }
 0x8bc   : > { %v2457_v37 = vpop.xlane.xlu1 %2456 }
 0x8bd   : > { %v2461_v38 = vsub.f32 %v2448_v25, %v2459_v14  ;;  %v2460_v40 = vmul.f32 0.03125, %v2457_v37 }
 0x8bf   : > { %v2462_v42 = vsub.f32 %v2449_v30, %v2460_v40  ;;  %v2463_v28 = vmul.f32 %v2461_v38, %v2461_v38 }
 0x8c1   : > { %v2465_v43 = vsel %vm1321_vm1, %v2463_v28, 0.0  ;;  %v2464_v44 = vmul.f32 %v2462_v42, %v2462_v42 }
 0x8c2   : > { %2466 = vadd.xlane.f32.xlu0 %v2465_v43 }
 0x8c3   : > { %v2468_v45 = vsel %vm1321_vm1, %v2464_v44, 0.0 }
 0x8c6   : > { %2469 = vadd.xlane.f32.xlu0 %v2468_v45 }
 0x94f   : > { %v2467_v56 = vpop.xlane.xlu0 %2466 }
 0x950   : > { %v2471_v57 = vmul.f32 0.03125, %v2467_v56 }
 0x952   : > { %v2473_v58 = vadd.f32 1e-05, %v2471_v57 }
 0x953   : > { %v2470_v59 = vpop.xlane.xlu0 %2469 }
 0x954   : > { %5040 = vrsqrt.f32 %v2473_v58  ;;  %v2472_v34 = vmul.f32 0.03125, %v2470_v59 }
 0x956   : > { %v2474_v39 = vadd.f32 1e-05, %v2472_v34 }
 0x958   : > { %5042 = vrsqrt.f32 %v2474_v39 }
 0x95e   : > { %v5041_v60 = vpop.eup %5040 }
 0x95f   : > { %v2477_v61 = vmul.f32 %v5041_v60, %v2461_v38 }
 0x961   : > { %v2485_v0 = vmul.f32 %v4434_v62, %v2477_v61 }
 0x962   : > { %v5043_v63 = vpop.eup %5042 }
 0x963   : > { %v2478_v1 = vmul.f32 %v5043_v63, %v2462_v42  ;;  %v5687_v5 = vadd.f32 %v4435_v3, %v2485_v0 }
 0x965   : > { %v2486_v4 = vmul.f32 %v4434_v62, %v2478_v1 }
 0x967   : > { %v5689_v6 = vadd.f32 %v4435_v3, %v2486_v4 }
 0x969   : > { %v2514_v7 = vpack.c.bf16 %v5689_v6, %v5687_v5 }
 0x96b   : > { %4737 = vmatmul.mubr.msk.bf16.vlgmr.msra.gmra.mrb[32].mxu1 %vm1321_vm1, %v2514_v7 }
 0x96c   : > { %4754 = vmatprep.mubr.msk.bf16.mxu1 %vm5165_vm2, %v5164_v2  ;;  %4753 = vmatpush3.bf16.xpose.msra.mxu1 %v2670_v19 }
 0x96d   : > { %4758 = vmatprep.subr.bf16.mxu1 %v5164_v2 }
 0xa3e   : > { %v2574_v21 = vpop.f32.mrb[32].mxu1 }
 0xa3f   : > { %v2575_v16 = vadd.f32 %v4436_v20, %v2574_v21  ;;  %v4738_v22 = vpop.f32.mrb[33].mxu1 }
 0xa40   : > { %v2577_v23 = vpop.f32.mrb[34].mxu1 }
 0xa41   : > { %v2664_v24 = vpack.c.bf16 %v2575_v16, %v2575_v16  ;;  %v2578_v26 = vadd.f32 %v4436_v20, %v2577_v23  ;;  %v4739_v27 = vpop.f32.mrb[35].mxu1 }
 0xa43   : > { %4755 = vmatmul.mubr.msk.bf16.vlgmr.msra.gmra.mrb[36].mxu1 %vm1453_vm3, %v2664_v24  ;;  %v3123_v45 = vpack.c.bf16 %v2578_v26, %v2578_v26 }
 0xa44   : > { %4760 = vmatprep.mubr.msk.bf16.mxu1 %vm5165_vm2, %v5164_v2 }
 0xb16   : > { %v2706_v25 = vpop.f32.mrb[36].mxu1 }
 0xb17   : > { %v2712_v29 = vmul.f32 0.35355338, %v2706_v25  ;;  %v4756_v30 = vpop.f32.mrb[37].mxu1 }
 0xb18   : > { %v2709_v31 = vpop.f32.mrb[38].mxu1 }
 0xb19   : > { %v4757_v32 = vpop.f32.mrb[39].mxu1  ;;  %v2713_v33 = vsel %vm1453_vm3, %v2712_v29, -inf }
 0xb1a   : > { %2714 = vmax.xlane.f32.xlu1 %v2713_v33 }
 0xb2b   : > { %2726 = vrot.lane.b32.xlu1 %v5699_v15, %s5166_s26 }
 0xb2f   : > { %2775 = vrot.lane.b32.xlu1 %v2664_v24, %s5167_s1 }
 0xb33   : > { %2888 = vrot.lane.b32.xlu1 %v5699_v15, %s5168_s2 }
 0xb37   : > { %2999 = vrot.lane.b32.xlu1 %v5699_v15, %s5169_s7 }
 0xb3b   : > { %3236 = vrot.lane.b32.xlu1 %v5718_v35, %s5167_s1 }
 0xb3f   : > { %3347 = vrot.lane.b32.xlu1 %v5718_v35, %s5168_s2 }
 0xb43   : > { %3458 = vrot.lane.b32.xlu1 %v5718_v35, %s5169_s7 }
 0xba7   : > { %v2715_v36 = vpop.xlane.xlu1 %2714 }
 0xba8   : > { %v2716_v13 = vsub.f32 %v2712_v29, %v2715_v36 }
 0xbaa   : > { %v2717_v14 = vmul.f32 1.442695, %v2716_v13 }
 0xbab   : > { %v2727_v37 = vpop.permute.xlu1 %2726 }
 0xbac   : > { %5044 = vpow2.f32 %v2717_v14  ;;  %v2732_v38 = vsel %vm1520_vm4, %v2727_v37, 0 }
 0xbad   : > { %4759 = vmatpush3.bf16.msra.mxu1 %v2732_v38 }
 0xbae   : > { %4764 = vmatprep.subr.bf16.mxu1 %v5164_v2 }
 0xbaf   : > { %v2776_v40 = vpop.permute.xlu1 %2775 }
 0xbb3   : > { %v2889_v42 = vpop.permute.xlu1 %2888 }
 0xbb4   : > { %v2894_v28 = vsel %vm1453_vm3, %v2889_v42, 0 }
 0xbb5   : > { %4777 = vmatpush3.bf16.xpose.msra.mxu0 %v2894_v28 }
 0xbb6   : > { %v5045_v43 = vpop.eup %5044  ;;  %4788 = vmatprep.subr.bf16.mxu0 %v5164_v2 }
 0xbb7   : > { %v2719_v44 = vsel %vm1453_vm3, %v5045_v43, 0.0  ;;  %v3000_v48 = vpop.permute.xlu1 %2999 }
 0xbb8   : > { %2720 = vadd.xlane.f32.xlu0 %v2719_v44  ;;  %v3005_v50 = vsel %vm1453_vm3, %v3000_v48, 0 }
 0xbbb   : > { %v3237_v56 = vpop.permute.xlu1 %3236 }
 0xbbc   : > { %v3242_v57 = vsel %vm1453_vm3, %v3237_v56, 0 }
 0xbbf   : > { %v3348_v58 = vpop.permute.xlu1 %3347 }
 0xbc0   : > { %v3353_v34 = vsel %vm1453_vm3, %v3348_v58, 0 }
 0xbc3   : > { %v3459_v39 = vpop.permute.xlu1 %3458 }
 0xbc4   : > { %v3464_v61 = vsel %vm1453_vm3, %v3459_v39, 0 }
 0xbce   : > { %2777 = vrot.lane.b32.xlu0 %v5699_v15, %s5167_s1 }
 0xbd2   : > { %2886 = vrot.lane.b32.xlu0 %v2664_v24, %s5168_s2 }
 0xbd6   : > { %2997 = vrot.lane.b32.xlu0 %v2664_v24, %s5169_s7 }
 0xbda   : > { %3234 = vrot.lane.b32.xlu0 %v3123_v45, %s5167_s1  ;;  %s6066_s1 = sld [smem:[#allocation33_spill]] }
 0xbde   : > { %3345 = vrot.lane.b32.xlu0 %v3123_v45, %s5168_s2 }
 0xbe0   : > { %p4480_p5 = scmp.ne.s32.totalorder %s6066_s1, 1 }
 0xbe1   : > { %s6067_s2 = sld [smem:[#allocation29_spill]] (!%p4480_p5)  ;;  %vm5177_vm8 = vmmov (!%p4480_p5), 0  }
 0xbe2   : > { %3456 = vrot.lane.b32.xlu0 %v3123_v45, %s5169_s7  ;;  %s6069_s7 = sld [smem:[#allocation28_spill]] (!%p4480_p5) }
 0xc45   : > { %v2721_v46 = vpop.xlane.xlu0 %2720 }
 0xc46   : > { %5046 = vrcp.f32 %v2721_v46 }
 0xc49   : > { %v2778_v47 = vpop.permute.xlu0 %2777 }
 0xc4a   : > { %v2783_v54 = vsel %vm1453_vm3, %v2778_v47, 0 }
 0xc4d   : > { %v2887_v49 = vpop.permute.xlu0 %2886 }
 0xc4e   : > { %4779 = vmatmul.mubr.msk.bf16.vlgmr.msra.gmra.mrb[48].mxu0 %vm1453_vm3, %v2887_v49 }
 0xc4f   : > { %4789 = vmatpush3.bf16.xpose.msra.mxu0 %v3005_v50  ;;  %4790 = vmatprep.mubr.msk.bf16.mxu0 %vm5165_vm2, %v5164_v2 }
 0xc50   : > { %v5047_v51 = vpop.eup %5046  ;;  %4800 = vmatprep.subr.bf16.mxu0 %v5164_v2 }
 0xc51   : > { %v2723_v52 = vmul.f32 %v5047_v51, %v5045_v43  ;;  %v2998_v55 = vpop.permute.xlu0 %2997 }
 0xc53   : > { %v2724_v53 = vpack.c.bf16 %v2723_v52, %v2723_v52 }
 0xc55   : > { %4761 = vmatmul.mubr.msk.bf16.vlgmr.msra.gmra.mrb[40].mxu1 %vm1453_vm3, %v2724_v53  ;;  %v3235_v59 = vpop.permute.xlu0 %3234 }
 0xc56   : > { %4765 = vmatpush3.bf16.xpose.msra.mxu1 %v2783_v54  ;;  %4791 = vmatmul.mubr.msk.bf16.vlgmr.msra.gmra.mrb[52].mxu0 %vm1453_vm3, %v2998_v55 }
 0xc57   : > { %4801 = vmatpush3.bf16.xpose.msra.mxu0 %v3129_v41  ;;  %4766 = vmatprep.mubr.msk.bf16.mxu1 %vm5165_vm2, %v5164_v2 }
 0xc58   : > { %4802 = vmatprep.mubr.msk.bf16.mxu0 %vm5165_vm2, %v5164_v2  ;;  %4812 = vmatprep.subr.bf16.mxu0 %v5164_v2 }
 0xc59   : > { %4770 = vmatprep.subr.bf16.mxu1 %v5164_v2  ;;  %v3346_v60 = vpop.permute.xlu0 %3345 }
 0xc5d   : > { %4767 = vmatmul.mubr.msk.bf16.vlgmr.msra.gmra.mrb[44].mxu1 %vm1453_vm3, %v2776_v40  ;;  %v3457_v62 = vpop.permute.xlu0 %3456 }
 0xc5e   : > { %4803 = vmatmul.mubr.msk.bf16.vlgmr.msra.gmra.mrb[56].mxu0 %vm1453_vm3, %v3123_v45  ;;  %4772 = vmatprep.mubr.msk.bf16.mxu1 %vm5165_vm2, %v5164_v2 }
 0xc5f   : > { %4813 = vmatpush3.bf16.xpose.msra.mxu0 %v3242_v57  ;;  %4814 = vmatprep.mubr.msk.bf16.mxu0 %vm5165_vm2, %v5164_v2 }
 0xc60   : > { %4824 = vmatprep.subr.bf16.mxu0 %v5164_v2 }
 0xc66   : > { %4815 = vmatmul.mubr.msk.bf16.vlgmr.msra.gmra.mrb[60].mxu0 %vm1453_vm3, %v3235_v59 }
 0xc67   : > { %4825 = vmatpush3.bf16.xpose.msra.mxu0 %v3353_v34  ;;  %4826 = vmatprep.mubr.msk.bf16.mxu0 %vm5165_vm2, %v5164_v2 }
 0xc68   : > { %4836 = vmatprep.subr.bf16.mxu0 %v5164_v2 }
 0xc6e   : > { %4827 = vmatmul.mubr.msk.bf16.vlgmr.msra.gmra.mrb[64].mxu0 %vm1453_vm3, %v3346_v60 }
 0xc6f   : > { %4837 = vmatpush3.bf16.xpose.msra.mxu0 %v3464_v61  ;;  %4838 = vmatprep.mubr.msk.bf16.mxu0 %vm5165_vm2, %v5164_v2 }
 0xc70   : > { %4848 = vmatprep.subr.bf16.mxu0 %v5164_v2 }
 0xc76   : > { %4839 = vmatmul.mubr.msk.bf16.vlgmr.msra.gmra.mrb[68].mxu0 %vm1453_vm3, %v3457_v62 }
 0xc77   : > { %4852 = vmatprep.mubr.msk.bf16.mxu0 %vm5165_vm2, %v5164_v2 }
 0xd21   : > { %v2930_v63 = vpop.f32.mrb[48].mxu0 }
 0xd22   : > { %v2936_v0 = vmul.f32 0.35355338, %v2930_v63  ;;  %v4780_v1 = vpop.f32.mrb[49].mxu0 }
 0xd23   : > { %v2933_v3 = vpop.f32.mrb[50].mxu0 }
 0xd24   : > { %v4781_v4 = vpop.f32.mrb[51].mxu0  ;;  %v2937_v7 = vsel %vm1453_vm3, %v2936_v0, -inf }
 0xd25   : > { %2938 = vmax.xlane.f32.xlu0 %v2937_v7 }
 0xd28   : > { %v5776_v8 = vpop.f32.mrb[40].mxu1 }
 0xd29   : > { %v4762_v9 = vpop.f32.mrb[41].mxu1  ;;  %v3041_v10 = vpop.f32.mrb[52].mxu0 }
 0xd2a   : > { %v3047_v11 = vmul.f32 0.35355338, %v3041_v10  ;;  %v2771_v12 = vpop.f32.mrb[42].mxu1  ;;  %v4792_v17 = vpop.f32.mrb[53].mxu0 }
 0xd2b   : > { %v4763_v18 = vpop.f32.mrb[43].mxu1  ;;  %v3044_v19 = vpop.f32.mrb[54].mxu0 }
 0xd2c   : > { %v4793_v20 = vpop.f32.mrb[55].mxu0  ;;  %v3048_v21 = vsel %vm1453_vm3, %v3047_v11, -inf }
 0xd2d   : > { %3049 = vmax.xlane.f32.xlu0 %v3048_v21 }
 0xd30   : > { %v2819_v16 = vpop.f32.mrb[44].mxu1 }
 0xd31   : > { %v2825_v22 = vmul.f32 0.35355338, %v2819_v16  ;;  %v4768_v23 = vpop.f32.mrb[45].mxu1  ;;  %v3165_v24 = vpop.f32.mrb[56].mxu0 }
 0xd32   : > { %v2822_v26 = vpop.f32.mrb[46].mxu1  ;;  %v4804_v27 = vpop.f32.mrb[57].mxu0  ;;  %v3171_v25 = vmul.f32 0.35355338, %v3165_v24 }
 0xd33   : > { %v4769_v29 = vpop.f32.mrb[47].mxu1  ;;  %v3168_v30 = vpop.f32.mrb[58].mxu0  ;;  %v2826_v31 = vsel %vm1453_vm3, %v2825_v22, -inf }
 0xd34   : > { %2827 = vmax.xlane.f32.xlu1 %v2826_v31  ;;  %v4805_v32 = vpop.f32.mrb[59].mxu0  ;;  %v3172_v33 = vsel %vm1453_vm3, %v3171_v25, -inf }
 0xd38   : > { %3173 = vmax.xlane.f32.xlu1 %v3172_v33 }
 0xd39   : > { %v3278_v36 = vpop.f32.mrb[60].mxu0 }
 0xd3a   : > { %v3284_v13 = vmul.f32 0.35355338, %v3278_v36  ;;  %v4816_v14 = vpop.f32.mrb[61].mxu0 }
 0xd3b   : > { %v3281_v37 = vpop.f32.mrb[62].mxu0 }
 0xd3c   : > { %v4817_v38 = vpop.f32.mrb[63].mxu0  ;;  %v3285_v40 = vsel %vm1453_vm3, %v3284_v13, -inf }
 0xd3d   : > { %3286 = vmax.xlane.f32.xlu0 %v3285_v40 }
 0xd41   : > { %v3389_v42 = vpop.f32.mrb[64].mxu0 }
 0xd42   : > { %v3395_v28 = vmul.f32 0.35355338, %v3389_v42  ;;  %v4828_v43 = vpop.f32.mrb[65].mxu0 }
 0xd43   : > { %v3392_v44 = vpop.f32.mrb[66].mxu0 }
 0xd44   : > { %v4829_v45 = vpop.f32.mrb[67].mxu0  ;;  %v3396_v46 = vsel %vm1453_vm3, %v3395_v28, -inf }
 0xd45   : > { %3397 = vmax.xlane.f32.xlu1 %v3396_v46 }
 0xd49   : > { %v3500_v47 = vpop.f32.mrb[68].mxu0 }
 0xd4a   : > { %v3506_v48 = vmul.f32 0.35355338, %v3500_v47  ;;  %v4840_v49 = vpop.f32.mrb[69].mxu0 }
 0xd4b   : > { %v3503_v50 = vpop.f32.mrb[70].mxu0 }
 0xd4c   : > { %v4841_v51 = vpop.f32.mrb[71].mxu0  ;;  %v3507_v52 = vsel %vm1453_vm3, %v3506_v48, -inf }
 0xd4d   : > { %3508 = vmax.xlane.f32.xlu0 %v3507_v52 }
 0xdb2   : > { %v2939_v53 = vpop.xlane.xlu0 %2938 }
 0xdb3   : > { %v2940_v54 = vsub.f32 %v2936_v0, %v2939_v53 }
 0xdb5   : > { %v2941_v55 = vmul.f32 1.442695, %v2940_v54 }
 0xdb7   : > { %5048 = vpow2.f32 %v2941_v55 }
 0xdba   : > { %v3050_v41 = vpop.xlane.xlu0 %3049 }
 0xdbb   : > { %v3051_v56 = vsub.f32 %v3047_v11, %v3050_v41 }
 0xdbd   : > { %v3052_v57 = vmul.f32 1.442695, %v3051_v56 }
 0xdbf   : > { %5050 = vpow2.f32 %v3052_v57 }
 0xdc1   : > { %v5784_v58 = vpop.eup %5048  ;;  %v2828_v59 = vpop.xlane.xlu1 %2827 }
 0xdc2   : > { %v2829_v34 = vsub.f32 %v2825_v22, %v2828_v59  ;;  %v2943_v39 = vsel %vm1453_vm3, %v5784_v58, 0.0 }
 0xdc3   : > { %2944 = vadd.xlane.f32.xlu0 %v2943_v39 }
 0xdc4   : > { %v2830_v60 = vmul.f32 1.442695, %v2829_v34 }
 0xdc5   : > { %v3174_v61 = vpop.xlane.xlu1 %3173 }
 0xdc6   : > { %5052 = vpow2.f32 %v2830_v60  ;;  %v3175_v62 = vsub.f32 %v3171_v25, %v3174_v61 }
 0xdc8   : > { %v3176_v63 = vmul.f32 1.442695, %v3175_v62 }
 0xdc9   : > { %v5788_v0 = vpop.eup %5050 }
 0xdca   : > { %5054 = vpow2.f32 %v3176_v63  ;;  %v3287_v1 = vpop.xlane.xlu0 %3286  ;;  %v3054_v3 = vsel %vm1453_vm3, %v5788_v0, 0.0 }
 0xdcb   : > { %v3288_v4 = vsub.f32 %v3284_v13, %v3287_v1  ;;  %3055 = vadd.xlane.f32.xlu1 %v3054_v3 }
 0xdcd   : > { %v3289_v7 = vmul.f32 1.442695, %v3288_v4 }
 0xdcf   : > { %5056 = vpow2.f32 %v3289_v7 }
 0xdd0   : > { %v5053_v9 = vpop.eup %5052 }
 0xdd1   : > { %v2832_v10 = vsel %vm1453_vm3, %v5053_v9, 0.0 }
 0xdd2   : > { %2833 = vadd.xlane.f32.xlu1 %v2832_v10  ;;  %v3398_v19 = vpop.xlane.xlu1 %3397 }
 0xdd3   : > { %v3399_v20 = vsub.f32 %v3395_v28, %v3398_v19 }
 0xdd4   : > { %v5793_v11 = vpop.eup %5054 }
 0xdd5   : > { %v3178_v12 = vsel %vm1453_vm3, %v5793_v11, 0.0  ;;  %v3400_v21 = vmul.f32 1.442695, %v3399_v20 }
 0xdd6   : > { %3179 = vadd.xlane.f32.xlu0 %v3178_v12 }
 0xdd7   : > { %5058 = vpow2.f32 %v3400_v21 }
 0xdd9   : > { %v5797_v17 = vpop.eup %5056 }
 0xdda   : > { %v3291_v18 = vsel %vm1453_vm3, %v5797_v17, 0.0  ;;  %v3509_v16 = vpop.xlane.xlu0 %3508 }
 0xddb   : > { %3292 = vadd.xlane.f32.xlu0 %v3291_v18  ;;  %v3510_v22 = vsub.f32 %v3506_v48, %v3509_v16 }
 0xddd   : > { %v3511_v23 = vmul.f32 1.442695, %v3510_v22 }
 0xddf   : > { %5060 = vpow2.f32 %v3511_v23 }
 0xde1   : > { %v5807_v24 = vpop.eup %5058 }
 0xde2   : > { %v3402_v26 = vsel %vm1453_vm3, %v5807_v24, 0.0 }
 0xde3   : > { %2838 = vrot.lane.b32.xlu1 %v5699_v15, %s5171_s9 }
 0xde9   : > { %v5811_v27 = vpop.eup %5060 }
 0xdea   : > { %v3513_v25 = vsel %vm1453_vm3, %v5811_v27, 0.0 }
 0xdf1   : > { %2949 = vrot.lane.b32.xlu0 %v5699_v15, %s5170_s18 }
 0xdf5   : > { %3060 = vrot.lane.b32.xlu0 %v5699_v15, %s5172_s17 }
 0xe07   : > { %3403 = vadd.xlane.f32.xlu1 %v3402_v26 }
 0xe14   : > { %3514 = vadd.xlane.f32.xlu0 %v3513_v25 }
 0xe18   : > { %3185 = vrot.lane.b32.xlu1 %v5718_v35, %s5166_s26 }
 0xe1c   : > { %3408 = vrot.lane.b32.xlu1 %v5718_v35, %s5170_s18  ;;  %s6070_s18 = sld [smem:[#allocation30_spill]] (!%p4480_p5) }
 0xe20   : > { %3519 = vrot.lane.b32.xlu1 %v5718_v35, %s5172_s17 }
 0xe2a   : > { %3297 = vrot.lane.b32.xlu0 %v5718_v35, %s5171_s9 }
 0xe50   : > { %v2945_v29 = vpop.xlane.xlu0 %2944 }
 0xe58   : > { %v3056_v15 = vpop.xlane.xlu1 %3055 }
 0xe5f   : > { %v2834_v30 = vpop.xlane.xlu1 %2833 }
 0xe60   : > { %5062 = vrcp.f32 %v2834_v30 }
 0xe61   : > { %5064 = vrcp.f32 %v2945_v29  ;;  %v5001_v29 = vld [vmem:[%s5386_s3 + $0x8] sm:$0xff]  }
 0xe62   : > { %5066 = vrcp.f32 %v3056_v15 }
 0xe63   : > { %v2839_v31 = vpop.permute.xlu1 %2838  ;;  %v3180_v32 = vpop.xlane.xlu0 %3179 }
 0xe64   : > { %v2844_v33 = vsel %vm1520_vm4, %v2839_v31, 0  ;;  %5068 = vrcp.f32 %v3180_v32 }
 0xe65   : > { %4771 = vmatpush3.bf16.msra.mxu1 %v2844_v33  ;;  %v3606_v33 = vsel %vm1321_vm1, %v5001_v29, 0 }
 0xe66   : > { %4782 = vmatprep.subr.bf16.mxu1 %v5164_v2 }
 0xe68   : > { %v3293_v36 = vpop.xlane.xlu0 %3292 }
 0xe69   : > { %5070 = vrcp.f32 %v3293_v36 }
 0xe6a   : > { %v5063_v13 = vpop.eup %5062 }
 0xe6b   : > { %v2836_v14 = vmul.f32 %v5063_v13, %v5053_v9  ;;  %v5065_v40 = vpop.eup %5064 }
 0xe6c   : > { %v2950_v37 = vpop.permute.xlu0 %2949  ;;  %v2947_v42 = vmul.f32 %v5065_v40, %v5784_v58  ;;  %v5067_v44 = vpop.eup %5066 }
 0xe6d   : > { %v2955_v38 = vsel %vm1520_vm4, %v2950_v37, 0  ;;  %v2837_v35 = vpack.c.bf16 %v2836_v14, %v2836_v14  ;;  %v3058_v46 = vmul.f32 %v5067_v44, %v5788_v0 }
 0xe6e   : > { %v2948_v43 = vpack.c.bf16 %v2947_v42, %v2947_v42  ;;  %v5069_v48 = vpop.eup %5068 }
 0xe6f   : > { %4773 = vmatmul.mubr.msk.bf16.vlgmr.msra.gmra.mrb[48].mxu1 %vm1453_vm3, %v2837_v35  ;;  %v3059_v47 = vpack.c.bf16 %v3058_v46, %v3058_v46  ;;  %v3182_v50 = vmul.f32 %v5069_v48, %v5793_v11 }
 0xe70   : > { %4783 = vmatpush3.bf16.msra.mxu1 %v2955_v38  ;;  %4784 = vmatprep.mubr.msk.bf16.mxu1 %vm5165_vm2, %v5164_v2  ;;  %v3061_v28 = vpop.permute.xlu0 %3060 }
 0xe71   : > { %4794 = vmatprep.subr.bf16.mxu1 %v5164_v2  ;;  %v3066_v45 = vsel %vm1520_vm4, %v3061_v28, 0  ;;  %v3183_v53 = vpack.c.bf16 %v3182_v50, %v3182_v50 }
 0xe73   : > { %v5071_v54 = vpop.eup %5070 }
 0xe74   : > { %v3295_v41 = vmul.f32 %v5071_v54, %v5797_v17 }
 0xe76   : > { %v3296_v59 = vpack.c.bf16 %v3295_v41, %v3295_v41 }
 0xe77   : > { %4785 = vmatmul.mubr.msk.bf16.vlgmr.msra.gmra.mrb[52].mxu1 %vm1453_vm3, %v2948_v43 }
 0xe78   : > { %4795 = vmatpush3.bf16.msra.mxu1 %v3066_v45  ;;  %4796 = vmatprep.mubr.msk.bf16.mxu1 %vm5165_vm2, %v5164_v2 }
 0xe79   : > { %4806 = vmatprep.subr.bf16.mxu1 %v5164_v2 }
 0xe7f   : > { %4797 = vmatmul.mubr.msk.bf16.vlgmr.msra.gmra.mrb[56].mxu1 %vm1453_vm3, %v3059_v47 }
 0xe80   : > { %4808 = vmatprep.mubr.msk.bf16.mxu1 %vm5165_vm2, %v5164_v2 }
 0xe94   : > { %v3404_v49 = vpop.xlane.xlu1 %3403 }
 0xe95   : > { %5072 = vrcp.f32 %v3404_v49 }
 0xe98   : > { %v3186_v51 = vpop.permute.xlu1 %3185 }
 0xe99   : > { %v3191_v52 = vsel %vm1520_vm4, %v3186_v51, 0 }
 0xe9a   : > { %4807 = vmatpush3.bf16.msra.mxu1 %v3191_v52 }
 0xe9b   : > { %4818 = vmatprep.subr.bf16.mxu1 %v5164_v2 }
 0xe9c   : > { %v3409_v58 = vpop.permute.xlu1 %3408 }
 0xe9d   : > { %4809 = vmatmul.mubr.msk.bf16.vlgmr.msra.gmra.mrb[60].mxu1 %vm1453_vm3, %v3183_v53  ;;  %v3414_v39 = vsel %vm1520_vm4, %v3409_v58, 0 }
 0xe9e   : > { %4820 = vmatprep.mubr.msk.bf16.mxu1 %vm5165_vm2, %v5164_v2 }
 0xe9f   : > { %v5073_v34 = vpop.eup %5072 }
 0xea0   : > { %v3406_v60 = vmul.f32 %v5073_v34, %v5807_v24  ;;  %v3520_v61 = vpop.permute.xlu1 %3519  ;;  %v4462_v34 = vld [vmem:[%s1224_s15] ss:$0 sm:$0xff] }
 0xea1   : > { %v3515_v55 = vpop.xlane.xlu0 %3514  ;;  %v3525_v0 = vsel %vm1520_vm4, %v3520_v61, 0 }
 0xea2   : > { %5074 = vrcp.f32 %v3515_v55  ;;  %v3407_v62 = vpack.c.bf16 %v3406_v60, %v3406_v60 }
 0xea5   : > { %v3298_v56 = vpop.permute.xlu0 %3297 }
 0xea6   : > { %v3303_v57 = vsel %vm1520_vm4, %v3298_v56, 0 }
 0xea7   : > { %4819 = vmatpush3.bf16.msra.mxu1 %v3303_v57 }
 0xea8   : > { %4830 = vmatprep.subr.bf16.mxu1 %v5164_v2 }
 0xeaa   : > { %4821 = vmatmul.mubr.msk.bf16.vlgmr.msra.gmra.mrb[64].mxu1 %vm1453_vm3, %v3296_v59 }
 0xeab   : > { %4831 = vmatpush3.bf16.msra.mxu1 %v3414_v39  ;;  %4832 = vmatprep.mubr.msk.bf16.mxu1 %vm5165_vm2, %v5164_v2 }
 0xeac   : > { %4842 = vmatprep.subr.bf16.mxu1 %v5164_v2  ;;  %v5075_v63 = vpop.eup %5074 }
 0xead   : > { %v3517_v1 = vmul.f32 %v5075_v63, %v5811_v27  ;;  %v5000_v27 = vld [vmem:[%s5386_s3] sm:$0xff]  }
 0xeae   : > { %v3603_v25 = vsel %vm1321_vm1, %v5000_v27, 0 }
 0xeaf   : > { %v3518_v3 = vpack.c.bf16 %v3517_v1, %v3517_v1  ;;  %4849 = vmatpush3.bf16.xpose.msra.mxu0 %v3603_v25  ;;  %v5006_v25 = vld [vmem:[%s5400_s19] sm:$0xff]  }
 0xeb0   : > { %4850 = vmatprep.subr.bf16.mxu0 %v5164_v2 }
 0xeb2   : > { %4833 = vmatmul.mubr.msk.bf16.vlgmr.msra.gmra.mrb[68].mxu1 %vm1453_vm3, %v3407_v62 }
 0xeb3   : > { %4843 = vmatpush3.bf16.msra.mxu1 %v3525_v0  ;;  %4844 = vmatprep.mubr.msk.bf16.mxu1 %vm5165_vm2, %v5164_v2 }
 0xeb4   : > { %4856 = vmatprep.subr.bf16.mxu1 %v5164_v2 }
 0xeb7   : > { %4851 = vmatpush3.bf16.xpose.msra.mxu0 %v3606_v33 }
 0xeb8   : > { %4868 = vmatprep.subr.bf16.mxu0 %v5164_v2 }
 0xeba   : > { %4845 = vmatmul.mubr.msk.bf16.vlgmr.msra.gmra.mrb[72].mxu1 %vm1453_vm3, %v3518_v3 }
 0xebb   : > { %4864 = vmatprep.mubr.msk.bf16.mxu1 %vm5165_vm2, %v5164_v2 }
 0xf42   : > { %v2880_v4 = vpop.f32.mrb[48].mxu1 }
 0xf43   : > { %v4774_v7 = vpop.f32.mrb[49].mxu1 }
 0xf44   : > { %v2883_v9 = vpop.f32.mrb[50].mxu1  ;;  %v5002_v7 = vld [vmem:[%s5395_s13] sm:$0xff]  }
 0xf45   : > { %v4775_v10 = vpop.f32.mrb[51].mxu1  ;;  %v3740_v9 = vsel %vm1321_vm1, %v5002_v7, 0 }
 0xf46   : > { %4857 = vmatpush3.bf16.xpose.msra.mxu1 %v3740_v9 }
 0xf47   : > { %4858 = vmatprep.subr.bf16.mxu1 %v5164_v2 }
 0xf4a   : > { %v2991_v11 = vpop.f32.mrb[52].mxu1 }
 0xf4b   : > { %v4786_v12 = vpop.f32.mrb[53].mxu1 }
 0xf4c   : > { %v2994_v17 = vpop.f32.mrb[54].mxu1 }
 0xf4d   : > { %v4787_v18 = vpop.f32.mrb[55].mxu1 }
 0xf52   : > { %v3102_v19 = vpop.f32.mrb[56].mxu1 }
 0xf53   : > { %v4798_v20 = vpop.f32.mrb[57].mxu1 }
 0xf54   : > { %v3105_v21 = vpop.f32.mrb[58].mxu1 }
 0xf55   : > { %v4799_v16 = vpop.f32.mrb[59].mxu1 }
 0xf56   : > { %v5003_v16 = vld [vmem:[%s5395_s13 + $0x8] sm:$0xff]  }
 0xf70   : > { %v3227_v22 = vpop.f32.mrb[60].mxu1 }
 0xf71   : > { %v4810_v23 = vpop.f32.mrb[61].mxu1 }
 0xf72   : > { %v3230_v24 = vpop.f32.mrb[62].mxu1  ;;  %v5004_v23 = vld [vmem:[%s5395_s13 + $0x10] sm:$0xff]  }
 0xf73   : > { %v4811_v26 = vpop.f32.mrb[63].mxu1  ;;  %v3746_v24 = vsel %vm1321_vm1, %v5004_v23, 0 }
 0xf74   : > { %v5005_v26 = vld [vmem:[%s5395_s13 + $0x18] sm:$0xff]  }
 0xf75   : > { %v3749_v27 = vsel %vm1321_vm1, %v5005_v26, 0 }
 0xf7d   : > { %v3339_v15 = vpop.f32.mrb[64].mxu1 }
 0xf7e   : > { %v4971_v30 = vpack.i.bf16 %v3339_v15, %v2880_v4  ;;  %v4822_v31 = vpop.f32.mrb[65].mxu1  ;;  %v3816_v15 = vsel %vm3811_vm7, %v5006_v25, 0 }
 0xf7f   : > { %v3342_v32 = vpop.f32.mrb[66].mxu1 }
 0xf80   : > { %4972 = vrot.lane.b32.xlu1 %v4971_v30, %s5173_s23  ;;  %v4823_v36 = vpop.f32.mrb[67].mxu1 }
 0xf85   : > { %v3450_v13 = vpop.f32.mrb[68].mxu1 }
 0xf86   : > { %v4976_v14 = vpack.i.bf16 %v3450_v13, %v2991_v11  ;;  %v4834_v37 = vpop.f32.mrb[69].mxu1 }
 0xf87   : > { %v3453_v38 = vpop.f32.mrb[70].mxu1 }
 0xf88   : > { %4977 = vrot.lane.b32.xlu1 %v4976_v14, %s5174_s11  ;;  %v4835_v35 = vpop.f32.mrb[71].mxu1  ;;  %v4466_v14 = vld [vmem:[%s1227_s8] ss:$0 sm:$0xff]  ;;  %s6062_s8 = sld [smem:[#allocation25_spill]] }
 0xf8d   : > { %v3561_v40 = vpop.f32.mrb[72].mxu1 }
 0xf8e   : > { %v4981_v42 = vpack.i.bf16 %v3561_v40, %v3102_v19  ;;  %v4846_v28 = vpop.f32.mrb[73].mxu1 }
 0xf8f   : > { %v3564_v43 = vpop.f32.mrb[74].mxu1 }
 0xf90   : > { %4982 = vrot.lane.b32.xlu0 %v4981_v42, %s5175_s30  ;;  %v4847_v44 = vpop.f32.mrb[75].mxu1 }
 0xff2   : > { %v4973_v45 = vpop.permute.xlu1 %4972 }
 0xff3   : > { %v4975_v47 = vunpack.i.h.bf16 %v4973_v45  ;;  %v4974_v48 = vunpack.i.l.bf16 %v4973_v45  ;;  %v5007_v45 = vld [vmem:[%s5400_s19 + $0x8] sm:$0xff]   ;;  %s6064_s19 = scalar_lea.vmem %s6062_s8, %s5352_s0 }
 0xff5   : > { %v3579_v52 = vsel %vm1453_vm3, %v3227_v22, %v4975_v47  ;;  %v3120_v53 = vsel %vm1453_vm3, %v5776_v8, %v4974_v48  ;;  %v3743_v22 = vsel %vm1321_vm1, %v5003_v16, 0  ;;  %v4468_v47 = vld [vmem:[%s1238_s14] ss:$0 sm:$0xff]  ;;  %s6063_s14 = sld [smem:[#allocation26_spill]] }
 0xff6   : > { %4859 = vmatpush3.bf16.xpose.msra.mxu1 %v3743_v22  ;;  %v4478_v22 = vld [vmem:[%s6064_s19] ss:$0 sm:$0xff] }
 0xff7   : > { %4860 = vmatprep.subr.bf16.mxu1 %v5164_v2 }
 0xffa   : > { %v4978_v46 = vpop.permute.xlu1 %4977 }
 0xffb   : > { %v4980_v49 = vunpack.i.h.bf16 %v4978_v46  ;;  %v4979_v50 = vunpack.i.l.bf16 %v4978_v46  ;;  %v3819_v46 = vsel %vm3811_vm7, %v5007_v45, 0  ;;  %s6065_s26 = scalar_lea.vmem %s6063_s14, %s5352_s0 }
 0xffc   : > { %v4479_v26 = vld [vmem:[%s6065_s26] ss:$0 sm:$0xff] }
 0xffd   : > { %v3580_v41 = vsel %vm1914_vm5, %v3579_v52, %v4980_v49  ;;  %v3121_v56 = vsel %vm1914_vm5, %v3120_v53, %v4979_v50 }
 0xffe   : > { %4861 = vmatpush3.bf16.xpose.msra.mxu1 %v3746_v24 }
 0xfff   : > { %4862 = vmatprep.subr.bf16.mxu1 %v5164_v2 }
0x1002   : > { %v4983_v51 = vpop.permute.xlu0 %4982 }
0x1003   : > { %v4985_v54 = vunpack.i.h.bf16 %v4983_v51  ;;  %v4984_v55 = vunpack.i.l.bf16 %v4983_v51 }
0x1005   : > { %v3581_v57 = vsel %vm1916_vm6, %v3580_v41, %v4985_v54  ;;  %v3122_v58 = vsel %vm1916_vm6, %v3121_v56, %v4984_v55 }
0x1006   : > { %v3582_v59 = vpack.c.bf16 %v3581_v57, %v3122_v58  ;;  %4863 = vmatpush3.bf16.xpose.msra.mxu1 %v3749_v27 }
0x1008   : > { %4853 = vmatmul.mubr.msk.bf16.vlgmr.msra.gmra.mrb[72].mxu0 %vm1321_vm1, %v3582_v59 }
0x1009   : > { %4872 = vmatprep.mubr.msk.bf16.mxu0 %vm5165_vm2, %v5164_v2  ;;  %4869 = vmatpush3.bf16.xpose.msra.mxu0 %v3816_v15 }
0x100a   : > { %4870 = vmatprep.subr.bf16.mxu0 %v5164_v2  ;;  %v4467_v2 = vld [vmem:[%s1230_s5] ss:$0 sm:$0xff]  ;;  %s6061_s5 = scalar_lea.vmem %s6060_s10, %s5352_s0  ;;  %s6068_s0 = sld [smem:[#allocation27_spill]] (!%p4480_p5) }
0x100b   : > { %v4474_v56 = vld [vmem:[%s6061_s5] ss:$0 sm:$0xff] }
0x1011   : > { %4871 = vmatpush3.bf16.xpose.msra.mxu0 %v3819_v46 }
0x10db   : > { %v3642_v8 = vpop.f32.mrb[72].mxu0 }
0x10dc   : > { %v3643_v39 = vadd.f32 %v4462_v34, %v3642_v8  ;;  %v4854_v60 = vpop.f32.mrb[73].mxu0 }
0x10dd   : > { %v3645_v61 = vpop.f32.mrb[74].mxu0 }
0x10de   : > { %v3646_v62 = vadd.f32 %v4462_v34, %v3645_v61  ;;  %v4855_v63 = vpop.f32.mrb[75].mxu0  ;;  %v3649_v0 = vadd.f32 %v3643_v39, %v5687_v5 }
0x10e0   : > { %v3653_v1 = vsel %vm1321_vm1, %v3649_v0, 0.0  ;;  %v3650_v3 = vadd.f32 %v3646_v62, %v5689_v6 }
0x10e1   : > { %3654 = vadd.xlane.f32.xlu1 %v3653_v1 }
0x10e2   : > { %v3656_v4 = vsel %vm1321_vm1, %v3650_v3, 0.0 }
0x10e3   : > { %3657 = vadd.xlane.f32.xlu0 %v3656_v4 }
0x116e   : > { %v3655_v10 = vpop.xlane.xlu1 %3654 }
0x116f   : > { %v3659_v11 = vmul.f32 0.03125, %v3655_v10 }
0x1170   : > { %v3658_v12 = vpop.xlane.xlu0 %3657 }
0x1171   : > { %v3661_v5 = vsub.f32 %v3649_v0, %v3659_v11  ;;  %v3660_v17 = vmul.f32 0.03125, %v3658_v12 }
0x1173   : > { %v3662_v18 = vsub.f32 %v3650_v3, %v3660_v17  ;;  %v3663_v6 = vmul.f32 %v3661_v5, %v3661_v5 }
0x1175   : > { %v3665_v19 = vsel %vm1321_vm1, %v3663_v6, 0.0  ;;  %v3664_v20 = vmul.f32 %v3662_v18, %v3662_v18 }
0x1176   : > { %3666 = vadd.xlane.f32.xlu0 %v3665_v19 }
0x1177   : > { %v3668_v21 = vsel %vm1321_vm1, %v3664_v20, 0.0 }
0x1178   : > { %3669 = vadd.xlane.f32.xlu1 %v3668_v21 }
0x1203   : > { %v3667_v29 = vpop.xlane.xlu0 %3666 }
0x1204   : > { %v3671_v30 = vmul.f32 0.03125, %v3667_v29 }
0x1205   : > { %v3670_v31 = vpop.xlane.xlu1 %3669 }
0x1206   : > { %v3673_v32 = vadd.f32 1e-05, %v3671_v30  ;;  %v3672_v33 = vmul.f32 0.03125, %v3670_v31 }
0x1208   : > { %5076 = vrsqrt.f32 %v3673_v32  ;;  %v3674_v36 = vadd.f32 1e-05, %v3672_v33  ;;  %v5084_v33 = vld [vmem:[%s6067_s2] sm:$0xff] (!%p4480_p5)  }
0x120a   : > { %5078 = vrsqrt.f32 %v3674_v36  ;;  %v5176_v36 = vmov (!%p4480_p5), 0.0  }
0x120b   : > { %4876 = vmatprep.subr.bf16.mxu0 (!%p4480_p5), %v5176_v36 }
0x1212   : > { %v5077_v13 = vpop.eup %5076 }
0x1213   : > { %v3677_v37 = vmul.f32 %v5077_v13, %v3661_v5  ;;  %v4026_v13 = vsel (!%p4480_p5), %vm1321_vm1, %v5084_v33, 0 }
0x1214   : > { %v5079_v38 = vpop.eup %5078 }
0x1215   : > { %v3685_v35 = vmul.f32 %v4466_v14, %v3677_v37  ;;  %v3678_v40 = vmul.f32 %v5079_v38, %v3662_v18  ;;  %v5086_v38 = vld [vmem:[%s6067_s2 + $0x10] sm:$0xff] (!%p4480_p5)  }
0x1217   : > { %v3686_v42 = vmul.f32 %v4466_v14, %v3678_v40  ;;  %v3693_v28 = vadd.f32 %v4467_v2, %v3685_v35  ;;  %v5085_v14 = vld [vmem:[%s6067_s2 + $0x8] sm:$0xff] (!%p4480_p5)   ;;  %v4032_v35 = vsel (!%p4480_p5), %vm1321_vm1, %v5086_v38, 0  ;;  %v5087_v40 = vld [vmem:[%s6067_s2 + $0x18] sm:$0xff] (!%p4480_p5)  }
0x1218   : > { %v4029_v37 = vsel (!%p4480_p5), %vm1321_vm1, %v5085_v14, 0 }
0x1219   : > { %v3694_v43 = vadd.f32 %v4467_v2, %v3686_v42  ;;  %v4035_v2 = vsel (!%p4480_p5), %vm1321_vm1, %v5087_v40, 0  ;;  %v5088_v42 = vld [vmem:[%s6067_s2 + $0x20] sm:$0xff] (!%p4480_p5)  }
0x121b   : > { %v3709_v44 = vpack.c.bf16 %v3694_v43, %v3693_v28 }
0x121d   : > { %4865 = vmatmul.mubr.msk.bf16.vlgmr.msra.gmra.mrb[76].mxu1 %vm1321_vm1, %v3709_v44 }
0x12f0   : > { %v3785_v48 = vpop.f32.mrb[76].mxu1 }
0x12f1   : > { %v3786_v49 = vadd.f32 %v4468_v47, %v3785_v48  ;;  %v4866_v50 = vpop.f32.mrb[77].mxu1 }
0x12f2   : > { %v3788_v51 = vpop.f32.mrb[78].mxu1 }
0x12f3   : > { %v3789_v52 = vadd.f32 %v4468_v47, %v3788_v51  ;;  %v4867_v53 = vpop.f32.mrb[79].mxu1  ;;  %v3792_v54 = vmax.f32 %v3786_v49, 0.0 }
0x12f4   : > { %v5089_v53 = vld [vmem:[%s6067_s2 + $0x28] sm:$0xff] (!%p4480_p5)  }
0x12f5   : > { %v3793_v55 = vmax.f32 %v3789_v52, 0.0 }
0x12f7   : > { %v3794_v41 = vpack.c.bf16 %v3793_v55, %v3792_v54  ;;  %v4041_v54 = vsel (!%p4480_p5), %vm1321_vm1, %v5089_v53, 0  ;;  %v5090_v55 = vld [vmem:[%s6067_s2 + $0x30] sm:$0xff] (!%p4480_p5)  }
0x12f9   : > { %4873 = vmatmul.mubr.msk.bf16.vlgmr.msra.gmra.mrb[76].mxu0 %vm3811_vm7, %v3794_v41  ;;  %v4044_v41 = vsel (!%p4480_p5), %vm1321_vm1, %v5090_v55, 0 }
0x12fa   : > { %4877 = vmatpush3.bf16.xpose.msra.mxu0 (!%p4480_p5), %v4026_v13  ;;  %4892 = vmatprep.mubr.msk.bf16.mxu0 (!%p4480_p5), %vm5177_vm8, %v5176_v36 }
0x12fb   : > { %4878 = vmatprep.subr.bf16.mxu0 (!%p4480_p5), %v5176_v36 }
0x1302   : > { %4879 = vmatpush3.bf16.xpose.msra.mxu0 (!%p4480_p5), %v4029_v37 }
0x1303   : > { %4880 = vmatprep.subr.bf16.mxu0 (!%p4480_p5), %v5176_v36 }
0x130a   : > { %4881 = vmatpush3.bf16.xpose.msra.mxu0 (!%p4480_p5), %v4032_v35 }
0x130b   : > { %4882 = vmatprep.subr.bf16.mxu0 (!%p4480_p5), %v5176_v36 }
0x1312   : > { %4883 = vmatpush3.bf16.xpose.msra.mxu0 (!%p4480_p5), %v4035_v2 }
0x1313   : > { %4884 = vmatprep.subr.bf16.mxu0 (!%p4480_p5), %v5176_v36 }
0x13cc   : > { %v3855_v57 = vpop.f32.mrb[76].mxu0 }
0x13cd   : > { %v3856_v58 = vadd.f32 %v4474_v56, %v3855_v57  ;;  %v4874_v59 = vpop.f32.mrb[77].mxu0 }
0x13ce   : > { %v3858_v34 = vpop.f32.mrb[78].mxu0 }
0x13cf   : > { %v3859_v8 = vadd.f32 %v4474_v56, %v3858_v34  ;;  %v4875_v39 = vpop.f32.mrb[79].mxu0  ;;  %v3862_v60 = vadd.f32 %v3856_v58, %v3693_v28  ;;  %v4038_v28 = vsel (!%p4480_p5), %vm1321_vm1, %v5088_v42, 0  ;;  %v5091_v56 = vld [vmem:[%s6067_s2 + $0x38] sm:$0xff] (!%p4480_p5)  }
0x13d0   : > { %4885 = vmatpush3.bf16.xpose.msra.mxu0 (!%p4480_p5), %v4038_v28  ;;  %v4047_v57 = vsel (!%p4480_p5), %vm1321_vm1, %v5091_v56, 0 }
0x13d1   : > { %v3866_v61 = vsel %vm1321_vm1, %v3862_v60, 0.0  ;;  %v3863_v62 = vadd.f32 %v3859_v8, %v3694_v43  ;;  %4886 = vmatprep.subr.bf16.mxu0 (!%p4480_p5), %v5176_v36 }
0x13d2   : > { %3867 = vadd.xlane.f32.xlu0 %v3866_v61 }
0x13d3   : > { %v3869_v63 = vsel %vm1321_vm1, %v3863_v62, 0.0 }
0x13d4   : > { %3870 = vadd.xlane.f32.xlu1 %v3869_v63  ;;  %v4481_v63 = vld [vmem:[%s6068_s0] ss:$0 sm:$0xff] (!%p4480_p5) }
0x13d8   : > { %4887 = vmatpush3.bf16.xpose.msra.mxu0 (!%p4480_p5), %v4041_v54 }
0x13d9   : > { %4888 = vmatprep.subr.bf16.mxu0 (!%p4480_p5), %v5176_v36 }
0x13e0   : > { %4889 = vmatpush3.bf16.xpose.msra.mxu0 (!%p4480_p5), %v4044_v41 }
0x13e1   : > { %4890 = vmatprep.subr.bf16.mxu0 (!%p4480_p5), %v5176_v36 }
0x13e8   : > { %4891 = vmatpush3.bf16.xpose.msra.mxu0 (!%p4480_p5), %v4047_v57 }
0x145f   : > { %v3868_v0 = vpop.xlane.xlu0 %3867 }
0x1460   : > { %v3872_v1 = vmul.f32 0.03125, %v3868_v0 }
0x1461   : > { %v3871_v3 = vpop.xlane.xlu1 %3870 }
0x1462   : > { %v3874_v4 = vsub.f32 %v3862_v60, %v3872_v1  ;;  %v3873_v7 = vmul.f32 0.03125, %v3871_v3 }
0x1464   : > { %v3875_v9 = vsub.f32 %v3863_v62, %v3873_v7  ;;  %v3876_v10 = vmul.f32 %v3874_v4, %v3874_v4 }
0x1466   : > { %v3878_v11 = vsel %vm1321_vm1, %v3876_v10, 0.0  ;;  %v3877_v12 = vmul.f32 %v3875_v9, %v3875_v9 }
0x1467   : > { %3879 = vadd.xlane.f32.xlu0 %v3878_v11 }
0x1468   : > { %v3881_v5 = vsel %vm1321_vm1, %v3877_v12, 0.0  ;;  %v4483_v12 = vld [vmem:[%s6070_s18] ss:$0 sm:$0xff] (!%p4480_p5) }
0x1469   : > { %3882 = vadd.xlane.f32.xlu1 %v3881_v5 }
0x14f4   : > { %v3880_v17 = vpop.xlane.xlu0 %3879 }
0x14f5   : > { %v3884_v18 = vmul.f32 0.03125, %v3880_v17 }
0x14f6   : > { %v3883_v6 = vpop.xlane.xlu1 %3882 }
0x14f7   : > { %v3886_v19 = vadd.f32 1e-05, %v3884_v18  ;;  %v3885_v20 = vmul.f32 0.03125, %v3883_v6 }
0x14f9   : > { %5080 = vrsqrt.f32 %v3886_v19  ;;  %v3887_v21 = vadd.f32 1e-05, %v3885_v20 }
0x14fb   : > { %5082 = vrsqrt.f32 %v3887_v21 }
0x1503   : > { %v5081_v16 = vpop.eup %5080 }
0x1504   : > { %v3890_v23 = vmul.f32 %v5081_v16, %v3874_v4  ;;  %v4482_v4 = vld [vmem:[%s6069_s7] ss:$0 sm:$0xff] (!%p4480_p5) }
0x1505   : > { %v5083_v24 = vpop.eup %5082 }
0x1506   : > { %v3898_v27 = vmul.f32 %v4478_v22, %v3890_v23  ;;  %v3891_v25 = vmul.f32 %v5083_v24, %v3875_v9  ;;  %3913 = sbr.rel (%p4480_p5) target bundleno = 5922 (0x1722), region = 148 }
0x1508   : > { %v3906_v15 = vadd.f32 %v4479_v26, %v3898_v27  ;;  %v3899_v29 = vmul.f32 %v4478_v22, %v3891_v25 }
0x150a   : > { %3908 = vst.msk [vmem:[#allocation2] sm:$0xff] %vm1321_vm1, %v3906_v15  ;;  %v3907_v30 = vadd.f32 %v4479_v26, %v3899_v29  ;;  %v3916_v31 = vsel (!%p4480_p5), %vm1321_vm1, %v3906_v15, 0.0 }
0x150b   : > { %3917 = vadd.xlane.f32.xlu0 (!%p4480_p5), %v3916_v31 }
0x150c   : > { %3909 = vst.msk [vmem:[#allocation2 + $0x8] sm:$0xff] %vm1321_vm1, %v3907_v30  ;;  %v3919_v32 = vsel (!%p4480_p5), %vm1321_vm1, %v3907_v30, 0.0 }
0x150f   : > { %3920 = vadd.xlane.f32.xlu0 %v3919_v32 }
0x1598   : > { %v3918_v43 = vpop.xlane.xlu0 %3917 }
0x1599   : > { %v3922_v44 = vmul.f32 0.03125, %v3918_v43 }
0x159b   : > { %v3924_v45 = vsub.f32 %v3906_v15, %v3922_v44 }
0x159c   : > { %v3921_v46 = vpop.xlane.xlu0 %3920 }
0x159d   : > { %v3923_v47 = vmul.f32 0.03125, %v3921_v46  ;;  %v3926_v48 = vmul.f32 %v3924_v45, %v3924_v45 }
0x159f   : > { %v3925_v49 = vsub.f32 %v3907_v30, %v3923_v47  ;;  %v3928_v50 = vsel %vm1321_vm1, %v3926_v48, 0.0 }
0x15a0   : > { %3929 = vadd.xlane.f32.xlu1 %v3928_v50 }
0x15a1   : > { %v3927_v51 = vmul.f32 %v3925_v49, %v3925_v49 }
0x15a3   : > { %v3931_v52 = vsel %vm1321_vm1, %v3927_v51, 0.0 }
0x15a4   : > { %3932 = vadd.xlane.f32.xlu1 %v3931_v52 }
0x162d   : > { %v3930_v58 = vpop.xlane.xlu1 %3929 }
0x162e   : > { %v3934_v59 = vmul.f32 0.03125, %v3930_v58 }
0x1630   : > { %v3936_v34 = vadd.f32 1e-05, %v3934_v59 }
0x1631   : > { %v3933_v8 = vpop.xlane.xlu1 %3932 }
0x1632   : > { %5092 = vrsqrt.f32 %v3936_v34  ;;  %v3935_v39 = vmul.f32 0.03125, %v3933_v8 }
0x1634   : > { %v3937_v60 = vadd.f32 1e-05, %v3935_v39 }
0x1636   : > { %5094 = vrsqrt.f32 %v3937_v60 }
0x163c   : > { %v5093_v61 = vpop.eup %5092 }
0x163d   : > { %v3940_v62 = vmul.f32 %v5093_v61, %v3924_v45 }
0x163f   : > { %v3948_v3 = vmul.f32 %v4481_v63, %v3940_v62 }
0x1640   : > { %v5095_v0 = vpop.eup %5094 }
0x1641   : > { %v3941_v1 = vmul.f32 %v5095_v0, %v3925_v49  ;;  %v3956_v9 = vadd.f32 %v4482_v4, %v3948_v3 }
0x1643   : > { %v3949_v7 = vmul.f32 %v4481_v63, %v3941_v1 }
0x1645   : > { %v3957_v10 = vadd.f32 %v4482_v4, %v3949_v7 }
0x1647   : > { %v3974_v11 = vpack.c.bf16 %v3957_v10, %v3956_v9 }
0x1649   : > { %4893 = vmatmul.mubr.msk.bf16.vlgmr.msra.gmra.mrb[0].mxu0 %vm1321_vm1, %v3974_v11 }
0x171c   : > { %v4083_v5 = vpop.f32.mrb[0].mxu0 }
0x171d   : > { %v4084_v17 = vadd.f32 %v4483_v12, %v4083_v5  ;;  %v4894_v18 = vpop.f32.mrb[1].mxu0 }
0x171e   : > { %v4086_v6 = vpop.f32.mrb[2].mxu0 }
0x171f   : > { %4090 = vst [vmem:[#allocation3] sm:$0xff] %v4084_v17  ;;  %v4087_v19 = vadd.f32 %v4483_v12, %v4086_v6  ;;  %v4895_v20 = vpop.f32.mrb[3].mxu0 }
0x1721   : > { %4091 = vst [vmem:[#allocation3 + $0x8] sm:$0xff] %v4087_v19 }
0x1722 PF: > { %s6071_s9 = sld [smem:[#allocation33_spill]]  ;;  %s5178_s17 = smov [#allocation3]  }
0x1723   : > { %s4098_s11 = sshll.u32 %s5178_s17, 4  ;;  %s4099_s11 = int_to_ptr.vmem [resolvable:$true] %s4098_s11 }
0x1724   : > { %s5096_s30 = scalar_lea.vmem %s4099_s11, 256  ;;  %p5103_p10 = scmp.lt.s32.totalorder %s4099_s11, %s4099_s11 }
0x1725   : > { %p5097_p7 = scmp.ne.s32.totalorder %s4099_s11, %s5096_s30  ;;  %p5104_p11 = scmp.lt.s32.totalorder %s5096_s30, %s5096_s30 }
0x1727   : > { %p5105_p12 = por %p5104_p11, %p5103_p10 }
0x1728   : > { %p4900_p6 = scmp.eq.s32.totalorder %s6071_s9, 1 }
0x172a   : > { %p5098_p8 = pnand %p5097_p7, %p4900_p6 }
0x172c   : > { %p5099_p9 = pneg %p5098_p8 }
0x172e   : > { %p5106_p13 = pnand %p5105_p12, %p5099_p9 }
0x1730   : > { %5109 = shalt.err (!%p5106_p13)
}
0x1731   : > { %s6072_s24 = sld [smem:[#allocation31_spill]] }
0x1737   : > { %s5110_s29 = scalar_lea.hbm %s6072_s24, 256 }
0x1738   : > { %p5111_p0 = scmp.ne.s32.totalorder %s6072_s24, %s5110_s29  ;;  %p5116_p3 = scmp.lt.u32.totalorder %s5110_s29, %s6072_s24 }
0x173a   : > { %p5112_p1 = pnand %p5111_p0, %p4900_p6 }
0x173c   : > { %p5113_p2 = pneg %p5112_p1 }
0x173e   : > { %p5118_p4 = pnand %p5116_p3, %p5113_p2 }
0x1740   : > { %5121 = shalt.err (!%p5118_p4)
}
0x1741   : > { %s5179_s28 = smov 128  }
0x1742   : > { %4897 = dma.vmem_to_hbm [thread:$0]  (%p4900_p6), %s4099_s11, 256, %s6072_s24, [#allocation4], %s5179_s28, %s5179_s28, %s5173_s23  }
0x1743   : > { %5127 = dma.done.wait (%p4900_p6), [#allocation4], 256  }
0x1744   : > { %5129 = vsyncadd (%p4900_p6), [#allocation4], 4294967040 }
0x1745 PF: > { %s6073_s25 = sld [smem:[#allocation32_spill]] }
0x174b   : > { %s72_s15 = sadd.s32 1, %s6073_s25  }
0x174c   : > { %p69_p5 = scmp.ge.s32.totalorder %s72_s15, 4  }
0x174e   :  { %71 = sbr.rel (!%p69_p5) target bundleno = 70 (0x46), region = 269 }
0x1755   :  { %4114 = vsyncpa [#allocation4], 1 }
0x1756   :  { %4116 = vsyncpa [#allocation4 + $0x1], 1 }

</bundles_post_ra>
